<compile_context>
chip_gen: v5e
topology: v5e:2x2
jax: 0.10.0
libtpu: 0.0.40
codegen_flags: <defaults>
</compile_context>

<pallas_src>
import functools
import math

import jax
import jax.numpy as jnp
from jax import lax
from jax.experimental import pallas as pl
from jax.experimental.pallas import tpu as pltpu  # noqa: F401


def _softmax_rows(s):
    # Exact softmax: keeps the tau-amplified logit path well inside the 2e-3
    # check.  (Production: switch the divide to pl.reciprocal(approx=True).)
    m = jnp.max(s, axis=-1, keepdims=True)
    e = jnp.exp(s - m)
    return e / jnp.sum(e, axis=-1, keepdims=True)


def _col_l2_normalize(x, eps=1e-12):
    # F.normalize(p=2, dim=-1) per token; tokens live in the lane (column)
    # axis here, so the reduction runs over sublanes (axis 0).
    ss = jnp.sum(x * x, axis=0, keepdims=True)
    return x * lax.rsqrt(jnp.maximum(ss, eps * eps))


def _decoder_kernel(xt_ref, mem_ref, pe_ref,
                    wks_ref, bks_ref, wkc_ref, bkc_ref,
                    o_ref, *, ns, nf, hw, inv_tau_self, inv_tau_cross):
    """Fused decoder step, all `ns` sequences in a single invocation.

    xt_ref : (c, ns*hw)        target, channel-first, sequences packed in lanes
    mem_ref: (nf, ns, c, hw)   memory, natural layout (no host transpose)
    pe_ref : (nf, ns, ce, hw)  positional encoding (cross-attn value)
    wks_ref/wkc_ref: (kd, c)   torch-layout WK weights (self / cross)
    bks_ref/bkc_ref: (kd, 1)   bias columns (the only form the kernel needs)
    o_ref  : (ce, ns*hw)       output, channel-first, one lane-dense store
    """
    f32 = jnp.float32
    xt = xt_ref[...].astype(f32)                                         # (c, L)
    wks = wks_ref[...].astype(f32)                                       # (kd, c)
    bks = bks_ref[...].astype(f32)                                       # (kd, 1)

    # ---- self-attention: q == k == v -> project all sequences at once ----
    # One lane-dense (kd, ns*hw) MXU matmul instead of per-sequence slivers.
    p = jnp.dot(wks, xt, preferred_element_type=f32) + bks               # (kd, L)
    pn = _col_l2_normalize(p)                                            # (kd, L)
    # Token-major copy for the query side with 1/tau folded into the (L, kd)
    # operand instead of scaling every score tile.
    pn_q = jnp.transpose(pn) * inv_tau_self                              # (L, kd)

    tn_cols = []
    for s in range(ns):                    # ns is tiny & static: python loop
        sl = slice(s * hw, (s + 1) * hw)
        # scores (hw_q, hw_k): NN matmul, contraction over kd
        sc = jnp.dot(pn_q[sl, :], pn[:, sl], preferred_element_type=f32)
        aff = _softmax_rows(sc)                                          # (hw_q, hw_k)
        x_s = xt[:, sl]                                                  # (c, hw)
        # value path channel-first: (c, hw_k) . (hw_q, hw_k)^T -> (c, hw_q)
        t2 = x_s + lax.dot_general(x_s, aff, (((1,), (1,)), ((), ())),
                                   preferred_element_type=f32)
        # instance norm: per (sequence, channel) over the spatial (lane) axis
        mu = jnp.mean(t2, axis=1, keepdims=True)
        d = t2 - mu
        var = jnp.mean(d * d, axis=1, keepdims=True)
        tn_cols.append(d * lax.rsqrt(var + 1e-5))
    tn = jnp.concatenate(tn_cols, axis=-1)                               # (c, L)

    # ---- cross-attention: key = memory, value = pos_enc ----
    wkc = wkc_ref[...].astype(f32)                                       # (kd, c)
    bkc = bkc_ref[...].astype(f32)                                       # (kd, 1)
    q2 = jnp.dot(wkc, tn, preferred_element_type=f32) + bkc              # (kd, L)
    q2n_q = jnp.transpose(_col_l2_normalize(q2)) * inv_tau_cross         # (L, kd)

    out_cols = []
    for s in range(ns):
        sl = slice(s * hw, (s + 1) * hw)
        q_s = q2n_q[sl, :]                                               # (hw, kd)
        # keys: per-frame channel-first blocks straight from the natural
        # (nf, ns, c, hw) layout -- no host-side transpose of memory.
        logits = []
        for f in range(nf):
            m = mem_ref[f, s].astype(f32)                                # (c, hw)
            k2 = jnp.dot(wkc, m, preferred_element_type=f32) + bkc       # (kd, hw)
            k2n = _col_l2_normalize(k2)
            logits.append(jnp.dot(q_s, k2n, preferred_element_type=f32)) # (hw, hw)
        aff2 = _softmax_rows(jnp.concatenate(logits, axis=-1))           # (hw, nf*hw)
        # output: sum_f pe[f,s] (ce, hw_k) . aff2_f (hw_q, hw_k)^T -> (ce, hw_q)
        acc = None
        for f in range(nf):
            pe = pe_ref[f, s].astype(f32)                                # (ce, hw)
            a_f = aff2[:, f * hw:(f + 1) * hw]                           # (hw_q, hw_k)
            contrib = lax.dot_general(pe, a_f, (((1,), (1,)), ((), ())),
                                      preferred_element_type=f32)
            acc = contrib if acc is None else acc + contrib
        out_cols.append(acc)

    # single unmasked lane-dense store: (ce, ns*hw), last dim a multiple of 128
    o_ref[...] = jnp.concatenate(out_cols, axis=-1).astype(o_ref.dtype)


def transformer_decoder_forward(tgt, memory, pos_enc, params, *, self_tau, cross_tau):
    """tgt: (1, ns, c, h, w); memory: (nf, ns, c, h, w); pos_enc: (nf, ns, ce, h, w).

    self_tau / cross_tau must be static python floats (baked into the kernel
    as literals -- this fixes the previous "captures constants" trace error).
    """
    _, ns, c, h, w = tgt.shape
    nf = memory.shape[0]
    ce = pos_enc.shape[2]
    hw = h * w
    L = ns * hw
    kd = params["self_wk"].shape[0]

    # Target is tiny: one relayout to channel-first with the ns sequences
    # packed along the lane axis (lane-dense (c, ns*hw) slab).
    xt_cf = tgt.reshape(ns, c, hw).transpose(1, 0, 2).reshape(c, L)
    # memory / pos_enc: FREE reshapes only (no HBM transpose of the big streams).
    mem4 = memory.reshape(nf, ns, c, hw)
    pe4 = pos_enc.reshape(nf, ns, ce, hw)
    # Single (column) bias form each -- no redundant row+column copies in VMEM.
    bks_col = params["self_bk"].reshape(kd, 1)
    bkc_col = params["cross_bk"].reshape(kd, 1)

    kernel = functools.partial(
        _decoder_kernel, ns=ns, nf=nf, hw=hw,
        inv_tau_self=float(1.0 / self_tau),
        inv_tau_cross=float(1.0 / cross_tau))

    # Single invocation (no grid): on single-TC chips (v5e/v6e) a grid is just
    # a serial loop whose ~0.35us/step overhead dominates at these sizes; all
    # inputs + intermediates are well under 1 MiB of VMEM.
    # TODO(synk): for v7x (2 TCs) and production hw/nf, reintroduce
    # grid=(ns, q_tile, lk_tile) with ("parallel","parallel","arbitrary"),
    # flash-style online softmax over lk, tiles sized for 64 MiB VMEM, and
    # bf16 on the value-path matmuls / mem+pe HBM stream.
    out_cf = pl.pallas_call(
        kernel,
        out_shape=jax.ShapeDtypeStruct((ce, L), jnp.float32),
    )(xt_cf, mem4, pe4,
      params["self_wk"], bks_col, params["cross_wk"], bkc_col)

    # (ce, ns*hw) -> (1, ns, ce, h, w): tiny host transpose of the small output
    return out_cf.reshape(ce, ns, h, w).transpose(1, 0, 2, 3)[None]


# ----------------------------------------------------------------------------
# Pure-JAX reference (mirrors the PyTorch forward) for validation
# ----------------------------------------------------------------------------
def _ref_attention(q_seq, k_seq, v_seq, wk, bk, tau):
    def l2norm(x):
        n = jnp.sqrt(jnp.sum(x * x, axis=-1, keepdims=True))
        return x / jnp.maximum(n, 1e-12)

    wq = l2norm(q_seq @ wk.T + bk).transpose(1, 0, 2)          # (ns, Lq, kd)
    wkk = l2norm(k_seq @ wk.T + bk).transpose(1, 2, 0)         # (ns, kd, Lk)
    wv = v_seq.transpose(1, 0, 2)                              # (ns, Lk, dv)
    dot = jnp.einsum("bqd,bdk->bqk", wq, wkk) / tau
    aff = jax.nn.softmax(dot, axis=-1)
    out = jnp.einsum("bqk,bkd->bqd", aff, wv)
    return out.transpose(1, 0, 2)                              # (Lq, ns, dv)


def _ref_forward(tgt, memory, pos_enc, params, self_tau, cross_tau):
    _, ns, c, h, w = tgt.shape
    nf = memory.shape[0]
    ce = pos_enc.shape[2]
    hw = h * w
    tgt_seq = tgt.reshape(1, ns, c, hw).transpose(0, 3, 1, 2).reshape(hw, ns, c)
    mem_seq = memory.reshape(nf, ns, c, hw).transpose(0, 3, 1, 2).reshape(nf * hw, ns, c)
    pe_seq = pos_enc.reshape(nf, ns, ce, hw).transpose(0, 3, 1, 2).reshape(nf * hw, ns, ce)

    tgt_attn = _ref_attention(tgt_seq, tgt_seq, tgt_seq,
                              params["self_wk"], params["self_bk"], self_tau)
    t = tgt_seq + tgt_attn                                     # (hw, ns, c)
    t4 = t.reshape(1, h, w, ns, c).transpose(0, 3, 4, 1, 2).reshape(ns, c, h, w)
    mean = t4.mean(axis=(2, 3), keepdims=True)
    var = ((t4 - mean) ** 2).mean(axis=(2, 3), keepdims=True)
    t4 = (t4 - mean) / jnp.sqrt(var + 1e-5)
    t = t4.reshape(1, ns, c, hw).transpose(0, 3, 1, 2).reshape(hw, ns, c)

    enc = _ref_attention(t, mem_seq, pe_seq,
                         params["cross_wk"], params["cross_bk"], cross_tau)
    return enc.reshape(1, h, w, ns, ce).transpose(0, 3, 4, 1, 2)


# ----------------------------------------------------------------------------
# main
# ----------------------------------------------------------------------------
if __name__ == "__main__":
    key = jax.random.PRNGKey(0)
    ks = jax.random.split(key, 7)

    num_frames, num_sequences = 2, 2
    c, ce, h, w = 32, 32, 8, 8
    key_dim = 128                     # hard-coded 128 in the reference module
    self_tau = cross_tau = 1.0 / 30.0

    tgt = jax.random.normal(ks[0], (1, num_sequences, c, h, w), jnp.float32)
    memory = jax.random.normal(ks[1], (num_frames, num_sequences, c, h, w), jnp.float32)
    pos_enc = jax.random.normal(ks[2], (num_frames, num_sequences, ce, h, w), jnp.float32)

    # torch-layout WK weights (key_dim, feature_dim); nonzero biases so the
    # bias-add paths are actually exercised by the check.
    std = math.sqrt(2.0 / key_dim)
    params = {
        "self_wk": std * jax.random.normal(ks[3], (key_dim, c), jnp.float32),
        "self_bk": 0.1 * jax.random.normal(ks[4], (1, key_dim), jnp.float32),
        "cross_wk": std * jax.random.normal(ks[5], (key_dim, c), jnp.float32),
        "cross_bk": 0.1 * jax.random.normal(ks[6], (1, key_dim), jnp.float32),
    }

    fwd = jax.jit(transformer_decoder_forward,
                  static_argnames=("self_tau", "cross_tau"))
    out = jax.block_until_ready(
        fwd(tgt, memory, pos_enc, params, self_tau=self_tau, cross_tau=cross_tau))

    ref = _ref_forward(tgt, memory, pos_enc, params, self_tau, cross_tau)
    assert out.shape == (1, num_sequences, ce, h, w), out.shape
    max_err = float(jnp.max(jnp.abs(out - ref)))
    assert jnp.allclose(out, ref, rtol=2e-3, atol=2e-3), max_err

    print("KERNEL_OK")
</pallas_src>

<mosaic_0001>
module attributes {stable_mosaic.version = 11 : i64} {
  func.func @_decoder_kernel(%arg0: memref<32x128xf32, #tpu.memory_space<vmem>>, %arg1: memref<2x2x32x64xf32, #tpu.memory_space<vmem>>, %arg2: memref<2x2x32x64xf32, #tpu.memory_space<vmem>>, %arg3: memref<128x32xf32, #tpu.memory_space<vmem>>, %arg4: memref<128x1xf32, #tpu.memory_space<vmem>>, %arg5: memref<128x32xf32, #tpu.memory_space<vmem>>, %arg6: memref<128x1xf32, #tpu.memory_space<vmem>>, %arg7: memref<32x128xf32, #tpu.memory_space<vmem>>) attributes {dimension_semantics = [], scalar_prefetch = 0 : i64, scratch_operands = 0 : i64, tpu.core_type = #tpu.core_type<tc>} {
    %c0 = arith.constant 0 : index
    %c0_0 = arith.constant 0 : index
    %0 = vector.load %arg0[%c0, %c0_0] : memref<32x128xf32, #tpu.memory_space<vmem>>, vector<32x128xf32>
    %c0_1 = arith.constant 0 : index
    %c0_2 = arith.constant 0 : index
    %1 = vector.load %arg3[%c0_1, %c0_2] : memref<128x32xf32, #tpu.memory_space<vmem>>, vector<128x32xf32>
    %c0_3 = arith.constant 0 : index
    %c0_4 = arith.constant 0 : index
    %2 = vector.load %arg4[%c0_3, %c0_4] : memref<128x1xf32, #tpu.memory_space<vmem>>, vector<128x1xf32>
    %cst = arith.constant dense<0.000000e+00> : vector<128x128xf32>
    %3 = tpu.matmul %1, %0, %cst {dimension_numbers = #tpu.dot_dimension_numbers<[1], [0], [0], [1], [0, 0, 1, 1], [], []>} : vector<128x32xf32>, vector<32x128xf32>, vector<128x128xf32> -> vector<128x128xf32>
    %4 = vector.broadcast %2 : vector<128x1xf32> to vector<128x128xf32>
    %5 = arith.addf %3, %4 : vector<128x128xf32>
    %6 = arith.mulf %5, %5 : vector<128x128xf32>
    %cst_5 = arith.constant dense<0.000000e+00> : vector<128xf32>
    %7 = vector.multi_reduction <add>, %6, %cst_5 [0] : vector<128x128xf32> to vector<128xf32>
    %8 = vector.shape_cast %7 : vector<128xf32> to vector<1x128xf32>
    %cst_6 = arith.constant 1.000000e-24 : f32
    %9 = vector.broadcast %cst_6 : f32 to vector<1x128xf32>
    %10 = arith.maximumf %8, %9 : vector<1x128xf32>
    %11 = math.rsqrt %10 : vector<1x128xf32>
    %12 = vector.broadcast %11 : vector<1x128xf32> to vector<128x128xf32>
    %13 = arith.mulf %5, %12 : vector<128x128xf32>
    %14 = tpu.transpose %13, [1, 0] : vector<128x128xf32> -> vector<128x128xf32>
    %cst_7 = arith.constant 3.000000e+01 : f32
    %15 = vector.broadcast %cst_7 : f32 to vector<128x128xf32>
    %16 = arith.mulf %14, %15 : vector<128x128xf32>
    %17 = vector.extract_strided_slice %16 {offsets = [0, 0], sizes = [64, 128], strides = [1, 1]} : vector<128x128xf32> to vector<64x128xf32>
    %18 = vector.extract_strided_slice %13 {offsets = [0, 0], sizes = [128, 64], strides = [1, 1]} : vector<128x128xf32> to vector<128x64xf32>
    %cst_8 = arith.constant dense<0.000000e+00> : vector<64x64xf32>
    %19 = tpu.matmul %17, %18, %cst_8 {dimension_numbers = #tpu.dot_dimension_numbers<[1], [0], [0], [1], [0, 0, 1, 1], [], []>} : vector<64x128xf32>, vector<128x64xf32>, vector<64x64xf32> -> vector<64x64xf32>
    %cst_9 = arith.constant dense<0xFF800000> : vector<64xf32>
    %20 = vector.multi_reduction <maximumf>, %19, %cst_9 [1] : vector<64x64xf32> to vector<64xf32>
    %21 = vector.shape_cast %20 : vector<64xf32> to vector<64x1xf32>
    %22 = vector.broadcast %21 : vector<64x1xf32> to vector<64x64xf32>
    %23 = arith.subf %19, %22 : vector<64x64xf32>
    %24 = math.exp %23 : vector<64x64xf32>
    %cst_10 = arith.constant dense<0.000000e+00> : vector<64xf32>
    %25 = vector.multi_reduction <add>, %24, %cst_10 [1] : vector<64x64xf32> to vector<64xf32>
    %26 = vector.shape_cast %25 : vector<64xf32> to vector<64x1xf32>
    %27 = vector.broadcast %26 : vector<64x1xf32> to vector<64x64xf32>
    %28 = arith.divf %24, %27 : vector<64x64xf32>
    %29 = vector.extract_strided_slice %0 {offsets = [0, 0], sizes = [32, 64], strides = [1, 1]} : vector<32x128xf32> to vector<32x64xf32>
    %cst_11 = arith.constant dense<0.000000e+00> : vector<32x64xf32>
    %30 = tpu.matmul %29, %28, %cst_11 {dimension_numbers = #tpu.dot_dimension_numbers<[1], [1], [0], [0], [0, 0, 1, 0], [], []>} : vector<32x64xf32>, vector<64x64xf32>, vector<32x64xf32> -> vector<32x64xf32>
    %31 = arith.addf %29, %30 : vector<32x64xf32>
    %cst_12 = arith.constant dense<0.000000e+00> : vector<32xf32>
    %32 = vector.multi_reduction <add>, %31, %cst_12 [1] : vector<32x64xf32> to vector<32xf32>
    %33 = vector.shape_cast %32 : vector<32xf32> to vector<32x1xf32>
    %cst_13 = arith.constant 6.400000e+01 : f32
    %34 = vector.broadcast %cst_13 : f32 to vector<32x1xf32>
    %35 = arith.divf %33, %34 : vector<32x1xf32>
    %36 = vector.broadcast %35 : vector<32x1xf32> to vector<32x64xf32>
    %37 = arith.subf %31, %36 : vector<32x64xf32>
    %38 = arith.mulf %37, %37 : vector<32x64xf32>
    %cst_14 = arith.constant dense<0.000000e+00> : vector<32xf32>
    %39 = vector.multi_reduction <add>, %38, %cst_14 [1] : vector<32x64xf32> to vector<32xf32>
    %40 = vector.shape_cast %39 : vector<32xf32> to vector<32x1xf32>
    %cst_15 = arith.constant 6.400000e+01 : f32
    %41 = vector.broadcast %cst_15 : f32 to vector<32x1xf32>
    %42 = arith.divf %40, %41 : vector<32x1xf32>
    %cst_16 = arith.constant 9.99999974E-6 : f32
    %43 = vector.broadcast %cst_16 : f32 to vector<32x1xf32>
    %44 = arith.addf %42, %43 : vector<32x1xf32>
    %45 = math.rsqrt %44 : vector<32x1xf32>
    %46 = vector.broadcast %45 : vector<32x1xf32> to vector<32x64xf32>
    %47 = arith.mulf %37, %46 : vector<32x64xf32>
    %48 = vector.extract_strided_slice %16 {offsets = [64, 0], sizes = [64, 128], strides = [1, 1]} : vector<128x128xf32> to vector<64x128xf32>
    %49 = vector.extract_strided_slice %13 {offsets = [0, 64], sizes = [128, 64], strides = [1, 1]} : vector<128x128xf32> to vector<128x64xf32>
    %cst_17 = arith.constant dense<0.000000e+00> : vector<64x64xf32>
    %50 = tpu.matmul %48, %49, %cst_17 {dimension_numbers = #tpu.dot_dimension_numbers<[1], [0], [0], [1], [0, 0, 1, 1], [], []>} : vector<64x128xf32>, vector<128x64xf32>, vector<64x64xf32> -> vector<64x64xf32>
    %cst_18 = arith.constant dense<0xFF800000> : vector<64xf32>
    %51 = vector.multi_reduction <maximumf>, %50, %cst_18 [1] : vector<64x64xf32> to vector<64xf32>
    %52 = vector.shape_cast %51 : vector<64xf32> to vector<64x1xf32>
    %53 = vector.broadcast %52 : vector<64x1xf32> to vector<64x64xf32>
    %54 = arith.subf %50, %53 : vector<64x64xf32>
    %55 = math.exp %54 : vector<64x64xf32>
    %cst_19 = arith.constant dense<0.000000e+00> : vector<64xf32>
    %56 = vector.multi_reduction <add>, %55, %cst_19 [1] : vector<64x64xf32> to vector<64xf32>
    %57 = vector.shape_cast %56 : vector<64xf32> to vector<64x1xf32>
    %58 = vector.broadcast %57 : vector<64x1xf32> to vector<64x64xf32>
    %59 = arith.divf %55, %58 : vector<64x64xf32>
    %60 = vector.extract_strided_slice %0 {offsets = [0, 64], sizes = [32, 64], strides = [1, 1]} : vector<32x128xf32> to vector<32x64xf32>
    %cst_20 = arith.constant dense<0.000000e+00> : vector<32x64xf32>
    %61 = tpu.matmul %60, %59, %cst_20 {dimension_numbers = #tpu.dot_dimension_numbers<[1], [1], [0], [0], [0, 0, 1, 0], [], []>} : vector<32x64xf32>, vector<64x64xf32>, vector<32x64xf32> -> vector<32x64xf32>
    %62 = arith.addf %60, %61 : vector<32x64xf32>
    %cst_21 = arith.constant dense<0.000000e+00> : vector<32xf32>
    %63 = vector.multi_reduction <add>, %62, %cst_21 [1] : vector<32x64xf32> to vector<32xf32>
    %64 = vector.shape_cast %63 : vector<32xf32> to vector<32x1xf32>
    %cst_22 = arith.constant 6.400000e+01 : f32
    %65 = vector.broadcast %cst_22 : f32 to vector<32x1xf32>
    %66 = arith.divf %64, %65 : vector<32x1xf32>
    %67 = vector.broadcast %66 : vector<32x1xf32> to vector<32x64xf32>
    %68 = arith.subf %62, %67 : vector<32x64xf32>
    %69 = arith.mulf %68, %68 : vector<32x64xf32>
    %cst_23 = arith.constant dense<0.000000e+00> : vector<32xf32>
    %70 = vector.multi_reduction <add>, %69, %cst_23 [1] : vector<32x64xf32> to vector<32xf32>
    %71 = vector.shape_cast %70 : vector<32xf32> to vector<32x1xf32>
    %cst_24 = arith.constant 6.400000e+01 : f32
    %72 = vector.broadcast %cst_24 : f32 to vector<32x1xf32>
    %73 = arith.divf %71, %72 : vector<32x1xf32>
    %cst_25 = arith.constant 9.99999974E-6 : f32
    %74 = vector.broadcast %cst_25 : f32 to vector<32x1xf32>
    %75 = arith.addf %73, %74 : vector<32x1xf32>
    %76 = math.rsqrt %75 : vector<32x1xf32>
    %77 = vector.broadcast %76 : vector<32x1xf32> to vector<32x64xf32>
    %78 = arith.mulf %68, %77 : vector<32x64xf32>
    %79 = tpu.concatenate %47, %78 in 1 : vector<32x64xf32>, vector<32x64xf32> -> vector<32x128xf32>
    %c0_26 = arith.constant 0 : index
    %c0_27 = arith.constant 0 : index
    %80 = vector.load %arg5[%c0_26, %c0_27] : memref<128x32xf32, #tpu.memory_space<vmem>>, vector<128x32xf32>
    %c0_28 = arith.constant 0 : index
    %c0_29 = arith.constant 0 : index
    %81 = vector.load %arg6[%c0_28, %c0_29] : memref<128x1xf32, #tpu.memory_space<vmem>>, vector<128x1xf32>
    %cst_30 = arith.constant dense<0.000000e+00> : vector<128x128xf32>
    %82 = tpu.matmul %80, %79, %cst_30 {dimension_numbers = #tpu.dot_dimension_numbers<[1], [0], [0], [1], [0, 0, 1, 1], [], []>} : vector<128x32xf32>, vector<32x128xf32>, vector<128x128xf32> -> vector<128x128xf32>
    %83 = vector.broadcast %81 : vector<128x1xf32> to vector<128x128xf32>
    %84 = arith.addf %82, %83 : vector<128x128xf32>
    %85 = arith.mulf %84, %84 : vector<128x128xf32>
    %cst_31 = arith.constant dense<0.000000e+00> : vector<128xf32>
    %86 = vector.multi_reduction <add>, %85, %cst_31 [0] : vector<128x128xf32> to vector<128xf32>
    %87 = vector.shape_cast %86 : vector<128xf32> to vector<1x128xf32>
    %cst_32 = arith.constant 1.000000e-24 : f32
    %88 = vector.broadcast %cst_32 : f32 to vector<1x128xf32>
    %89 = arith.maximumf %87, %88 : vector<1x128xf32>
    %90 = math.rsqrt %89 : vector<1x128xf32>
    %91 = vector.broadcast %90 : vector<1x128xf32> to vector<128x128xf32>
    %92 = arith.mulf %84, %91 : vector<128x128xf32>
    %93 = tpu.transpose %92, [1, 0] : vector<128x128xf32> -> vector<128x128xf32>
    %cst_33 = arith.constant 3.000000e+01 : f32
    %94 = vector.broadcast %cst_33 : f32 to vector<128x128xf32>
    %95 = arith.mulf %93, %94 : vector<128x128xf32>
    %96 = vector.extract_strided_slice %95 {offsets = [0, 0], sizes = [64, 128], strides = [1, 1]} : vector<128x128xf32> to vector<64x128xf32>
    %c0_34 = arith.constant 0 : index
    %c0_35 = arith.constant 0 : index
    %c0_36 = arith.constant 0 : index
    %c0_37 = arith.constant 0 : index
    %97 = vector.load %arg1[%c0_34, %c0_35, %c0_36, %c0_37] : memref<2x2x32x64xf32, #tpu.memory_space<vmem>>, vector<1x1x32x64xf32>
    %98 = vector.shape_cast %97 : vector<1x1x32x64xf32> to vector<32x64xf32>
    %cst_38 = arith.constant dense<0.000000e+00> : vector<128x64xf32>
    %99 = tpu.matmul %80, %98, %cst_38 {dimension_numbers = #tpu.dot_dimension_numbers<[1], [0], [0], [1], [0, 0, 1, 1], [], []>} : vector<128x32xf32>, vector<32x64xf32>, vector<128x64xf32> -> vector<128x64xf32>
    %100 = vector.broadcast %81 : vector<128x1xf32> to vector<128x64xf32>
    %101 = arith.addf %99, %100 : vector<128x64xf32>
    %102 = arith.mulf %101, %101 : vector<128x64xf32>
    %cst_39 = arith.constant dense<0.000000e+00> : vector<64xf32>
    %103 = vector.multi_reduction <add>, %102, %cst_39 [0] : vector<128x64xf32> to vector<64xf32>
    %104 = vector.shape_cast %103 : vector<64xf32> to vector<1x64xf32>
    %cst_40 = arith.constant 1.000000e-24 : f32
    %105 = vector.broadcast %cst_40 : f32 to vector<1x64xf32>
    %106 = arith.maximumf %104, %105 : vector<1x64xf32>
    %107 = math.rsqrt %106 : vector<1x64xf32>
    %108 = vector.broadcast %107 : vector<1x64xf32> to vector<128x64xf32>
    %109 = arith.mulf %101, %108 : vector<128x64xf32>
    %cst_41 = arith.constant dense<0.000000e+00> : vector<64x64xf32>
    %110 = tpu.matmul %96, %109, %cst_41 {dimension_numbers = #tpu.dot_dimension_numbers<[1], [0], [0], [1], [0, 0, 1, 1], [], []>} : vector<64x128xf32>, vector<128x64xf32>, vector<64x64xf32> -> vector<64x64xf32>
    %c1 = arith.constant 1 : index
    %c0_42 = arith.constant 0 : index
    %c0_43 = arith.constant 0 : index
    %c0_44 = arith.constant 0 : index
    %111 = vector.load %arg1[%c1, %c0_42, %c0_43, %c0_44] : memref<2x2x32x64xf32, #tpu.memory_space<vmem>>, vector<1x1x32x64xf32>
    %112 = vector.shape_cast %111 : vector<1x1x32x64xf32> to vector<32x64xf32>
    %cst_45 = arith.constant dense<0.000000e+00> : vector<128x64xf32>
    %113 = tpu.matmul %80, %112, %cst_45 {dimension_numbers = #tpu.dot_dimension_numbers<[1], [0], [0], [1], [0, 0, 1, 1], [], []>} : vector<128x32xf32>, vector<32x64xf32>, vector<128x64xf32> -> vector<128x64xf32>
    %114 = vector.broadcast %81 : vector<128x1xf32> to vector<128x64xf32>
    %115 = arith.addf %113, %114 : vector<128x64xf32>
    %116 = arith.mulf %115, %115 : vector<128x64xf32>
    %cst_46 = arith.constant dense<0.000000e+00> : vector<64xf32>
    %117 = vector.multi_reduction <add>, %116, %cst_46 [0] : vector<128x64xf32> to vector<64xf32>
    %118 = vector.shape_cast %117 : vector<64xf32> to vector<1x64xf32>
    %cst_47 = arith.constant 1.000000e-24 : f32
    %119 = vector.broadcast %cst_47 : f32 to vector<1x64xf32>
    %120 = arith.maximumf %118, %119 : vector<1x64xf32>
    %121 = math.rsqrt %120 : vector<1x64xf32>
    %122 = vector.broadcast %121 : vector<1x64xf32> to vector<128x64xf32>
    %123 = arith.mulf %115, %122 : vector<128x64xf32>
    %cst_48 = arith.constant dense<0.000000e+00> : vector<64x64xf32>
    %124 = tpu.matmul %96, %123, %cst_48 {dimension_numbers = #tpu.dot_dimension_numbers<[1], [0], [0], [1], [0, 0, 1, 1], [], []>} : vector<64x128xf32>, vector<128x64xf32>, vector<64x64xf32> -> vector<64x64xf32>
    %125 = tpu.concatenate %110, %124 in 1 : vector<64x64xf32>, vector<64x64xf32> -> vector<64x128xf32>
    %cst_49 = arith.constant dense<0xFF800000> : vector<64xf32>
    %126 = vector.multi_reduction <maximumf>, %125, %cst_49 [1] : vector<64x128xf32> to vector<64xf32>
    %127 = vector.shape_cast %126 : vector<64xf32> to vector<64x1xf32>
    %128 = vector.broadcast %127 : vector<64x1xf32> to vector<64x128xf32>
    %129 = arith.subf %125, %128 : vector<64x128xf32>
    %130 = math.exp %129 : vector<64x128xf32>
    %cst_50 = arith.constant dense<0.000000e+00> : vector<64xf32>
    %131 = vector.multi_reduction <add>, %130, %cst_50 [1] : vector<64x128xf32> to vector<64xf32>
    %132 = vector.shape_cast %131 : vector<64xf32> to vector<64x1xf32>
    %133 = vector.broadcast %132 : vector<64x1xf32> to vector<64x128xf32>
    %134 = arith.divf %130, %133 : vector<64x128xf32>
    %c0_51 = arith.constant 0 : index
    %c0_52 = arith.constant 0 : index
    %c0_53 = arith.constant 0 : index
    %c0_54 = arith.constant 0 : index
    %135 = vector.load %arg2[%c0_51, %c0_52, %c0_53, %c0_54] : memref<2x2x32x64xf32, #tpu.memory_space<vmem>>, vector<1x1x32x64xf32>
    %136 = vector.shape_cast %135 : vector<1x1x32x64xf32> to vector<32x64xf32>
    %137 = vector.extract_strided_slice %134 {offsets = [0, 0], sizes = [64, 64], strides = [1, 1]} : vector<64x128xf32> to vector<64x64xf32>
    %cst_55 = arith.constant dense<0.000000e+00> : vector<32x64xf32>
    %138 = tpu.matmul %136, %137, %cst_55 {dimension_numbers = #tpu.dot_dimension_numbers<[1], [1], [0], [0], [0, 0, 1, 0], [], []>} : vector<32x64xf32>, vector<64x64xf32>, vector<32x64xf32> -> vector<32x64xf32>
    %c1_56 = arith.constant 1 : index
    %c0_57 = arith.constant 0 : index
    %c0_58 = arith.constant 0 : index
    %c0_59 = arith.constant 0 : index
    %139 = vector.load %arg2[%c1_56, %c0_57, %c0_58, %c0_59] : memref<2x2x32x64xf32, #tpu.memory_space<vmem>>, vector<1x1x32x64xf32>
    %140 = vector.shape_cast %139 : vector<1x1x32x64xf32> to vector<32x64xf32>
    %141 = vector.extract_strided_slice %134 {offsets = [0, 64], sizes = [64, 64], strides = [1, 1]} : vector<64x128xf32> to vector<64x64xf32>
    %cst_60 = arith.constant dense<0.000000e+00> : vector<32x64xf32>
    %142 = tpu.matmul %140, %141, %cst_60 {dimension_numbers = #tpu.dot_dimension_numbers<[1], [1], [0], [0], [0, 0, 1, 0], [], []>} : vector<32x64xf32>, vector<64x64xf32>, vector<32x64xf32> -> vector<32x64xf32>
    %143 = arith.addf %138, %142 : vector<32x64xf32>
    %144 = vector.extract_strided_slice %95 {offsets = [64, 0], sizes = [64, 128], strides = [1, 1]} : vector<128x128xf32> to vector<64x128xf32>
    %c0_61 = arith.constant 0 : index
    %c1_62 = arith.constant 1 : index
    %c0_63 = arith.constant 0 : index
    %c0_64 = arith.constant 0 : index
    %145 = vector.load %arg1[%c0_61, %c1_62, %c0_63, %c0_64] : memref<2x2x32x64xf32, #tpu.memory_space<vmem>>, vector<1x1x32x64xf32>
    %146 = vector.shape_cast %145 : vector<1x1x32x64xf32> to vector<32x64xf32>
    %cst_65 = arith.constant dense<0.000000e+00> : vector<128x64xf32>
    %147 = tpu.matmul %80, %146, %cst_65 {dimension_numbers = #tpu.dot_dimension_numbers<[1], [0], [0], [1], [0, 0, 1, 1], [], []>} : vector<128x32xf32>, vector<32x64xf32>, vector<128x64xf32> -> vector<128x64xf32>
    %148 = vector.broadcast %81 : vector<128x1xf32> to vector<128x64xf32>
    %149 = arith.addf %147, %148 : vector<128x64xf32>
    %150 = arith.mulf %149, %149 : vector<128x64xf32>
    %cst_66 = arith.constant dense<0.000000e+00> : vector<64xf32>
    %151 = vector.multi_reduction <add>, %150, %cst_66 [0] : vector<128x64xf32> to vector<64xf32>
    %152 = vector.shape_cast %151 : vector<64xf32> to vector<1x64xf32>
    %cst_67 = arith.constant 1.000000e-24 : f32
    %153 = vector.broadcast %cst_67 : f32 to vector<1x64xf32>
    %154 = arith.maximumf %152, %153 : vector<1x64xf32>
    %155 = math.rsqrt %154 : vector<1x64xf32>
    %156 = vector.broadcast %155 : vector<1x64xf32> to vector<128x64xf32>
    %157 = arith.mulf %149, %156 : vector<128x64xf32>
    %cst_68 = arith.constant dense<0.000000e+00> : vector<64x64xf32>
    %158 = tpu.matmul %144, %157, %cst_68 {dimension_numbers = #tpu.dot_dimension_numbers<[1], [0], [0], [1], [0, 0, 1, 1], [], []>} : vector<64x128xf32>, vector<128x64xf32>, vector<64x64xf32> -> vector<64x64xf32>
    %c1_69 = arith.constant 1 : index
    %c1_70 = arith.constant 1 : index
    %c0_71 = arith.constant 0 : index
    %c0_72 = arith.constant 0 : index
    %159 = vector.load %arg1[%c1_69, %c1_70, %c0_71, %c0_72] : memref<2x2x32x64xf32, #tpu.memory_space<vmem>>, vector<1x1x32x64xf32>
    %160 = vector.shape_cast %159 : vector<1x1x32x64xf32> to vector<32x64xf32>
    %cst_73 = arith.constant dense<0.000000e+00> : vector<128x64xf32>
    %161 = tpu.matmul %80, %160, %cst_73 {dimension_numbers = #tpu.dot_dimension_numbers<[1], [0], [0], [1], [0, 0, 1, 1], [], []>} : vector<128x32xf32>, vector<32x64xf32>, vector<128x64xf32> -> vector<128x64xf32>
    %162 = vector.broadcast %81 : vector<128x1xf32> to vector<128x64xf32>
    %163 = arith.addf %161, %162 : vector<128x64xf32>
    %164 = arith.mulf %163, %163 : vector<128x64xf32>
    %cst_74 = arith.constant dense<0.000000e+00> : vector<64xf32>
    %165 = vector.multi_reduction <add>, %164, %cst_74 [0] : vector<128x64xf32> to vector<64xf32>
    %166 = vector.shape_cast %165 : vector<64xf32> to vector<1x64xf32>
    %cst_75 = arith.constant 1.000000e-24 : f32
    %167 = vector.broadcast %cst_75 : f32 to vector<1x64xf32>
    %168 = arith.maximumf %166, %167 : vector<1x64xf32>
    %169 = math.rsqrt %168 : vector<1x64xf32>
    %170 = vector.broadcast %169 : vector<1x64xf32> to vector<128x64xf32>
    %171 = arith.mulf %163, %170 : vector<128x64xf32>
    %cst_76 = arith.constant dense<0.000000e+00> : vector<64x64xf32>
    %172 = tpu.matmul %144, %171, %cst_76 {dimension_numbers = #tpu.dot_dimension_numbers<[1], [0], [0], [1], [0, 0, 1, 1], [], []>} : vector<64x128xf32>, vector<128x64xf32>, vector<64x64xf32> -> vector<64x64xf32>
    %173 = tpu.concatenate %158, %172 in 1 : vector<64x64xf32>, vector<64x64xf32> -> vector<64x128xf32>
    %cst_77 = arith.constant dense<0xFF800000> : vector<64xf32>
    %174 = vector.multi_reduction <maximumf>, %173, %cst_77 [1] : vector<64x128xf32> to vector<64xf32>
    %175 = vector.shape_cast %174 : vector<64xf32> to vector<64x1xf32>
    %176 = vector.broadcast %175 : vector<64x1xf32> to vector<64x128xf32>
    %177 = arith.subf %173, %176 : vector<64x128xf32>
    %178 = math.exp %177 : vector<64x128xf32>
    %cst_78 = arith.constant dense<0.000000e+00> : vector<64xf32>
    %179 = vector.multi_reduction <add>, %178, %cst_78 [1] : vector<64x128xf32> to vector<64xf32>
    %180 = vector.shape_cast %179 : vector<64xf32> to vector<64x1xf32>
    %181 = vector.broadcast %180 : vector<64x1xf32> to vector<64x128xf32>
    %182 = arith.divf %178, %181 : vector<64x128xf32>
    %c0_79 = arith.constant 0 : index
    %c1_80 = arith.constant 1 : index
    %c0_81 = arith.constant 0 : index
    %c0_82 = arith.constant 0 : index
    %183 = vector.load %arg2[%c0_79, %c1_80, %c0_81, %c0_82] : memref<2x2x32x64xf32, #tpu.memory_space<vmem>>, vector<1x1x32x64xf32>
    %184 = vector.shape_cast %183 : vector<1x1x32x64xf32> to vector<32x64xf32>
    %185 = vector.extract_strided_slice %182 {offsets = [0, 0], sizes = [64, 64], strides = [1, 1]} : vector<64x128xf32> to vector<64x64xf32>
    %cst_83 = arith.constant dense<0.000000e+00> : vector<32x64xf32>
    %186 = tpu.matmul %184, %185, %cst_83 {dimension_numbers = #tpu.dot_dimension_numbers<[1], [1], [0], [0], [0, 0, 1, 0], [], []>} : vector<32x64xf32>, vector<64x64xf32>, vector<32x64xf32> -> vector<32x64xf32>
    %c1_84 = arith.constant 1 : index
    %c1_85 = arith.constant 1 : index
    %c0_86 = arith.constant 0 : index
    %c0_87 = arith.constant 0 : index
    %187 = vector.load %arg2[%c1_84, %c1_85, %c0_86, %c0_87] : memref<2x2x32x64xf32, #tpu.memory_space<vmem>>, vector<1x1x32x64xf32>
    %188 = vector.shape_cast %187 : vector<1x1x32x64xf32> to vector<32x64xf32>
    %189 = vector.extract_strided_slice %182 {offsets = [0, 64], sizes = [64, 64], strides = [1, 1]} : vector<64x128xf32> to vector<64x64xf32>
    %cst_88 = arith.constant dense<0.000000e+00> : vector<32x64xf32>
    %190 = tpu.matmul %188, %189, %cst_88 {dimension_numbers = #tpu.dot_dimension_numbers<[1], [1], [0], [0], [0, 0, 1, 0], [], []>} : vector<32x64xf32>, vector<64x64xf32>, vector<32x64xf32> -> vector<32x64xf32>
    %191 = arith.addf %186, %190 : vector<32x64xf32>
    %192 = tpu.concatenate %143, %191 in 1 : vector<32x64xf32>, vector<32x64xf32> -> vector<32x128xf32>
    %c0_89 = arith.constant 0 : index
    %c0_90 = arith.constant 0 : index
    %193 = vector.load %arg7[%c0_89, %c0_90] : memref<32x128xf32, #tpu.memory_space<vmem>>, vector<32x128xf32>
    tpu.vector_store %arg7[%c0_89, %c0_90], %192 {strides = array<i32>} : memref<32x128xf32, #tpu.memory_space<vmem>>, vector<32x128xf32>,
    return
  }
}

</mosaic_0001>

<bundles_post_ra>
// kernel: transformer_decoder_forward.1
= control target key start
LH: loop header
LB: loop body
LE: loop exit
PB: predicated region body
PF: predicated region fallthrough
CT: control target
= control target key end

     0   :  { %v3555_v2 = vmov 0   ;;  %vm142_vm0 = vcmask 261120   ;;  %vm409_vm4 = vcmask 523264   ;;  %s5843_s0 = inlined_call_operand.vmem [shape: f32[32,128], index: 0, kind: input, shape index: {}]   ;;  %s5844_s4 = inlined_call_operand.vmem [shape: f32[128,1], index: 4, kind: input, shape index: {}]   ;;  %s5845_s3 = inlined_call_operand.vmem [shape: f32[128,32], index: 3, kind: input, shape index: {}]   ;;  %s5846_s1 = inlined_call_operand.vmem [shape: f32[2,2,32,64], index: 1, kind: input, shape index: {}]   ;;  %s5847_s5 = inlined_call_operand.vmem [shape: f32[128,32], index: 5, kind: input, shape index: {}]   ;;  %s5848_s6 = inlined_call_operand.vmem [shape: f32[128,1], index: 6, kind: input, shape index: {}]   ;;  %s5849_s2 = inlined_call_operand.vmem [shape: f32[2,2,32,64], index: 2, kind: input, shape index: {}]   ;;  %s5850_s7 = inlined_call_operand.vmem [shape: f32[32,128], index: 7, kind: output, shape index: {}]  }
   0x1   :  { %v3601_v0 = vld [vmem:[%s5843_s0 + $0x18] sm:$0xff]  ;;  %v3606_v1 = vld [vmem:[%s5843_s0 + $0x10] sm:$0xff]  ;;  %3334 = vset.pattern.permute.xlu0 %v3555_v2  ;;  %3335 = vset.pattern.permute.xlu1 %v3555_v2  ;;  %v27_v3 = vld [vmem:[%s5843_s0 + $0x8] sm:$0xff] }
   0x2   :  { %203 = vmatpush.msra.mxu0 %v3601_v0  ;;  %3336 = vset.pattern.permute.xlu2 %v3555_v2  ;;  %v46_v4 = vld [vmem:[%s5844_s4] sm:$0xff]  ;;  %v48_v5 = vld [vmem:[%s5844_s4 + $0x10] sm:$0xff]  ;;  %v47_v8 = vld [vmem:[%s5844_s4 + $0x8] sm:$0xff] }
   0x3   :  { %64 = vperm.xlu0 %3334, %v46_v4   ;;  %v3622_v6 = vld [vmem:[%s5843_s0] sm:$0xff]  ;;  %74 = vperm.xlu1 %3335, %v48_v5   ;;  %v49_v9 = vld [vmem:[%s5844_s4 + $0x18] sm:$0xff]  ;;  %v31_v10 = vld [vmem:[%s5845_s3 + $0x8] sm:$0xff] }
   0x4   :  { %204 = vmatpush.msra.mxu0 %v3606_v1  ;;  %v30_v7 = vld [vmem:[%s5845_s3] sm:$0xff]  ;;  %v32_v11 = vld [vmem:[%s5845_s3 + $0x10] sm:$0xff]  ;;  %v33_v12 = vld [vmem:[%s5845_s3 + $0x18] sm:$0xff] }
   0x5   :  { %v52_v13 = vld [vmem:[%s5844_s4 + $0x30] sm:$0xff]  ;;  %v34_v14 = vld [vmem:[%s5845_s3 + $0x20] sm:$0xff]  ;;  %v53_v16 = vld [vmem:[%s5844_s4 + $0x38] sm:$0xff] }
   0x6   :  { %205 = vmatpush.msra.mxu0 %v27_v3  ;;  %v50_v15 = vld [vmem:[%s5844_s4 + $0x20] sm:$0xff]  ;;  %v35_v17 = vld [vmem:[%s5845_s3 + $0x28] sm:$0xff]  ;;  %v36_v20 = vld [vmem:[%s5845_s3 + $0x30] sm:$0xff] }
   0x7   :  { %84 = vperm.xlu2 %3336, %v50_v15   ;;  %v51_v18 = vld [vmem:[%s5844_s4 + $0x28] sm:$0xff]  ;;  %v58_v21 = vld [vmem:[%s5844_s4 + $0x60] sm:$0xff]  ;;  %v56_v22 = vld [vmem:[%s5844_s4 + $0x50] sm:$0xff] }
   0x8   :  { %206 = vmatpush.msra.mxu0 %v3622_v6  ;;  %v55_v19 = vld [vmem:[%s5844_s4 + $0x48] sm:$0xff]  ;;  %v37_v23 = vld [vmem:[%s5845_s3 + $0x38] sm:$0xff]  ;;  %v38_v26 = vld [vmem:[%s5845_s3 + $0x40] sm:$0xff] }
   0x9   :  { %3131 = vmatmul.msk.f32.vlgmr.msra.gmra.mxu0 %vm142_vm0, %v30_v7  ;;  %v61_v24 = vld [vmem:[%s5844_s4 + $0x78] sm:$0xff]  ;;  %v59_v25 = vld [vmem:[%s5844_s4 + $0x68] sm:$0xff]  ;;  %v54_v27 = vld [vmem:[%s5844_s4 + $0x40] sm:$0xff] }
   0xa   :  { %v39_v28 = vld [vmem:[%s5845_s3 + $0x48] sm:$0xff]  ;;  %v40_v29 = vld [vmem:[%s5845_s3 + $0x50] sm:$0xff]  ;;  %v57_v30 = vld [vmem:[%s5844_s4 + $0x58] sm:$0xff] }
   0xb   :  { %69 = vperm.xlu0 %3334, %v47_v8   ;;  %79 = vperm.xlu1 %3335, %v49_v9   ;;  %v41_v31 = vld [vmem:[%s5845_s3 + $0x58] sm:$0xff]  ;;  %v60_v32 = vld [vmem:[%s5844_s4 + $0x70] sm:$0xff]  ;;  %v42_v33 = vld [vmem:[%s5845_s3 + $0x60] sm:$0xff] }
   0xc   :  { %v43_v34 = vld [vmem:[%s5845_s3 + $0x68] sm:$0xff]  ;;  %v44_v35 = vld [vmem:[%s5845_s3 + $0x70] sm:$0xff]  ;;  %v45_v36 = vld [vmem:[%s5845_s3 + $0x78] sm:$0xff]  ;;  %s3556_s3 = smov 64  }
   0xf   :  { %89 = vperm.xlu2 %3336, %v51_v18  }
  0x11   :  { %3132 = vmatmul.msk.f32.gmra.mxu0 %vm142_vm0, %v31_v10 }
  0x13   :  { %94 = vperm.xlu0 %3334, %v52_v13   ;;  %99 = vperm.xlu1 %3335, %v53_v16  }
  0x17   :  { %104 = vperm.xlu2 %3336, %v54_v27  }
  0x19   :  { %3133 = vmatmul.msk.f32.gmra.mxu0 %vm142_vm0, %v32_v11 }
  0x1b   :  { %109 = vperm.xlu0 %3334, %v55_v19   ;;  %114 = vperm.xlu1 %3335, %v56_v22  }
  0x1f   :  { %119 = vperm.xlu2 %3336, %v57_v30  }
  0x21   :  { %3134 = vmatmul.msk.f32.gmra.mxu0 %vm142_vm0, %v33_v12 }
  0x23   :  { %124 = vperm.xlu0 %3334, %v58_v21   ;;  %129 = vperm.xlu1 %3335, %v59_v25  }
  0x27   :  { %134 = vperm.xlu2 %3336, %v60_v32  }
  0x29   :  { %3135 = vmatmul.msk.f32.gmra.mxu0 %vm142_vm0, %v34_v14 }
  0x2b   :  { %139 = vperm.xlu0 %3334, %v61_v24  }
  0x31   :  { %3136 = vmatmul.msk.f32.gmra.mxu0 %vm142_vm0, %v35_v17 }
  0x39   :  { %3137 = vmatmul.msk.f32.gmra.mxu0 %vm142_vm0, %v36_v20 }
  0x41   :  { %3138 = vmatmul.msk.f32.gmra.mxu0 %vm142_vm0, %v37_v23 }
  0x49   :  { %3139 = vmatmul.msk.f32.gmra.mxu0 %vm142_vm0, %v38_v26 }
  0x51   :  { %3140 = vmatmul.msk.f32.gmra.mxu0 %vm142_vm0, %v39_v28 }
  0x59   :  { %3141 = vmatmul.msk.f32.gmra.mxu0 %vm142_vm0, %v40_v29 }
  0x61   :  { %3142 = vmatmul.msk.f32.gmra.mxu0 %vm142_vm0, %v41_v31  ;;  %v85_v49 = vpop.permute.xlu2 %84 }
  0x69   :  { %3143 = vmatmul.msk.f32.gmra.mxu0 %vm142_vm0, %v42_v33  ;;  %v90_v53 = vpop.permute.xlu2 %89 }
  0x71   :  { %3144 = vmatmul.msk.f32.gmra.mxu0 %vm142_vm0, %v43_v34  ;;  %v105_v3 = vpop.permute.xlu2 %104 }
  0x75   :  { %v65_v47 = vpop.permute.xlu0 %64  ;;  %v75_v48 = vpop.permute.xlu1 %74 }
  0x79   :  { %3145 = vmatmul.msk.f32.gmra.mxu0 %vm142_vm0, %v44_v35  ;;  %v120_v20 = vpop.permute.xlu2 %119 }
  0x7d   :  { %v70_v51 = vpop.permute.xlu0 %69  ;;  %v80_v52 = vpop.permute.xlu1 %79 }
  0x81   :  { %3146 = vmatmul.msk.f32.gmra.mxu0 %vm142_vm0, %v45_v36 }
  0x85   :  { %v95_v58 = vpop.permute.xlu0 %94  ;;  %v100_v61 = vpop.permute.xlu1 %99 }
  0x86   :  { %v208_v37 = vpop.f32.mrf.mxu0 }
  0x87   :  { %v3733_v56 = vadd.f32 %v208_v37, %v65_v47 }
  0x89   :  { %v256_v62 = vmul.f32 %v3733_v56, %v3733_v56 }
  0x8d   :  { %v110_v12 = vpop.permute.xlu0 %109  ;;  %v115_v16 = vpop.permute.xlu1 %114 }
  0x8e   :  { %v211_v38 = vpop.f32.mrf.mxu0 }
  0x8f   :  { %v3731_v55 = vadd.f32 %v211_v38, %v70_v51 }
  0x91   :  { %v257_v59 = vmul.f32 %v3731_v55, %v3731_v55 }
  0x93   :  { %v272_v5 = vadd.f32 %v257_v59, %v256_v62 }
  0x95   :  { %v125_v31 = vpop.permute.xlu0 %124  ;;  %v130_v35 = vpop.permute.xlu1 %129 }
  0x96   :  { %v214_v39 = vpop.f32.mrf.mxu0 }
  0x97   :  { %v3735_v57 = vadd.f32 %v214_v39, %v75_v48 }
  0x99   :  { %v258_v63 = vmul.f32 %v3735_v57, %v3735_v57 }
  0x9b   :  { %v273_v9 = vadd.f32 %v272_v5, %v258_v63 }
  0x9d   :  { %v140_v48 = vpop.permute.xlu0 %139 }
  0x9e   :  { %v217_v40 = vpop.f32.mrf.mxu0 }
  0x9f   :  { %v3739_v60 = vadd.f32 %v217_v40, %v80_v52  ;;  %v135_v40 = vpop.permute.xlu2 %134 }
  0xa1   :  { %v259_v7 = vmul.f32 %v3739_v60, %v3739_v60 }
  0xa3   :  { %v274_v13 = vadd.f32 %v273_v9, %v259_v7 }
  0xa6   :  { %v220_v41 = vpop.f32.mrf.mxu0 }
  0xa7   :  { %v3745_v2 = vadd.f32 %v220_v41, %v85_v49 }
  0xa9   :  { %v260_v10 = vmul.f32 %v3745_v2, %v3745_v2 }
  0xab   :  { %v275_v17 = vadd.f32 %v274_v13, %v260_v10 }
  0xae   :  { %v223_v42 = vpop.f32.mrf.mxu0 }
  0xaf   :  { %v3749_v8 = vadd.f32 %v223_v42, %v90_v53 }
  0xb1   :  { %v261_v14 = vmul.f32 %v3749_v8, %v3749_v8 }
  0xb3   :  { %v276_v22 = vadd.f32 %v275_v17, %v261_v14 }
  0xb6   :  { %v226_v43 = vpop.f32.mrf.mxu0 }
  0xb7   :  { %v3753_v11 = vadd.f32 %v226_v43, %v95_v58 }
  0xb9   :  { %v262_v18 = vmul.f32 %v3753_v11, %v3753_v11 }
  0xbb   :  { %v277_v25 = vadd.f32 %v276_v22, %v262_v18 }
  0xbe   :  { %v229_v44 = vpop.f32.mrf.mxu0 }
  0xbf   :  { %v3757_v15 = vadd.f32 %v229_v44, %v100_v61 }
  0xc1   :  { %v263_v23 = vmul.f32 %v3757_v15, %v3757_v15 }
  0xc3   :  { %v278_v28 = vadd.f32 %v277_v25, %v263_v23 }
  0xc6   :  { %v232_v45 = vpop.f32.mrf.mxu0 }
  0xc7   :  { %v3761_v19 = vadd.f32 %v232_v45, %v105_v3 }
  0xc9   :  { %v264_v26 = vmul.f32 %v3761_v19, %v3761_v19 }
  0xcb   :  { %v279_v32 = vadd.f32 %v278_v28, %v264_v26 }
  0xce   :  { %v235_v46 = vpop.f32.mrf.mxu0 }
  0xcf   :  { %v3765_v24 = vadd.f32 %v235_v46, %v110_v12 }
  0xd1   :  { %v265_v29 = vmul.f32 %v3765_v24, %v3765_v24 }
  0xd3   :  { %v280_v37 = vadd.f32 %v279_v32, %v265_v29 }
  0xd6   :  { %v238_v50 = vpop.f32.mrf.mxu0 }
  0xd7   :  { %v239_v27 = vadd.f32 %v238_v50, %v115_v16 }
  0xd9   :  { %v266_v33 = vmul.f32 %v239_v27, %v239_v27 }
  0xdb   :  { %v281_v41 = vadd.f32 %v280_v37, %v266_v33 }
  0xde   :  { %v241_v54 = vpop.f32.mrf.mxu0 }
  0xdf   :  { %v242_v30 = vadd.f32 %v241_v54, %v120_v20 }
  0xe1   :  { %v267_v38 = vmul.f32 %v242_v30, %v242_v30 }
  0xe3   :  { %v282_v44 = vadd.f32 %v281_v41, %v267_v38 }
  0xe6   :  { %v244_v4 = vpop.f32.mrf.mxu0 }
  0xe7   :  { %v245_v34 = vadd.f32 %v244_v4, %v125_v31 }
  0xe9   :  { %v268_v42 = vmul.f32 %v245_v34, %v245_v34 }
  0xeb   :  { %v283_v46 = vadd.f32 %v282_v44, %v268_v42 }
  0xee   :  { %v247_v21 = vpop.f32.mrf.mxu0 }
  0xef   :  { %v248_v39 = vadd.f32 %v247_v21, %v130_v35 }
  0xf1   :  { %v269_v45 = vmul.f32 %v248_v39, %v248_v39 }
  0xf3   :  { %v284_v50 = vadd.f32 %v283_v46, %v269_v45 }
  0xf6   :  { %v250_v36 = vpop.f32.mrf.mxu0 }
  0xf7   :  { %v251_v43 = vadd.f32 %v250_v36, %v135_v40 }
  0xf9   :  { %v270_v47 = vmul.f32 %v251_v43, %v251_v43 }
  0xfb   :  { %v285_v52 = vadd.f32 %v284_v50, %v270_v47 }
  0xfe   :  { %v253_v49 = vpop.f32.mrf.mxu0 }
  0xff   :  { %v254_v51 = vadd.f32 %v253_v49, %v140_v48 }
 0x101   :  { %v271_v53 = vmul.f32 %v254_v51, %v254_v51 }
 0x103   :  { %v286_v54 = vadd.f32 %v285_v52, %v271_v53 }
 0x105   :  { %v287_v58 = vrot.slane %v286_v54, 4 }
 0x107   :  { %v288_v59 = vadd.f32 %v287_v58, %v286_v54 }
 0x109   :  { %v289_v61 = vrot.slane %v288_v59, 2 }
 0x10b   :  { %v290_v62 = vadd.f32 %v289_v61, %v288_v59 }
 0x10d   :  { %v291_v63 = vrot.slane %v290_v62, 1 }
 0x10f   :  { %v292_v3 = vadd.f32 %v291_v63, %v290_v62 }
 0x111   :  { %v293_v4 = vmax.f32 %v292_v3, 1e-24 }
 0x113   :  { %3377 = vrsqrt.f32 %v293_v4  ;;  %vm300_vm2 = vweird.f32 %v293_v4 }
 0x119   :  { %v3378_v5 = vpop.eup %3377 }
 0x11a   :  { %v295_v7 = vmul.f32 %v3378_v5, %v293_v4  ;;  %vm301_vm1 = vweird.f32 %v3378_v5 }
 0x11b   :  { %vm302_vm3 = vmor %vm300_vm2, %vm301_vm1 }
 0x11c   :  { %v296_v9 = vmul.f32 %v3378_v5, %v295_v7 }
 0x11e   :  { %v297_v10 = vmul.f32 0.5, %v296_v9 }
 0x120   :  { %v298_v12 = vsub.f32 1.5, %v297_v10 }
 0x122   :  { %v299_v13 = vmul.f32 %v3378_v5, %v298_v12 }
 0x124   :  { %v303_v14 = vsel %vm302_vm3, %v3378_v5, %v299_v13 }
 0x125   :  { %v3771_v16 = vmul.f32 %v303_v14, %v254_v51  ;;  %v3773_v17 = vmul.f32 %v303_v14, %v251_v43  ;;  %v3775_v18 = vmul.f32 %v303_v14, %v245_v34  ;;  %v3777_v20 = vmul.f32 %v303_v14, %v248_v39 }
 0x126   :  { %v3779_v21 = vmul.f32 %v303_v14, %v239_v27  ;;  %v3781_v22 = vmul.f32 %v303_v14, %v242_v30  ;;  %v312_v27 = vmul.f32 %v303_v14, %v3761_v19  ;;  %v313_v28 = vmul.f32 %v303_v14, %v3765_v24 }
 0x127   :  { %368 = vmatpush.msra.mxu1 %v3771_v16  ;;  %v3337_v23 = vpack.i.bf16 %v3773_v17, %v3771_v16  ;;  %v3342_v25 = vpack.i.bf16 %v3775_v18, %v3777_v20  ;;  %v310_v29 = vmul.f32 %v303_v14, %v3753_v11  ;;  %v311_v30 = vmul.f32 %v303_v14, %v3757_v15 }
 0x128   :  { %v3347_v26 = vpack.i.bf16 %v3779_v21, %v3781_v22  ;;  %v308_v31 = vmul.f32 %v303_v14, %v3745_v2  ;;  %v309_v32 = vmul.f32 %v303_v14, %v3749_v8  ;;  %v3352_v33 = vpack.i.bf16 %v312_v27, %v313_v28 }
 0x129   :  { %3338 = vrot.lane.b32.xlu1 %v3337_v23, %s3556_s3  ;;  %369 = vmatpush.msra.mxu1 %v3773_v17  ;;  %v3357_v34 = vpack.i.bf16 %v310_v29, %v311_v30  ;;  %v306_v2 = vmul.f32 %v303_v14, %v3735_v57  ;;  %v307_v8 = vmul.f32 %v303_v14, %v3739_v60 }
 0x12a   :  { %3343 = vrot.lane.b32.xlu2 %v3342_v25, %s3556_s3  ;;  %3348 = vrot.lane.b32.xlu0 %v3347_v26, %s3556_s3  ;;  %v3362_v35 = vpack.i.bf16 %v308_v31, %v309_v32  ;;  %v304_v11 = vmul.f32 %v303_v14, %v3733_v56  ;;  %v305_v15 = vmul.f32 %v303_v14, %v3731_v55 }
 0x12b   :  { %370 = vmatpush.msra.mxu1 %v3777_v20  ;;  %v3367_v19 = vpack.i.bf16 %v306_v2, %v307_v8 }
 0x12c   :  { %v3372_v24 = vpack.i.bf16 %v304_v11, %v305_v15 }
 0x12d   :  { %371 = vmatpush.msra.mxu1 %v3775_v18 }
 0x12f   :  { %372 = vmatpush.msra.mxu1 %v3781_v22 }
 0x131   :  { %373 = vmatpush.msra.mxu1 %v3779_v21  ;;  %3353 = vrot.lane.b32.xlu1 %v3352_v33, %s3556_s3 }
 0x132   :  { %3358 = vrot.lane.b32.xlu2 %v3357_v34, %s3556_s3  ;;  %3363 = vrot.lane.b32.xlu0 %v3362_v35, %s3556_s3 }
 0x133   :  { %374 = vmatpush.msra.mxu1 %v313_v28 }
 0x135   :  { %375 = vmatpush.msra.mxu1 %v312_v27 }
 0x137   :  { %376 = vmatpush.msra.mxu1 %v311_v30 }
 0x139   :  { %377 = vmatpush.msra.mxu1 %v310_v29  ;;  %3368 = vrot.lane.b32.xlu1 %v3367_v19, %s3556_s3 }
 0x13a   :  { %3373 = vrot.lane.b32.xlu0 %v3372_v24, %s3556_s3 }
 0x13b   :  { %378 = vmatpush.msra.mxu1 %v309_v32 }
 0x13d   :  { %379 = vmatpush.msra.mxu1 %v308_v31 }
 0x13f   :  { %380 = vmatpush.msra.mxu1 %v307_v8 }
 0x141   :  { %381 = vmatpush.msra.mxu1 %v306_v2 }
 0x143   :  { %382 = vmatpush.msra.mxu1 %v305_v15 }
 0x145   :  { %383 = vmatpush.msra.mxu1 %v304_v11 }
 0x158   :  { %320 = vxpose.xlu2.b32.start [1/16] %v304_v11, 128 }
 0x160   :  { %321 = vxpose.xlu2.b32.cont [2/16] %v305_v15, 128 }
 0x168   :  { %322 = vxpose.xlu2.b32.cont [3/16] %v306_v2, 128 }
 0x170   :  { %323 = vxpose.xlu2.b32.cont [4/16] %v307_v8, 128 }
 0x178   :  { %324 = vxpose.xlu2.b32.cont [5/16] %v308_v31, 128 }
 0x180   :  { %325 = vxpose.xlu2.b32.cont [6/16] %v309_v32, 128 }
 0x184   :  { %v3344_v57 = vpop.permute.xlu2 %3343 }
 0x185   :  { %v3345_v36 = vunpack.i.l.bf16 %v3344_v57  ;;  %v3346_v38 = vunpack.i.h.bf16 %v3344_v57 }
 0x188   :  { %326 = vxpose.xlu2.b32.cont [7/16] %v310_v29, 128 }
 0x18c   :  { %v3359_v43 = vpop.permute.xlu2 %3358 }
 0x18d   :  { %v3360_v46 = vunpack.i.l.bf16 %v3359_v43  ;;  %v3361_v47 = vunpack.i.h.bf16 %v3359_v43 }
 0x190   :  { %327 = vxpose.xlu2.b32.cont [8/16] %v311_v30, 128 }
 0x198   :  { %328 = vxpose.xlu2.b32.cont [9/16] %v312_v27, 128 }
 0x19b   :  { %v3339_v55 = vpop.permute.xlu1 %3338 }
 0x19c   :  { %v3340_v56 = vunpack.i.l.bf16 %v3339_v55  ;;  %v3341_v60 = vunpack.i.h.bf16 %v3339_v55  ;;  %v3349_v37 = vpop.permute.xlu0 %3348 }
 0x19d   :  { %v3350_v39 = vunpack.i.l.bf16 %v3349_v37  ;;  %v3351_v41 = vunpack.i.h.bf16 %v3349_v37 }
 0x19e   :  { %830 = vmatpush.msra.mxu3 %v3340_v56 }
 0x1a0   :  { %329 = vxpose.xlu2.b32.cont [10/16] %v313_v28, 128  ;;  %831 = vmatpush.msra.mxu3 %v3341_v60 }
 0x1a2   :  { %832 = vmatpush.msra.mxu3 %v3345_v36 }
 0x1a3   :  { %v3354_v40 = vpop.permute.xlu1 %3353 }
 0x1a4   :  { %833 = vmatpush.msra.mxu3 %v3346_v38  ;;  %v3355_v42 = vunpack.i.l.bf16 %v3354_v40  ;;  %v3356_v44 = vunpack.i.h.bf16 %v3354_v40  ;;  %v3364_v45 = vpop.permute.xlu0 %3363 }
 0x1a5   :  { %v3365_v48 = vunpack.i.l.bf16 %v3364_v45  ;;  %v3366_v50 = vunpack.i.h.bf16 %v3364_v45 }
 0x1a6   :  { %834 = vmatpush.msra.mxu3 %v3350_v39 }
 0x1a8   :  { %330 = vxpose.xlu2.b32.cont [11/16] %v3779_v21, 128  ;;  %835 = vmatpush.msra.mxu3 %v3351_v41 }
 0x1aa   :  { %836 = vmatpush.msra.mxu3 %v3355_v42 }
 0x1ab   :  { %v3369_v49 = vpop.permute.xlu1 %3368 }
 0x1ac   :  { %837 = vmatpush.msra.mxu3 %v3356_v44  ;;  %v3370_v51 = vunpack.i.l.bf16 %v3369_v49  ;;  %v3374_v52 = vpop.permute.xlu0 %3373  ;;  %v3371_v53 = vunpack.i.h.bf16 %v3369_v49 }
 0x1ad   :  { %v3375_v54 = vunpack.i.l.bf16 %v3374_v52  ;;  %v3376_v58 = vunpack.i.h.bf16 %v3374_v52 }
 0x1ae   :  { %838 = vmatpush.msra.mxu3 %v3360_v46 }
 0x1b0   :  { %331 = vxpose.xlu2.b32.cont [12/16] %v3781_v22, 128  ;;  %839 = vmatpush.msra.mxu3 %v3361_v47 }
 0x1b2   :  { %840 = vmatpush.msra.mxu3 %v3365_v48 }
 0x1b4   :  { %841 = vmatpush.msra.mxu3 %v3366_v50 }
 0x1b6   :  { %842 = vmatpush.msra.mxu3 %v3370_v51 }
 0x1b8   :  { %332 = vxpose.xlu2.b32.cont [13/16] %v3775_v18, 128  ;;  %843 = vmatpush.msra.mxu3 %v3371_v53 }
 0x1ba   :  { %844 = vmatpush.msra.mxu3 %v3375_v54 }
 0x1bc   :  { %845 = vmatpush.msra.mxu3 %v3376_v58 }
 0x1c0   :  { %333 = vxpose.xlu2.b32.cont [14/16] %v3777_v20, 128 }
 0x1c8   :  { %334 = vxpose.xlu2.b32.cont [15/16] %v3773_v17, 128 }
 0x1d0   :  { %335 = vxpose.xlu2.b32.end [16/16] %v3771_v16, 128 }
 0x1f1   :  { %v336_v59 = vpop.trf.xlu2 }
 0x1f2   :  { %v352_v61 = vmul.f32 30.0, %v336_v59 }
 0x1f4   :  { %384 = vmatmul.f32.vlgmr.msra.gmra.mxu1 %v352_v61 }
 0x1f9   :  { %v337_v62 = vpop.trf.xlu2 }
 0x1fa   :  { %v353_v63 = vmul.f32 30.0, %v337_v62 }
 0x1fc   :  { %387 = vmatmul.f32.gmra.mxu1 %v353_v63 }
 0x201   :  { %v338_v3 = vpop.trf.xlu2 }
 0x202   :  { %v354_v4 = vmul.f32 30.0, %v338_v3 }
 0x204   :  { %390 = vmatmul.f32.gmra.mxu1 %v354_v4 }
 0x209   :  { %v339_v5 = vpop.trf.xlu2 }
 0x20a   :  { %v355_v7 = vmul.f32 30.0, %v339_v5 }
 0x20c   :  { %393 = vmatmul.f32.gmra.mxu1 %v355_v7 }
 0x211   :  { %v340_v9 = vpop.trf.xlu2 }
 0x212   :  { %v356_v10 = vmul.f32 30.0, %v340_v9 }
 0x214   :  { %396 = vmatmul.f32.gmra.mxu1 %v356_v10 }
 0x219   :  { %v341_v12 = vpop.trf.xlu2 }
 0x21a   :  { %v357_v13 = vmul.f32 30.0, %v341_v12 }
 0x21c   :  { %399 = vmatmul.f32.gmra.mxu1 %v357_v13 }
 0x221   :  { %v342_v14 = vpop.trf.xlu2 }
 0x222   :  { %v358_v16 = vmul.f32 30.0, %v342_v14 }
 0x224   :  { %402 = vmatmul.f32.gmra.mxu1 %v358_v16 }
 0x229   :  { %v343_v17 = vpop.trf.xlu2 }
 0x22a   :  { %v359_v18 = vmul.f32 30.0, %v343_v17 }
 0x22c   :  { %405 = vmatmul.f32.gmra.mxu1 %v359_v18 }
 0x231   :  { %v344_v20 = vpop.trf.xlu2 }
 0x232   :  { %v360_v21 = vmul.f32 30.0, %v344_v20 }
 0x234   :  { %846 = vmatmul.f32.vlgmr.msra.gmra.mxu3 %v360_v21 }
 0x239   :  { %v345_v22 = vpop.trf.xlu2 }
 0x23a   :  { %v361_v23 = vmul.f32 30.0, %v345_v22 }
 0x23c   :  { %849 = vmatmul.f32.gmra.mxu3 %v361_v23 }
 0x241   :  { %v346_v25 = vpop.trf.xlu2 }
 0x242   :  { %v362_v26 = vmul.f32 30.0, %v346_v25 }
 0x244   :  { %852 = vmatmul.f32.gmra.mxu3 %v362_v26 }
 0x249   :  { %v347_v27 = vpop.trf.xlu2 }
 0x24a   :  { %v363_v28 = vmul.f32 30.0, %v347_v27 }
 0x24c   :  { %855 = vmatmul.f32.gmra.mxu3 %v363_v28 }
 0x251   :  { %v348_v29 = vpop.trf.xlu2 }
 0x252   :  { %v364_v30 = vmul.f32 30.0, %v348_v29 }
 0x254   :  { %858 = vmatmul.f32.gmra.mxu3 %v364_v30 }
 0x259   :  { %v349_v31 = vpop.trf.xlu2 }
 0x25a   :  { %v365_v32 = vmul.f32 30.0, %v349_v31 }
 0x25c   :  { %861 = vmatmul.f32.gmra.mxu3 %v365_v32 }
 0x261   :  { %v350_v33 = vpop.trf.xlu2 }
 0x262   :  { %v366_v34 = vmul.f32 30.0, %v350_v33 }
 0x264   :  { %864 = vmatmul.f32.gmra.mxu3 %v366_v34 }
 0x269   :  { %v351_v35 = vpop.trf.xlu2 }
 0x26a   :  { %v367_v2 = vmul.f32 30.0, %v351_v35 }
 0x26c   :  { %867 = vmatmul.f32.gmra.mxu3 %v367_v2 }
 0x271   :  { %v3819_v8 = vpop.f32.mrf.mxu1 }
 0x272   :  { %v410_v40 = vsel %vm409_vm4, %v3819_v8, -inf }
 0x279   :  { %v3821_v11 = vpop.f32.mrf.mxu1 }
 0x27a   :  { %v413_v42 = vsel %vm409_vm4, %v3821_v11, -inf }
 0x281   :  { %v3823_v15 = vpop.f32.mrf.mxu1 }
 0x282   :  { %v416_v19 = vsel %vm409_vm4, %v3823_v15, -inf }
 0x283   :  { %417 = vmax.xlane.f32.xlu0 %v416_v19 }
 0x289   :  { %v394_v24 = vpop.f32.mrf.mxu1 }
 0x28a   :  { %v419_v55 = vsel %vm409_vm4, %v394_v24, -inf }
 0x28b   :  { %420 = vmax.xlane.f32.xlu1 %v419_v55 }
 0x291   :  { %v3828_v56 = vpop.f32.mrf.mxu1 }
 0x292   :  { %v422_v57 = vsel %vm409_vm4, %v3828_v56, -inf }
 0x293   :  { %423 = vmax.xlane.f32.xlu0 %v422_v57 }
 0x299   :  { %v400_v60 = vpop.f32.mrf.mxu1 }
 0x29a   :  { %v425_v36 = vsel %vm409_vm4, %v400_v60, -inf }
 0x29b   :  { %426 = vmax.xlane.f32.xlu1 %v425_v36 }
 0x2a1   :  { %v403_v37 = vpop.f32.mrf.mxu1 }
 0x2a2   :  { %v428_v38 = vsel %vm409_vm4, %v403_v37, -inf }
 0x2a3   :  { %429 = vmax.xlane.f32.xlu0 %v428_v38 }
 0x2a9   :  { %v406_v39 = vpop.f32.mrf.mxu1 }
 0x2aa   :  { %v431_v41 = vsel %vm409_vm4, %v406_v39, -inf }
 0x2ab   :  { %411 = vmax.xlane.f32.xlu0 %v410_v40  ;;  %432 = vmax.xlane.f32.xlu1 %v431_v41 }
 0x2b3   :  { %414 = vmax.xlane.f32.xlu1 %v413_v42 }
 0x2b7   :  { %v3839_v43 = vpop.f32.mrf.mxu3 }
 0x2b8   :  { %v871_v5 = vsel %vm409_vm4, %v3839_v43, -inf }
 0x2bf   :  { %v3841_v44 = vpop.f32.mrf.mxu3 }
 0x2c0   :  { %v874_v63 = vsel %vm409_vm4, %v3841_v44, -inf }
 0x2c7   :  { %v3843_v45 = vpop.f32.mrf.mxu3 }
 0x2c8   :  { %v877_v59 = vsel %vm409_vm4, %v3843_v45, -inf }
 0x2cf   :  { %v3845_v46 = vpop.f32.mrf.mxu3 }
 0x2d0   :  { %v880_v47 = vsel %vm409_vm4, %v3845_v46, -inf }
 0x2d1   :  { %881 = vmax.xlane.f32.xlu1 %v880_v47 }
 0x2d7   :  { %v3849_v48 = vpop.f32.mrf.mxu3 }
 0x2d8   :  { %v883_v49 = vsel %vm409_vm4, %v3849_v48, -inf }
 0x2d9   :  { %884 = vmax.xlane.f32.xlu0 %v883_v49 }
 0x2df   :  { %v3853_v50 = vpop.f32.mrf.mxu3 }
 0x2e0   :  { %v886_v51 = vsel %vm409_vm4, %v3853_v50, -inf }
 0x2e1   :  { %887 = vmax.xlane.f32.xlu1 %v886_v51 }
 0x2e7   :  { %v3857_v52 = vpop.f32.mrf.mxu3 }
 0x2e8   :  { %v889_v53 = vsel %vm409_vm4, %v3857_v52, -inf }
 0x2e9   :  { %890 = vmax.xlane.f32.xlu0 %v889_v53 }
 0x2ef   :  { %v3861_v54 = vpop.f32.mrf.mxu3 }
 0x2f0   :  { %v892_v58 = vsel %vm409_vm4, %v3861_v54, -inf }
 0x2f1   :  { %893 = vmax.xlane.f32.xlu1 %v892_v58 }
 0x2f6   :  { %v418_v4 = vpop.xlane.xlu0 %417 }
 0x2f7   :  { %v436_v34 = vsub.f32 %v3823_v15, %v418_v4 }
 0x2f9   :  { %878 = vmax.xlane.f32.xlu1 %v877_v59  ;;  %v446_v2 = vmul.f32 1.442695, %v436_v34 }
 0x2fe   :  { %v421_v61 = vpop.xlane.xlu1 %420 }
 0x2ff   :  { %v437_v62 = vsub.f32 %v394_v24, %v421_v61 }
 0x301   :  { %875 = vmax.xlane.f32.xlu1 %v874_v63  ;;  %v448_v3 = vmul.f32 1.442695, %v437_v62 }
 0x303   :  { %3379 = vpow2.f32 %v448_v3 }
 0x306   :  { %v424_v9 = vpop.xlane.xlu0 %423 }
 0x307   :  { %v438_v27 = vsub.f32 %v3828_v56, %v424_v9 }
 0x309   :  { %872 = vmax.xlane.f32.xlu1 %v871_v5  ;;  %v3871_v7 = vpop.eup %3379  ;;  %v450_v29 = vmul.f32 1.442695, %v438_v27 }
 0x30a   :  { %v467_v13 = vsel %vm409_vm4, %v3871_v7, 0.0 }
 0x30e   :  { %v427_v10 = vpop.xlane.xlu1 %426 }
 0x30f   :  { %v439_v12 = vsub.f32 %v400_v60, %v427_v10 }
 0x311   :  { %v452_v14 = vmul.f32 1.442695, %v439_v12  ;;  %468 = vadd.xlane.f32.xlu1 %v467_v13 }
 0x313   :  { %3381 = vpow2.f32 %v452_v14 }
 0x316   :  { %v430_v16 = vpop.xlane.xlu0 %429 }
 0x317   :  { %v440_v17 = vsub.f32 %v403_v37, %v430_v16 }
 0x319   :  { %v3875_v18 = vpop.eup %3381  ;;  %v454_v20 = vmul.f32 1.442695, %v440_v17 }
 0x31a   :  { %v473_v21 = vsel %vm409_vm4, %v3875_v18, 0.0 }
 0x31b   :  { %3383 = vpow2.f32 %v454_v20  ;;  %474 = vadd.xlane.f32.xlu0 %v473_v21 }
 0x31e   :  { %v433_v22 = vpop.xlane.xlu1 %432  ;;  %v412_v19 = vpop.xlane.xlu0 %411 }
 0x31f   :  { %v441_v23 = vsub.f32 %v406_v39, %v433_v22 }
 0x321   :  { %v3879_v25 = vpop.eup %3383  ;;  %v456_v26 = vmul.f32 1.442695, %v441_v23 }
 0x322   :  { %v476_v28 = vsel %vm409_vm4, %v3879_v25, 0.0 }
 0x323   :  { %477 = vadd.xlane.f32.xlu0 %v476_v28  ;;  %3385 = vpow2.f32 %v456_v26 }
 0x324   :  { %3387 = vpow2.f32 %v450_v29 }
 0x326   :  { %v415_v30 = vpop.xlane.xlu1 %414 }
 0x327   :  { %v435_v31 = vsub.f32 %v3821_v11, %v415_v30  ;;  %v434_v11 = vsub.f32 %v3819_v8, %v412_v19 }
 0x329   :  { %v444_v32 = vmul.f32 1.442695, %v435_v31  ;;  %v3885_v33 = vpop.eup %3385  ;;  %v442_v57 = vmul.f32 1.442695, %v434_v11 }
 0x32a   :  { %v479_v35 = vsel %vm409_vm4, %v3885_v33, 0.0  ;;  %v3890_v24 = vpop.eup %3387 }
 0x32b   :  { %3389 = vpow2.f32 %v444_v32  ;;  %480 = vadd.xlane.f32.xlu0 %v479_v35  ;;  %v470_v15 = vsel %vm409_vm4, %v3890_v24, 0.0 }
 0x32c   :  { %3391 = vpow2.f32 %v446_v2 }
 0x32d   :  { %3393 = vpow2.f32 %v442_v57 }
 0x331   :  { %v3892_v55 = vpop.eup %3389 }
 0x332   :  { %v461_v56 = vsel %vm409_vm4, %v3892_v55, 0.0  ;;  %v3899_v60 = vpop.eup %3391 }
 0x333   :  { %462 = vadd.xlane.f32.xlu1 %v461_v56  ;;  %471 = vadd.xlane.f32.xlu0 %v470_v15  ;;  %v464_v36 = vsel %vm409_vm4, %v3899_v60, 0.0  ;;  %v3903_v37 = vpop.eup %3393 }
 0x334   :  { %v458_v8 = vsel %vm409_vm4, %v3903_v37, 0.0 }
 0x33b   :  { %465 = vadd.xlane.f32.xlu0 %v464_v36 }
 0x343   :  { %459 = vadd.xlane.f32.xlu0 %v458_v8 }
 0x344   :  { %v882_v38 = vpop.xlane.xlu1 %881 }
 0x34c   :  { %v885_v39 = vpop.xlane.xlu0 %884 }
 0x34d   :  { %v899_v47 = vsub.f32 %v3849_v48, %v885_v39 }
 0x34f   :  { %v911_v51 = vmul.f32 1.442695, %v899_v47 }
 0x354   :  { %v888_v40 = vpop.xlane.xlu1 %887 }
 0x355   :  { %v900_v61 = vsub.f32 %v3853_v50, %v888_v40 }
 0x35c   :  { %v891_v41 = vpop.xlane.xlu0 %890 }
 0x35d   :  { %v901_v42 = vsub.f32 %v3857_v52, %v891_v41  ;;  %v913_v52 = vmul.f32 1.442695, %v900_v61 }
 0x35f   :  { %v915_v49 = vmul.f32 1.442695, %v901_v42  ;;  %v3977_v42 = vld [vmem:[%s5843_s0 + $0x8] sm:$0xff] }
 0x361   :  { %3395 = vpow2.f32 %v915_v49 }
 0x362   :  { %3397 = vpow2.f32 %v911_v51 }
 0x364   :  { %v894_v53 = vpop.xlane.xlu1 %893 }
 0x365   :  { %v902_v58 = vsub.f32 %v3861_v54, %v894_v53  ;;  %v898_v54 = vsub.f32 %v3845_v46, %v882_v38 }
 0x367   :  { %v3910_v59 = vpop.eup %3395  ;;  %v917_v62 = vmul.f32 1.442695, %v902_v58  ;;  %v909_v12 = vmul.f32 1.442695, %v898_v54 }
 0x368   :  { %v937_v63 = vsel %vm409_vm4, %v3910_v59, 0.0  ;;  %v3915_v48 = vpop.eup %3397 }
 0x369   :  { %3399 = vpow2.f32 %v917_v62  ;;  %938 = vadd.xlane.f32.xlu0 %v937_v63  ;;  %v931_v50 = vsel %vm409_vm4, %v3915_v48, 0.0 }
 0x36a   :  { %3401 = vpow2.f32 %v913_v52 }
 0x36c   :  { %v879_v3 = vpop.xlane.xlu1 %878 }
 0x36d   :  { %v897_v4 = vsub.f32 %v3843_v45, %v879_v3 }
 0x36f   :  { %v3918_v5 = vpop.eup %3399  ;;  %v907_v9 = vmul.f32 1.442695, %v897_v4 }
 0x370   :  { %v940_v10 = vsel %vm409_vm4, %v3918_v5, 0.0  ;;  %v3925_v14 = vpop.eup %3401 }
 0x371   :  { %3403 = vpow2.f32 %v907_v9  ;;  %932 = vadd.xlane.f32.xlu0 %v931_v50  ;;  %941 = vadd.xlane.f32.xlu1 %v940_v10  ;;  %v934_v17 = vsel %vm409_vm4, %v3925_v14, 0.0 }
 0x372   :  { %3405 = vpow2.f32 %v909_v12 }
 0x374   :  { %v876_v13 = vpop.xlane.xlu1 %875 }
 0x375   :  { %v896_v45 = vsub.f32 %v3841_v44, %v876_v13 }
 0x377   :  { %v3928_v16 = vpop.eup %3403  ;;  %v905_v46 = vmul.f32 1.442695, %v896_v45 }
 0x378   :  { %v925_v20 = vsel %vm409_vm4, %v3928_v16, 0.0  ;;  %v3934_v22 = vpop.eup %3405 }
 0x379   :  { %3407 = vpow2.f32 %v905_v46  ;;  %935 = vadd.xlane.f32.xlu1 %v934_v17  ;;  %926 = vadd.xlane.f32.xlu2 %v925_v20  ;;  %v928_v27 = vsel %vm409_vm4, %v3934_v22, 0.0 }
 0x37c   :  { %v873_v21 = vpop.xlane.xlu1 %872 }
 0x37d   :  { %v895_v23 = vsub.f32 %v3839_v43, %v873_v21 }
 0x37f   :  { %v3937_v26 = vpop.eup %3407  ;;  %v903_v44 = vmul.f32 1.442695, %v895_v23 }
 0x380   :  { %v922_v28 = vsel %vm409_vm4, %v3937_v26, 0.0 }
 0x381   :  { %3409 = vpow2.f32 %v903_v44  ;;  %929 = vadd.xlane.f32.xlu1 %v928_v27  ;;  %923 = vadd.xlane.f32.xlu0 %v922_v28 }
 0x384   :  { %v3952_v32 = vpop.xlane.xlu1 %468 }
 0x387   :  { %v3943_v29 = vpop.eup %3409 }
 0x388   :  { %v919_v30 = vsel %vm409_vm4, %v3943_v29, 0.0 }
 0x389   :  { %920 = vadd.xlane.f32.xlu1 %v919_v30 }
 0x38e   :  { %v3947_v31 = vpop.xlane.xlu0 %474 }
 0x38f   :  { %v566_v54 = vand.u32 2147483647, %v3947_v31  ;;  %v568_v17 = vand.u32 2147483648, %v3947_v31  ;;  %vm562_vm14 = vweird.f32 %v3947_v31 }
 0x391   :  { %vm567_vm2 = vcmp.eq.f32.partialorder %v566_v54, 8.507059e+37 }
 0x395   :  { %1067 = vrot.lane.b32.xlu0 %v3606_v1, %s3556_s3 }
 0x396   :  { %v478_v43 = vpop.xlane.xlu0 %477 }
 0x397   :  { %3411 = vrcp.f32 %v478_v43  ;;  %vm577_vm7 = vweird.f32 %v478_v43  ;;  %v583_v53 = vand.u32 2147483648, %v478_v43  ;;  %v581_v63 = vand.u32 2147483647, %v478_v43 }
 0x398   :  { %3413 = vrcp.f32 %v3947_v31 }
 0x399   :  { %3415 = vrcp.f32 %v3952_v32  ;;  %v584_v46 = vor.u32 1.1754944e-38, %v583_v53  ;;  %vm582_vm13 = vcmp.eq.f32.partialorder %v581_v63, 8.507059e+37 }
 0x39d   :  { %v3412_v34 = vpop.eup %3411  ;;  %1063 = vrot.lane.b32.xlu0 %v3622_v6, %s3556_s3 }
 0x39e   :  { %v3956_v35 = vpop.eup %3413  ;;  %v573_v2 = vmul.f32 %v3412_v34, %v478_v43  ;;  %v481_v19 = vpop.xlane.xlu0 %480  ;;  %vm578_vm5 = vweird.f32 %v3412_v34 }
 0x39f   :  { %3417 = vrcp.f32 %v481_v19  ;;  %v558_v1 = vmul.f32 %v3956_v35, %v3947_v31  ;;  %v3963_v56 = vpop.eup %3415  ;;  %v596_v49 = vand.u32 2147483647, %v481_v19  ;;  %vm592_vm8 = vweird.f32 %v481_v19  ;;  %vm3981_vm9 = vmor %vm577_vm7, %vm578_vm5 }
 0x3a0   :  { %v574_v11 = vsub.f32 1.0, %v573_v2  ;;  %v528_v39 = vmul.f32 %v3963_v56, %v3952_v32  ;;  %vm563_vm11 = vweird.f32 %v3956_v35  ;;  %vm532_vm7 = vweird.f32 %v3952_v32 }
 0x3a1   :  { %v559_v57 = vsub.f32 1.0, %v558_v1  ;;  %vm597_vm12 = vcmp.eq.f32.partialorder %v596_v49, 8.507059e+37  ;;  %vm564_vm15 = vmor %vm562_vm14, %vm563_vm11 }
 0x3a2   :  { %1069 = vrot.lane.b32.xlu1 %v3601_v0, %s3556_s3  ;;  %v575_v38 = vmul.f32 %v3412_v34, %v574_v11  ;;  %v598_v0 = vand.u32 2147483648, %v481_v19  ;;  %v529_v58 = vsub.f32 1.0, %v528_v39  ;;  %v536_v39 = vand.u32 2147483647, %v3952_v32 }
 0x3a3   :  { %v560_v41 = vmul.f32 %v3956_v35, %v559_v57 }
 0x3a4   :  { %v576_v51 = vadd.f32 %v3412_v34, %v575_v38  ;;  %v599_v3 = vor.u32 1.1754944e-38, %v598_v0  ;;  %v530_v23 = vmul.f32 %v3963_v56, %v529_v58  ;;  %vm537_vm11 = vcmp.eq.f32.partialorder %v536_v39, 8.507059e+37 }
 0x3a5   :  { %v3418_v15 = vpop.eup %3417  ;;  %v561_v4 = vadd.f32 %v3956_v35, %v560_v41 }
 0x3a6   :  { %v588_v36 = vmul.f32 %v3418_v15, %v481_v19  ;;  %v3965_v6 = vpop.xlane.xlu0 %471  ;;  %v3967_v8 = vpop.xlane.xlu1 %462  ;;  %vm593_vm6 = vweird.f32 %v3418_v15  ;;  %v580_v12 = vsel %vm3981_vm9, %v3412_v34, %v576_v51 }
 0x3a7   :  { %3419 = vrcp.f32 %v3965_v6  ;;  %vm594_vm10 = vmor %vm592_vm8, %vm593_vm6  ;;  %v585_v44 = vsel %vm582_vm13, %v584_v46, %v580_v12  ;;  %v565_v28 = vsel %vm564_vm15, %v3956_v35, %v561_v4  ;;  %v553_v43 = vand.u32 2147483648, %v3965_v6 }
 0x3a8   :  { %v589_v40 = vsub.f32 1.0, %v588_v36  ;;  %3421 = vrcp.f32 %v3967_v8  ;;  %v586_v31 = vmul.f32 %v3879_v25, %v585_v44  ;;  %vm547_vm3 = vweird.f32 %v3965_v6 }
 0x3a9   :  { %v551_v2 = vand.u32 2147483647, %v3965_v6  ;;  %vm533_vm6 = vweird.f32 %v3963_v56  ;;  %v531_v36 = vadd.f32 %v3963_v56, %v530_v23  ;;  %v554_v38 = vor.u32 1.1754944e-38, %v553_v43 }
 0x3aa   :  { %1065 = vrot.lane.b32.xlu1 %v3977_v42, %s3556_s3  ;;  %v590_v47 = vmul.f32 %v3418_v15, %v589_v40  ;;  %vm534_vm9 = vmor %vm532_vm7, %vm533_vm6  ;;  %v508_v4 = vand.u32 2147483648, %v3967_v8  ;;  %vm502_vm15 = vweird.f32 %v3967_v8 }
 0x3ab   :  { %vm552_vm8 = vcmp.eq.f32.partialorder %v551_v2, 8.507059e+37  ;;  %v535_v49 = vsel %vm534_vm9, %v3963_v56, %v531_v36  ;;  %v4070_v2 = vld [vmem:[%s5843_s0 + $0x18] sm:$0xff] }
 0x3ac   :  { %v591_v61 = vadd.f32 %v3418_v15, %v590_v47  ;;  %v509_v46 = vor.u32 1.1754944e-38, %v508_v4 }
 0x3ad   :  { %v3420_v52 = vpop.eup %3419 }
 0x3ae   :  { %v543_v9 = vmul.f32 %v3420_v52, %v3965_v6  ;;  %v3989_v50 = vpop.xlane.xlu0 %465  ;;  %v595_v10 = vsel %vm594_vm10, %v3418_v15, %v591_v61  ;;  %v3993_v13 = vpop.eup %3421  ;;  %vm548_vm1 = vweird.f32 %v3420_v52  ;;  %v538_v6 = vand.u32 2147483648, %v3952_v32 }
 0x3af   :  { %3423 = vrcp.f32 %v3989_v50  ;;  %v600_v45 = vsel %vm597_vm12, %v599_v3, %v595_v10  ;;  %v498_v27 = vmul.f32 %v3993_v13, %v3967_v8  ;;  %vm4010_vm5 = vmor %vm547_vm3, %vm548_vm1  ;;  %v523_v32 = vand.u32 2147483648, %v3989_v50 }
 0x3b0   :  { %v544_v20 = vsub.f32 1.0, %v543_v9  ;;  %v601_v21 = vmul.f32 %v3885_v33, %v600_v45  ;;  %v569_v33 = vor.u32 1.1754944e-38, %v568_v17  ;;  %v539_v53 = vor.u32 1.1754944e-38, %v538_v6 }
 0x3b1   :  { %v499_v35 = vsub.f32 1.0, %v498_v27  ;;  %vm517_vm12 = vweird.f32 %v3989_v50  ;;  %v521_v61 = vand.u32 2147483647, %v3989_v50  ;;  %vm503_vm14 = vweird.f32 %v3993_v13 }
 0x3b2   :  { %3147 = vmatpush.xpose.msk.msra.mxu2 %vm409_vm4, %v601_v21  ;;  %v545_v30 = vmul.f32 %v3420_v52, %v544_v20  ;;  %v570_v1 = vsel %vm567_vm2, %v569_v33, %v565_v28  ;;  %v540_v63 = vsel %vm537_vm11, %v539_v53, %v535_v49  ;;  %v524_v54 = vor.u32 1.1754944e-38, %v523_v32  ;;  %vm504_vm2 = vmor %vm502_vm15, %vm503_vm14 }
 0x3b3   :  { %v571_v0 = vmul.f32 %v3875_v18, %v570_v1  ;;  %v500_v47 = vmul.f32 %v3993_v13, %v499_v35  ;;  %vm522_vm1 = vcmp.eq.f32.partialorder %v521_v61, 8.507059e+37 }
 0x3b4   :  { %v546_v34 = vadd.f32 %v3420_v52, %v545_v30  ;;  %v4060_v30 = vld [vmem:[%s5843_s0 + $0x10] sm:$0xff] }
 0x3b5   :  { %v3424_v19 = vpop.eup %3423  ;;  %v501_v3 = vadd.f32 %v3993_v13, %v500_v47 }
 0x3b6   :  { %v513_v15 = vmul.f32 %v3424_v19, %v3989_v50  ;;  %3148 = vmatpush.xpose.msk.msra.mxu2 %vm409_vm4, %v586_v31  ;;  %v460_v57 = vpop.xlane.xlu0 %459  ;;  %v550_v25 = vsel %vm4010_vm5, %v3420_v52, %v546_v34  ;;  %vm518_vm10 = vweird.f32 %v3424_v19  ;;  %v541_v50 = vmul.f32 %v3871_v7, %v540_v63 }
 0x3b7   :  { %3425 = vrcp.f32 %v460_v57  ;;  %v555_v41 = vsel %vm552_vm8, %v554_v38, %v550_v25  ;;  %vm519_vm13 = vmor %vm517_vm12, %vm518_vm10  ;;  %v505_v12 = vsel %vm504_vm2, %v3993_v13, %v501_v3  ;;  %v493_v17 = vand.u32 2147483648, %v460_v57 }
 0x3b8   :  { %v514_v40 = vsub.f32 1.0, %v513_v15  ;;  %v556_v58 = vmul.f32 %v3890_v24, %v555_v41  ;;  %v506_v24 = vand.u32 2147483647, %v3967_v8  ;;  %vm487_vm6 = vweird.f32 %v460_v57 }
 0x3b9   :  { %v491_v8 = vand.u32 2147483647, %v460_v57  ;;  %v494_v44 = vor.u32 1.1754944e-38, %v493_v17 }
 0x3ba   :  { %3149 = vmatpush.xpose.msk.msra.mxu2 %vm409_vm4, %v571_v0  ;;  %v515_v51 = vmul.f32 %v3424_v19, %v514_v40  ;;  %vm507_vm5 = vcmp.eq.f32.partialorder %v506_v24, 8.507059e+37 }
 0x3bb   :  { %v510_v23 = vsel %vm507_vm5, %v509_v46, %v505_v12  ;;  %vm492_vm8 = vcmp.eq.f32.partialorder %v491_v8, 8.507059e+37 }
 0x3bc   :  { %v516_v18 = vadd.f32 %v3424_v19, %v515_v51  ;;  %v511_v27 = vmul.f32 %v3892_v55, %v510_v23 }
 0x3bd   :  { %v3426_v62 = vpop.eup %3425 }
 0x3be   :  { %v483_v52 = vmul.f32 %v3426_v62, %v460_v57  ;;  %3150 = vmatpush.xpose.msk.msra.mxu2 %vm409_vm4, %v556_v58  ;;  %v520_v56 = vsel %vm519_vm13, %v3424_v19, %v516_v18  ;;  %vm488_vm3 = vweird.f32 %v3426_v62 }
 0x3bf   :  { %v525_v10 = vsel %vm522_vm1, %v524_v54, %v520_v56  ;;  %vm489_vm7 = vmor %vm487_vm6, %vm488_vm3 }
 0x3c0   :  { %v484_v9 = vsub.f32 1.0, %v483_v52  ;;  %v526_v20 = vmul.f32 %v3899_v60, %v525_v10  ;;  %v4051_v60 = vld [vmem:[%s5843_s0] sm:$0xff] }
 0x3c2   :  { %3151 = vmatpush.xpose.msk.msra.mxu2 %vm409_vm4, %v541_v50  ;;  %v485_v45 = vmul.f32 %v3426_v62, %v484_v9 }
 0x3c4   :  { %v486_v21 = vadd.f32 %v3426_v62, %v485_v45 }
 0x3c6   :  { %3152 = vmatpush.xpose.msk.msra.mxu2 %vm409_vm4, %v526_v20  ;;  %v490_v7 = vsel %vm489_vm7, %v3426_v62, %v486_v21 }
 0x3c7   :  { %v495_v13 = vsel %vm492_vm8, %v494_v44, %v490_v7 }
 0x3c8   :  { %v496_v28 = vmul.f32 %v3903_v37, %v495_v13 }
 0x3ca   :  { %3153 = vmatpush.xpose.msk.msra.mxu2 %vm409_vm4, %v511_v27 }
 0x3ce   :  { %3154 = vmatpush.xpose.msk.msra.mxu2 %vm409_vm4, %v496_v28 }
 0x3d1   :  { %3155 = vmatmul.msk.f32.vlgmr.msra.gmra.mxu2 %vm409_vm4, %v4051_v60 }
 0x3d9   :  { %3156 = vmatmul.msk.f32.gmra.mxu2 %vm409_vm4, %v3977_v42 }
 0x3dc   :  { %v939_v55 = vpop.xlane.xlu0 %938 }
 0x3dd   :  { %3427 = vrcp.f32 %v939_v55  ;;  %vm1038_vm11 = vweird.f32 %v939_v55  ;;  %v1044_v49 = vand.u32 2147483648, %v939_v55  ;;  %v1042_v61 = vand.u32 2147483647, %v939_v55 }
 0x3df   :  { %v1045_v24 = vor.u32 1.1754944e-38, %v1044_v49  ;;  %vm1043_vm1 = vcmp.eq.f32.partialorder %v1042_v61, 8.507059e+37 }
 0x3e1   :  { %3157 = vmatmul.msk.f32.gmra.mxu2 %vm409_vm4, %v4060_v30 }
 0x3e3   :  { %v3428_v37 = vpop.eup %3427 }
 0x3e4   :  { %v4064_v33 = vpop.xlane.xlu0 %932  ;;  %v942_v43 = vpop.xlane.xlu1 %941  ;;  %v1034_v31 = vmul.f32 %v3428_v37, %v939_v55  ;;  %vm1039_vm9 = vweird.f32 %v3428_v37 }
 0x3e5   :  { %3429 = vrcp.f32 %v4064_v33  ;;  %v1059_v6 = vand.u32 2147483648, %v942_v43  ;;  %v1057_v40 = vand.u32 2147483647, %v942_v43  ;;  %vm1053_vm12 = vweird.f32 %v942_v43  ;;  %vm4090_vm13 = vmor %vm1038_vm11, %vm1039_vm9 }
 0x3e6   :  { %3431 = vrcp.f32 %v942_v43  ;;  %v1035_v34 = vsub.f32 1.0, %v1034_v31  ;;  %v1014_v20 = vand.u32 2147483648, %v4064_v33  ;;  %vm1008_vm5 = vweird.f32 %v4064_v33 }
 0x3e7   :  { %v1060_v53 = vor.u32 1.1754944e-38, %v1059_v6  ;;  %vm1058_vm15 = vcmp.eq.f32.partialorder %v1057_v40, 8.507059e+37  ;;  %v1012_v8 = vand.u32 2147483647, %v4064_v33 }
 0x3e8   :  { %v1036_v25 = vmul.f32 %v3428_v37, %v1035_v34  ;;  %v1015_v31 = vor.u32 1.1754944e-38, %v1014_v20 }
 0x3e9   :  { %3158 = vmatmul.msk.f32.gmra.mxu2 %vm409_vm4, %v4070_v2 }
 0x3ea   :  { %v1037_v0 = vadd.f32 %v3428_v37, %v1036_v25 }
 0x3eb   :  { %v4074_v19 = vpop.eup %3429 }
 0x3ec   :  { %v3432_v1 = vpop.eup %3431  ;;  %v4076_v11 = vpop.xlane.xlu2 %926  ;;  %v1004_v15 = vmul.f32 %v4074_v19, %v4064_v33  ;;  %v1041_v3 = vsel %vm4090_vm13, %v3428_v37, %v1037_v0  ;;  %vm1009_vm2 = vweird.f32 %v4074_v19 }
 0x3ed   :  { %v4078_v35 = vpop.xlane.xlu1 %935  ;;  %v1049_v57 = vmul.f32 %v3432_v1, %v942_v43  ;;  %3433 = vrcp.f32 %v4076_v11  ;;  %vm1054_vm10 = vweird.f32 %v3432_v1  ;;  %v1046_v45 = vsel %vm1043_vm1, %v1045_v24, %v1041_v3  ;;  %vm4123_vm7 = vmor %vm1008_vm5, %vm1009_vm2 }
 0x3ee   :  { %3435 = vrcp.f32 %v4078_v35  ;;  %v1005_v38 = vsub.f32 1.0, %v1004_v15  ;;  %vm1055_vm14 = vmor %vm1053_vm12, %vm1054_vm10  ;;  %v1029_v9 = vand.u32 2147483648, %v4078_v35  ;;  %v1027_v17 = vand.u32 2147483647, %v4078_v35 }
 0x3ef   :  { %v1050_v36 = vsub.f32 1.0, %v1049_v57  ;;  %vm1023_vm6 = vweird.f32 %v4078_v35  ;;  %v1047_v27 = vmul.f32 %v3910_v59, %v1046_v45  ;;  %vm1013_vm10 = vcmp.eq.f32.partialorder %v1012_v8, 8.507059e+37 }
 0x3f0   :  { %v1006_v52 = vmul.f32 %v4074_v19, %v1005_v38  ;;  %v1030_v7 = vor.u32 1.1754944e-38, %v1029_v9  ;;  %vm1028_vm9 = vcmp.eq.f32.partialorder %v1027_v17, 8.507059e+37  ;;  %vm978_vm13 = vweird.f32 %v4076_v11 }
 0x3f1   :  { %v1051_v39 = vmul.f32 %v3432_v1, %v1050_v36 }
 0x3f2   :  { %v1007_v46 = vadd.f32 %v4074_v19, %v1006_v52 }
 0x3f3   :  { %v4084_v41 = vpop.eup %3433  ;;  %v1052_v47 = vadd.f32 %v3432_v1, %v1051_v39 }
 0x3f4   :  { %v3436_v51 = vpop.eup %3435  ;;  %v4086_v32 = vpop.xlane.xlu0 %923  ;;  %v974_v62 = vmul.f32 %v4084_v41, %v4076_v11  ;;  %v1011_v59 = vsel %vm4123_vm7, %v4074_v19, %v1007_v46  ;;  %vm979_vm11 = vweird.f32 %v4084_v41 }
 0x3f5   :  { %v4088_v58 = vpop.xlane.xlu1 %929  ;;  %v1019_v63 = vmul.f32 %v3436_v51, %v4078_v35  ;;  %3437 = vrcp.f32 %v4086_v32  ;;  %v1056_v56 = vsel %vm1055_vm14, %v3432_v1, %v1052_v47  ;;  %vm1024_vm3 = vweird.f32 %v3436_v51 }
 0x3f6   :  { %3439 = vrcp.f32 %v4088_v58  ;;  %v1061_v54 = vsel %vm1058_vm15, %v1060_v53, %v1056_v56  ;;  %v975_v10 = vsub.f32 1.0, %v974_v62  ;;  %vm1025_vm8 = vmor %vm1023_vm6, %vm1024_vm3  ;;  %v999_v35 = vand.u32 2147483648, %v4088_v58 }
 0x3f7   :  { %v1020_v4 = vsub.f32 1.0, %v1019_v63  ;;  %v1062_v50 = vmul.f32 %v3918_v5, %v1061_v54  ;;  %v1016_v57 = vsel %vm1013_vm10, %v1015_v31, %v1011_v59  ;;  %v997_v19 = vand.u32 2147483647, %v4088_v58  ;;  %vm4147_vm15 = vmor %vm978_vm13, %vm979_vm11 }
 0x3f8   :  { %v976_v55 = vmul.f32 %v4084_v41, %v975_v10  ;;  %vm993_vm14 = vweird.f32 %v4088_v58  ;;  %v1000_v0 = vor.u32 1.1754944e-38, %v999_v35  ;;  %v1017_v49 = vmul.f32 %v3915_v48, %v1016_v57 }
 0x3f9   :  { %v1021_v12 = vmul.f32 %v3436_v51, %v1020_v4  ;;  %3159 = vmatpush.xpose.msk.msrb.mxu1 %vm409_vm4, %v1062_v50  ;;  %3323 = vmatpush.xpose.msk.msrb.mxu2 %vm409_vm4, %v1062_v50  ;;  %vm998_vm2 = vcmp.eq.f32.partialorder %v997_v19, 8.507059e+37  ;;  %vm963_vm6 = vweird.f32 %v4086_v32 }
 0x3fa   :  { %v977_v36 = vadd.f32 %v4084_v41, %v976_v55 }
 0x3fb   :  { %v4111_v21 = vpop.eup %3437  ;;  %v1022_v5 = vadd.f32 %v3436_v51, %v1021_v12 }
 0x3fc   :  { %v3440_v23 = vpop.eup %3439  ;;  %v959_v44 = vmul.f32 %v4111_v21, %v4086_v32  ;;  %vm964_vm3 = vweird.f32 %v4111_v21 }
 0x3fd   :  { %v4119_v13 = vpop.xlane.xlu1 %920  ;;  %v989_v37 = vmul.f32 %v3440_v23, %v4088_v58  ;;  %3160 = vmatpush.xpose.msk.msrb.mxu1 %vm409_vm4, %v1047_v27  ;;  %3324 = vmatpush.xpose.msk.msrb.mxu2 %vm409_vm4, %v1047_v27  ;;  %v1026_v43 = vsel %vm1025_vm8, %v3436_v51, %v1022_v5  ;;  %vm994_vm12 = vweird.f32 %v3440_v23  ;;  %v982_v51 = vand.u32 2147483647, %v4076_v11  ;;  %vm965_vm7 = vmor %vm963_vm6, %vm964_vm3 }
 0x3fe   :  { %3441 = vrcp.f32 %v4119_v13  ;;  %v960_v33 = vsub.f32 1.0, %v959_v44  ;;  %v1031_v1 = vsel %vm1028_vm9, %v1030_v7, %v1026_v43  ;;  %vm995_vm1 = vmor %vm993_vm14, %vm994_vm12  ;;  %v981_v58 = vsel %vm4147_vm15, %v4084_v41, %v977_v36 }
 0x3ff   :  { %v990_v34 = vsub.f32 1.0, %v989_v37  ;;  %v1032_v15 = vmul.f32 %v3925_v14, %v1031_v1  ;;  %v984_v14 = vand.u32 2147483648, %v4076_v11  ;;  %v969_v11 = vand.u32 2147483648, %v4086_v32 }
 0x400   :  { %v961_v6 = vmul.f32 %v4111_v21, %v960_v33  ;;  %vm983_vm5 = vcmp.eq.f32.partialorder %v982_v51, 8.507059e+37  ;;  %v967_v41 = vand.u32 2147483647, %v4086_v32  ;;  %vm948_vm9 = vweird.f32 %v4119_v13 }
 0x401   :  { %v991_v25 = vmul.f32 %v3440_v23, %v990_v34  ;;  %3161 = vmatpush.xpose.msk.msrb.mxu1 %vm409_vm4, %v1032_v15  ;;  %3325 = vmatpush.xpose.msk.msrb.mxu2 %vm409_vm4, %v1032_v15  ;;  %v985_v48 = vor.u32 1.1754944e-38, %v984_v14  ;;  %v970_v54 = vor.u32 1.1754944e-38, %v969_v11  ;;  %v952_v32 = vand.u32 2147483647, %v4119_v13  ;;  %v3204_v11 = vld [vmem:[%s5846_s1 + $0x48] sm:$0xff] }
 0x402   :  { %v962_v62 = vadd.f32 %v4111_v21, %v961_v6  ;;  %vm968_vm10 = vcmp.eq.f32.partialorder %v967_v41, 8.507059e+37 }
 0x403   :  { %v992_v39 = vadd.f32 %v3440_v23, %v991_v25  ;;  %v986_v56 = vsel %vm983_vm5, %v985_v48, %v981_v58  ;;  %vm953_vm12 = vcmp.eq.f32.partialorder %v952_v32, 8.507059e+37  ;;  %v1614_v48 = vld [vmem:[%s5846_s1 + $0x8] sm:$0xff] }
 0x404   :  { %v3442_v38 = vpop.eup %3441  ;;  %v966_v3 = vsel %vm965_vm7, %v4111_v21, %v962_v62  ;;  %v987_v24 = vmul.f32 %v3928_v16, %v986_v56  ;;  %v3206_v62 = vld [vmem:[%s5846_s1 + $0x58] sm:$0xff] }
 0x405   :  { %v944_v47 = vmul.f32 %v3442_v38, %v4119_v13  ;;  %v996_v53 = vsel %vm995_vm1, %v3440_v23, %v992_v39  ;;  %3162 = vmatpush.xpose.msk.msrb.mxu1 %vm409_vm4, %v1017_v49  ;;  %3326 = vmatpush.xpose.msk.msrb.mxu2 %vm409_vm4, %v1017_v49  ;;  %vm949_vm8 = vweird.f32 %v3442_v38  ;;  %v971_v9 = vsel %vm968_vm10, %v970_v54, %v966_v3  ;;  %v4261_v3 = vld [vmem:[%s5847_s5] sm:$0xff] }
 0x406   :  { %v1001_v61 = vsel %vm998_vm2, %v1000_v0, %v996_v53  ;;  %vm950_vm11 = vmor %vm948_vm9, %vm949_vm8  ;;  %v972_v45 = vmul.f32 %v3937_v26, %v971_v9  ;;  %1820 = vmatpush.msrb.mxu0 %v3206_v62  ;;  %v4280_v9 = vld [vmem:[%s5847_s5 + $0x8] sm:$0xff] }
 0x407   :  { %v945_v18 = vsub.f32 1.0, %v944_v47  ;;  %v1002_v63 = vmul.f32 %v3934_v22, %v1001_v61  ;;  %v954_v22 = vand.u32 2147483648, %v4119_v13  ;;  %v1068_v10 = vpop.permute.xlu0 %1067  ;;  %v3557_v47 = vmov 64.0  }
 0x408   :  { %3443 = vrcp.f32 %v3557_v47 }
 0x409   :  { %v946_v52 = vmul.f32 %v3442_v38, %v945_v18  ;;  %3163 = vmatpush.xpose.msk.msrb.mxu1 %vm409_vm4, %v1002_v63  ;;  %3327 = vmatpush.xpose.msk.msrb.mxu2 %vm409_vm4, %v1002_v63  ;;  %v955_v12 = vor.u32 1.1754944e-38, %v954_v22  ;;  %v3205_v63 = vld [vmem:[%s5846_s1 + $0x50] sm:$0xff] }
 0x40a   :  { %1821 = vmatpush.msrb.mxu0 %v3205_v63  ;;  %v1294_v63 = vld [vmem:[%s5848_s6 + $0x10] sm:$0xff] }
 0x40b   :  { %v947_v4 = vadd.f32 %v3442_v38, %v946_v52  ;;  %v1613_v52 = vld [vmem:[%s5846_s1] sm:$0xff] }
 0x40c   :  { %1822 = vmatpush.msrb.mxu0 %v3204_v11  ;;  %v1293_v11 = vld [vmem:[%s5848_s6 + $0x8] sm:$0xff] }
 0x40d   :  { %3164 = vmatpush.xpose.msk.msrb.mxu1 %vm409_vm4, %v987_v24  ;;  %3328 = vmatpush.xpose.msk.msrb.mxu2 %vm409_vm4, %v987_v24  ;;  %v951_v50 = vsel %vm950_vm11, %v3442_v38, %v947_v4  ;;  %v3203_v4 = vld [vmem:[%s5846_s1 + $0x40] sm:$0xff] }
 0x40e   :  { %v956_v46 = vsel %vm953_vm12, %v955_v12, %v951_v50  ;;  %v3444_v49 = vpop.eup %3443  ;;  %1823 = vmatpush.msrb.mxu0 %v3203_v4 }
 0x40f   :  { %v957_v16 = vmul.f32 %v3943_v29, %v956_v46  ;;  %v1064_v20 = vpop.permute.xlu0 %1063  ;;  %v684_v51 = vmul.f32 64.0, %v3444_v49  ;;  %vm688_vm13 = vweird.f32 %v3444_v49  ;;  %3207 = vmatmul.msk.f32.vlgmr.msrb.gmra.mxu0 %vm142_vm0, %v4261_v3 }
 0x411   :  { %3165 = vmatpush.xpose.msk.msrb.mxu1 %vm409_vm4, %v972_v45  ;;  %3329 = vmatpush.xpose.msk.msrb.mxu2 %vm409_vm4, %v972_v45  ;;  %v685_v53 = vsub.f32 1.0, %v684_v51 }
 0x413   :  { %v686_v58 = vmul.f32 %v3444_v49, %v685_v53 }
 0x414   :  { %v1070_v17 = vpop.permute.xlu1 %1069 }
 0x415   :  { %3166 = vmatpush.xpose.msk.msrb.mxu1 %vm409_vm4, %v957_v16  ;;  %3330 = vmatpush.xpose.msk.msrb.mxu2 %vm409_vm4, %v957_v16  ;;  %v687_v61 = vadd.f32 %v3444_v49, %v686_v58 }
 0x417   :  { %v4256_v41 = vsel %vm688_vm13, %v3444_v49, %v687_v61  ;;  %3208 = vmatmul.msk.f32.gmra.mxu0 %vm142_vm0, %v4280_v9  ;;  %v4442_v49 = vld [vmem:[%s5847_s5 + $0x70] sm:$0xff] }
 0x418   :  { %3169 = vmatmul.msk.f32.vlgmr.msrb.gmra.mxu2 %vm409_vm4, %v1068_v10  ;;  %3167 = vmatmul.msk.f32.vlgmr.msrb.gmra.mxu1 %vm409_vm4, %v1064_v20  ;;  %5898 = vst [vmem:[#allocation8_spill] sm:$0xff] %v4442_v49 }
 0x41c   :  { %v1066_v21 = vpop.permute.xlu1 %1065 }
 0x420   :  { %3170 = vmatmul.msk.f32.gmra.mxu2 %vm409_vm4, %v1070_v17  ;;  %3168 = vmatmul.msk.f32.gmra.mxu1 %vm409_vm4, %v1066_v21 }
 0x454   :  { %v655_v26 = vpop.f32.mrf.mxu2 }
 0x455   :  { %v4216_v57 = vadd.f32 %v4051_v60, %v655_v26 }
 0x457   :  { %v671_v36 = vsel %vm409_vm4, %v4216_v57, 0.0 }
 0x45c   :  { %v658_v5 = vpop.f32.mrf.mxu2 }
 0x45d   :  { %v4224_v39 = vadd.f32 %v3977_v42, %v658_v5 }
 0x45f   :  { %v674_v0 = vsel %vm409_vm4, %v4224_v39, 0.0 }
 0x464   :  { %v661_v8 = vpop.f32.mrf.mxu2 }
 0x46c   :  { %v664_v23 = vpop.f32.mrf.mxu2 }
 0x46d   :  { %v4210_v34 = vadd.f32 %v4070_v2, %v664_v23  ;;  %v4319_v23 = vld [vmem:[%s5847_s5 + $0x18] sm:$0xff] }
 0x46f   :  { %v680_v1 = vsel %vm409_vm4, %v4210_v34, 0.0 }
 0x48c   :  { %v4477_v4 = vpop.f32.mrf.mxu0 }
 0x495   :  { %v1120_v7 = vpop.f32.mrf.mxu1 }
 0x49b   :  { %v1126_v29 = vpop.f32.mrf.mxu2 }
 0x49c   :  { %1140 = vrot.lane.b32.xlu1 %v1126_v29, %s3556_s3  ;;  %v4328_v29 = vld [vmem:[%s5847_s5 + $0x20] sm:$0xff] }
 0x49d   :  { %v1123_v27 = vpop.f32.mrf.mxu1 }
 0x4a3   :  { %v1129_v44 = vpop.f32.mrf.mxu2 }
 0x4a4   :  { %1136 = vrot.lane.b32.xlu1 %v1120_v7, %s3556_s3  ;;  %1142 = vrot.lane.b32.xlu0 %v1129_v44, %s3556_s3 }
 0x4ac   :  { %1138 = vrot.lane.b32.xlu0 %v1123_v27, %s3556_s3  ;;  %v4338_v27 = vld [vmem:[%s5847_s5 + $0x28] sm:$0xff] }
 0x50e   :  { %v1141_v13 = vpop.permute.xlu1 %1140 }
 0x50f   :  { %v4190_v28 = vadd.f32 %v4060_v30, %v1141_v13 }
 0x511   :  { %1160 = vrot.lane.b32.xlu1 %v4190_v28, %s3556_s3 }
 0x516   :  { %v1143_v55 = vpop.permute.xlu0 %1142  ;;  %v1137_v37 = vpop.permute.xlu1 %1136 }
 0x517   :  { %v4195_v59 = vadd.f32 %v4070_v2, %v1143_v55  ;;  %v4198_v33 = vadd.f32 %v4051_v60, %v1137_v37  ;;  %v4227_v60 = vadd.f32 %v4060_v30, %v661_v8  ;;  %v1615_v30 = vld [vmem:[%s5846_s1 + $0x10] sm:$0xff] }
 0x518   :  { %v4310_v8 = vld [vmem:[%s5847_s5 + $0x10] sm:$0xff] }
 0x519   :  { %1162 = vrot.lane.b32.xlu0 %v4195_v59, %s3556_s3  ;;  %1156 = vrot.lane.b32.xlu1 %v4198_v33, %s3556_s3  ;;  %v677_v40 = vsel %vm409_vm4, %v4227_v60, 0.0 }
 0x51a   :  { %3209 = vmatmul.msk.f32.gmra.mxu0 %vm142_vm0, %v4310_v8 }
 0x51e   :  { %v1139_v43 = vpop.permute.xlu0 %1138 }
 0x51f   :  { %v4205_v31 = vadd.f32 %v3977_v42, %v1139_v43  ;;  %v1616_v42 = vld [vmem:[%s5846_s1 + $0x18] sm:$0xff]  ;;  %v4358_v43 = vld [vmem:[%s5847_s5 + $0x30] sm:$0xff] }
 0x520   :  { %1629 = vmatpush.msra.mxu2 %v1616_v42  ;;  %v4457_v42 = vld [vmem:[%s5847_s5 + $0x78] sm:$0xff] }
 0x521   :  { %1158 = vrot.lane.b32.xlu0 %v4205_v31, %s3556_s3  ;;  %5899 = vst [vmem:[#allocation9_spill] sm:$0xff] %v4457_v42 }
 0x522   :  { %1630 = vmatpush.msra.mxu2 %v1615_v30  ;;  %3210 = vmatmul.msk.f32.gmra.mxu0 %vm142_vm0, %v4319_v23 }
 0x524   :  { %1631 = vmatpush.msra.mxu2 %v1614_v48 }
 0x526   :  { %1632 = vmatpush.msra.mxu2 %v1613_v52  ;;  %v1297_v52 = vld [vmem:[%s5848_s6 + $0x28] sm:$0xff] }
 0x527   :  { %3187 = vmatmul.msk.f32.vlgmr.msra.gmra.mxu2 %vm142_vm0, %v4261_v3 }
 0x52a   :  { %3211 = vmatmul.msk.f32.gmra.mxu0 %vm142_vm0, %v4328_v29 }
 0x52f   :  { %3188 = vmatmul.msk.f32.gmra.mxu2 %vm142_vm0, %v4280_v9 }
 0x532   :  { %3212 = vmatmul.msk.f32.gmra.mxu0 %vm142_vm0, %v4338_v27 }
 0x537   :  { %3189 = vmatmul.msk.f32.gmra.mxu2 %vm142_vm0, %v4310_v8 }
 0x53a   :  { %3213 = vmatmul.msk.f32.gmra.mxu0 %vm142_vm0, %v4358_v43 }
 0x53f   :  { %3190 = vmatmul.msk.f32.gmra.mxu2 %vm142_vm0, %v4319_v23 }
 0x543   :  { %681 = vadd.xlane.f32.xlu1 %v680_v1 }
 0x547   :  { %3191 = vmatmul.msk.f32.gmra.mxu2 %vm142_vm0, %v4328_v29 }
 0x54f   :  { %3192 = vmatmul.msk.f32.gmra.mxu2 %vm142_vm0, %v4338_v27 }
 0x557   :  { %3193 = vmatmul.msk.f32.gmra.mxu2 %vm142_vm0, %v4358_v43 }
 0x583   :  { %v1161_v35 = vpop.permute.xlu1 %1160 }
 0x584   :  { %v1174_v15 = vsel %vm409_vm4, %v1161_v35, 0.0 }
 0x585   :  { %1175 = vadd.xlane.f32.xlu1 %v1174_v15 }
 0x58b   :  { %v1163_v25 = vpop.permute.xlu0 %1162  ;;  %v1157_v19 = vpop.permute.xlu1 %1156 }
 0x58c   :  { %v1168_v6 = vsel %vm409_vm4, %v1157_v19, 0.0  ;;  %v1177_v14 = vsel %vm409_vm4, %v1163_v25, 0.0  ;;  %v4376_v25 = vld [vmem:[%s5847_s5 + $0x38] sm:$0xff] }
 0x58d   :  { %672 = vadd.xlane.f32.xlu1 %v671_v36  ;;  %1169 = vadd.xlane.f32.xlu0 %v1168_v6  ;;  %v4386_v36 = vld [vmem:[%s5847_s5 + $0x40] sm:$0xff]  ;;  %v4395_v6 = vld [vmem:[%s5847_s5 + $0x48] sm:$0xff] }
 0x58e   :  { %3194 = vmatmul.msk.f32.gmra.mxu2 %vm142_vm0, %v4376_v25  ;;  %3214 = vmatmul.msk.f32.gmra.mxu0 %vm142_vm0, %v4376_v25  ;;  %5892 = vst [vmem:[#allocation2_spill] sm:$0xff] %v4386_v36 }
 0x58f   :  { %5893 = vst [vmem:[#allocation3_spill] sm:$0xff] %v4395_v6 }
 0x593   :  { %v1159_v2 = vpop.permute.xlu0 %1158 }
 0x594   :  { %v1171_v38 = vsel %vm409_vm4, %v1159_v2, 0.0  ;;  %v4404_v2 = vld [vmem:[%s5847_s5 + $0x50] sm:$0xff] }
 0x595   :  { %1172 = vadd.xlane.f32.xlu2 %v1171_v38  ;;  %1178 = vadd.xlane.f32.xlu0 %v1177_v14  ;;  %5894 = vst [vmem:[#allocation4_spill] sm:$0xff] %v4404_v2  ;;  %v4413_v38 = vld [vmem:[%s5847_s5 + $0x58] sm:$0xff]  ;;  %v4422_v14 = vld [vmem:[%s5847_s5 + $0x60] sm:$0xff] }
 0x596   :  { %3195 = vmatmul.msk.f32.gmra.mxu2 %vm142_vm0, %v4386_v36  ;;  %3215 = vmatmul.msk.f32.gmra.mxu0 %vm142_vm0, %v4386_v36  ;;  %5895 = vst [vmem:[#allocation5_spill] sm:$0xff] %v4413_v38 }
 0x597   :  { %5896 = vst [vmem:[#allocation6_spill] sm:$0xff] %v4422_v14 }
 0x59d   :  { %678 = vadd.xlane.f32.xlu2 %v677_v40  ;;  %675 = vadd.xlane.f32.xlu0 %v674_v0 }
 0x59e   :  { %3196 = vmatmul.msk.f32.gmra.mxu2 %vm142_vm0, %v4395_v6  ;;  %3216 = vmatmul.msk.f32.gmra.mxu0 %vm142_vm0, %v4395_v6 }
 0x5a6   :  { %3197 = vmatmul.msk.f32.gmra.mxu2 %vm142_vm0, %v4404_v2  ;;  %3217 = vmatmul.msk.f32.gmra.mxu0 %vm142_vm0, %v4404_v2 }
 0x5ae   :  { %3198 = vmatmul.msk.f32.gmra.mxu2 %vm142_vm0, %v4413_v38  ;;  %3218 = vmatmul.msk.f32.gmra.mxu0 %vm142_vm0, %v4413_v38 }
 0x5b6   :  { %v4233_v18 = vpop.xlane.xlu1 %681  ;;  %3199 = vmatmul.msk.f32.gmra.mxu2 %vm142_vm0, %v4422_v14  ;;  %3219 = vmatmul.msk.f32.gmra.mxu0 %vm142_vm0, %v4422_v14 }
 0x5b7   :  { %v693_v55 = vmul.f32 %v4256_v41, %v4233_v18 }
 0x5f8   :  { %v1176_v56 = vpop.xlane.xlu1 %1175 }
 0x5f9   :  { %v1182_v22 = vmul.f32 %v1176_v56, %v4256_v41  ;;  %v4475_v56 = vpop.f32.mrf.mxu2 }
 0x5fb   :  { %v4268_v54 = vsub.f32 %v4190_v28, %v1182_v22  ;;  %v1295_v22 = vld [vmem:[%s5848_s6 + $0x18] sm:$0xff] }
 0x5fd   :  { %v1190_v24 = vmul.f32 %v4268_v54, %v4268_v54 }
 0x5ff   :  { %1200 = vrot.lane.b32.xlu0 %v1190_v24, %s3556_s3  ;;  %v1292_v24 = vld [vmem:[%s5848_s6] sm:$0xff] }
 0x600   :  { %v1170_v32 = vpop.xlane.xlu0 %1169  ;;  %v673_v0 = vpop.xlane.xlu1 %672 }
 0x601   :  { %v1180_v50 = vmul.f32 %v1170_v32, %v4256_v41  ;;  %v690_v47 = vmul.f32 %v4256_v41, %v673_v0  ;;  %v1300_v32 = vld [vmem:[%s5848_s6 + $0x40] sm:$0xff] }
 0x603   :  { %v4284_v10 = vsub.f32 %v4198_v33, %v1180_v50  ;;  %v4353_v33 = vsub.f32 %v4210_v34, %v693_v55  ;;  %v4445_v53 = vsub.f32 %v4216_v57, %v690_v47  ;;  %v4488_v50 = vpop.f32.mrf.mxu2  ;;  %v1302_v55 = vld [vmem:[%s5848_s6 + $0x50] sm:$0xff] }
 0x605   :  { %v1188_v12 = vmul.f32 %v4284_v10, %v4284_v10  ;;  %v701_v34 = vmul.f32 %v4353_v33, %v4353_v33  ;;  %v698_v18 = vmul.f32 %v4445_v53, %v4445_v53 }
 0x607   :  { %1196 = vrot.lane.b32.xlu0 %v1188_v12, %s3556_s3  ;;  %v711_v15 = vsel %vm409_vm4, %v701_v34, 0.0  ;;  %v702_v61 = vsel %vm409_vm4, %v698_v18, 0.0  ;;  %v1298_v12 = vld [vmem:[%s5848_s6 + $0x30] sm:$0xff]  ;;  %v1305_v34 = vld [vmem:[%s5848_s6 + $0x68] sm:$0xff] }
 0x608   :  { %v1173_v45 = vpop.xlane.xlu2 %1172  ;;  %v1179_v46 = vpop.xlane.xlu0 %1178 }
 0x609   :  { %v1181_v16 = vmul.f32 %v1173_v45, %v4256_v41  ;;  %v1183_v17 = vmul.f32 %v1179_v46, %v4256_v41  ;;  %v1296_v45 = vld [vmem:[%s5848_s6 + $0x20] sm:$0xff]  ;;  %v4496_v46 = vpop.f32.mrf.mxu0 }
 0x60b   :  { %v4296_v20 = vsub.f32 %v4205_v31, %v1181_v16  ;;  %v4299_v21 = vsub.f32 %v4195_v59, %v1183_v17  ;;  %v1303_v16 = vld [vmem:[%s5848_s6 + $0x58] sm:$0xff]  ;;  %v1301_v17 = vld [vmem:[%s5848_s6 + $0x48] sm:$0xff] }
 0x60d   :  { %v1189_v26 = vmul.f32 %v4296_v20, %v4296_v20  ;;  %v1191_v5 = vmul.f32 %v4299_v21, %v4299_v21 }
 0x60f   :  { %1198 = vrot.lane.b32.xlu1 %v1189_v26, %s3556_s3  ;;  %1202 = vrot.lane.b32.xlu2 %v1191_v5, %s3556_s3  ;;  %v1299_v26 = vld [vmem:[%s5848_s6 + $0x38] sm:$0xff]  ;;  %v4507_v5 = vpop.f32.mrf.mxu2 }
 0x610   :  { %v676_v7 = vpop.xlane.xlu0 %675  ;;  %v679_v28 = vpop.xlane.xlu2 %678 }
 0x611   :  { %v691_v44 = vmul.f32 %v4256_v41, %v676_v7  ;;  %v692_v37 = vmul.f32 %v4256_v41, %v679_v28  ;;  %v4509_v7 = vpop.f32.mrf.mxu0  ;;  %v1304_v28 = vld [vmem:[%s5848_s6 + $0x60] sm:$0xff] }
 0x613   :  { %v4341_v13 = vsub.f32 %v4224_v39, %v691_v44  ;;  %v4361_v31 = vsub.f32 %v4227_v60, %v692_v37  ;;  %v4431_v39 = vld [vmem:[%s5847_s5 + $0x68] sm:$0xff]  ;;  %v1306_v44 = vld [vmem:[%s5848_s6 + $0x70] sm:$0xff] }
 0x614   :  { %5897 = vst [vmem:[#allocation7_spill] sm:$0xff] %v4431_v39  ;;  %3200 = vmatmul.msk.f32.gmra.mxu2 %vm142_vm0, %v4431_v39  ;;  %3220 = vmatmul.msk.f32.gmra.mxu0 %vm142_vm0, %v4431_v39 }
 0x615   :  { %v699_v59 = vmul.f32 %v4341_v13, %v4341_v13  ;;  %v700_v35 = vmul.f32 %v4361_v31, %v4361_v31 }
 0x617   :  { %v705_v1 = vsel %vm409_vm4, %v699_v59, 0.0  ;;  %v708_v19 = vsel %vm409_vm4, %v700_v35, 0.0  ;;  %v4520_v37 = vpop.f32.mrf.mxu2 }
 0x619   :  { %v4522_v59 = vpop.f32.mrf.mxu0 }
 0x61c   :  { %3201 = vmatmul.msk.f32.gmra.mxu2 %vm142_vm0, %v4442_v49  ;;  %3221 = vmatmul.msk.f32.gmra.mxu0 %vm142_vm0, %v4442_v49 }
 0x61f   :  { %v4530_v35 = vpop.f32.mrf.mxu2 }
 0x624   :  { %3202 = vmatmul.msk.f32.gmra.mxu2 %vm142_vm0, %v4457_v42  ;;  %3222 = vmatmul.msk.f32.gmra.mxu0 %vm142_vm0, %v4457_v42 }
 0x631   :  { %706 = vadd.xlane.f32.xlu0 %v705_v1  ;;  %v1307_v1 = vld [vmem:[%s5848_s6 + $0x78] sm:$0xff] }
 0x638   :  { %712 = vadd.xlane.f32.xlu2 %v711_v15  ;;  %v4532_v15 = vpop.f32.mrf.mxu0 }
 0x639   :  { %709 = vadd.xlane.f32.xlu1 %v708_v19  ;;  %v4534_v19 = vpop.f32.mrf.mxu2 }
 0x669   :  { %v1203_v60 = vpop.permute.xlu2 %1202 }
 0x66a   :  { %v1217_v40 = vsel %vm409_vm4, %v1203_v60, 0.0  ;;  %v4536_v60 = vpop.f32.mrf.mxu0 }
 0x66b   :  { %1218 = vadd.xlane.f32.xlu0 %v1217_v40 }
 0x671   :  { %v1201_v51 = vpop.permute.xlu0 %1200 }
 0x672   :  { %v1214_v58 = vsel %vm409_vm4, %v1201_v51, 0.0  ;;  %v4541_v18 = vpop.f32.mrf.mxu0 }
 0x673   :  { %1215 = vadd.xlane.f32.xlu2 %v1214_v58  ;;  %v4539_v58 = vpop.f32.mrf.mxu2 }
 0x679   :  { %v1197_v30 = vpop.permute.xlu0 %1196 }
 0x67a   :  { %v1208_v57 = vsel %vm409_vm4, %v1197_v30, 0.0 }
 0x67b   :  { %1209 = vadd.xlane.f32.xlu0 %v1208_v57  ;;  %703 = vadd.xlane.f32.xlu2 %v702_v61 }
 0x681   :  { %v1199_v62 = vpop.permute.xlu1 %1198 }
 0x682   :  { %v1211_v48 = vsel %vm409_vm4, %v1199_v62, 0.0 }
 0x683   :  { %1212 = vadd.xlane.f32.xlu1 %v1211_v48  ;;  %v4546_v48 = vpop.f32.mrf.mxu2 }
 0x68f   :  { %1320 = vperm.xlu0 %3334, %v1294_v63   ;;  %v4549_v63 = vpop.f32.mrf.mxu0 }
 0x693   :  { %1315 = vperm.xlu2 %3336, %v1293_v11  }
 0x697   :  { %1335 = vperm.xlu0 %3334, %v1297_v52  }
 0x69b   :  { %1325 = vperm.xlu2 %3336, %v1295_v22  }
 0x69c   :  { %1310 = vperm.xlu1 %3335, %v1292_v24  }
 0x69f   :  { %1350 = vperm.xlu0 %3334, %v1300_v32  }
 0x6a3   :  { %1340 = vperm.xlu2 %3336, %v1298_v12  }
 0x6a4   :  { %1330 = vperm.xlu1 %3335, %v1296_v45   ;;  %v707_v57 = vpop.xlane.xlu0 %706 }
 0x6a5   :  { %v715_v45 = vmul.f32 %v707_v57, %v4256_v41 }
 0x6a7   :  { %1365 = vperm.xlu0 %3334, %v1303_v16  }
 0x6ab   :  { %1355 = vperm.xlu2 %3336, %v1301_v17   ;;  %v713_v40 = vpop.xlane.xlu2 %712  ;;  %v4557_v17 = vpop.f32.mrf.mxu2 }
 0x6ac   :  { %1345 = vperm.xlu1 %3335, %v1299_v26   ;;  %v717_v0 = vmul.f32 %v713_v40, %v4256_v41  ;;  %v710_v51 = vpop.xlane.xlu1 %709 }
 0x6ad   :  { %v716_v30 = vmul.f32 %v710_v51, %v4256_v41 }
 0x6ae   :  { %v721_v47 = vadd.f32 1e-05, %v717_v0 }
 0x6af   :  { %1380 = vperm.xlu0 %3334, %v1306_v44   ;;  %v4544_v61 = vadd.f32 1e-05, %v716_v30 }
 0x6b0   :  { %3445 = vrsqrt.f32 %v721_v47  ;;  %vm758_vm15 = vweird.f32 %v721_v47 }
 0x6b1   :  { %3447 = vrsqrt.f32 %v4544_v61  ;;  %vm748_vm7 = vweird.f32 %v4544_v61 }
 0x6b3   :  { %1370 = vperm.xlu2 %3336, %v1304_v28   ;;  %v4559_v28 = vpop.f32.mrf.mxu0  ;;  %v4566_v49 = vpop.f32.mrf.mxu2 }
 0x6b4   :  { %1360 = vperm.xlu1 %3335, %v1302_v55  }
 0x6b6   :  { %v3446_v62 = vpop.eup %3445 }
 0x6b7   :  { %v753_v11 = vmul.f32 %v3446_v62, %v721_v47  ;;  %v4552_v32 = vpop.eup %3447  ;;  %vm759_vm14 = vweird.f32 %v3446_v62 }
 0x6b8   :  { %v743_v16 = vmul.f32 %v4552_v32, %v4544_v61  ;;  %vm4570_vm2 = vmor %vm758_vm15, %vm759_vm14  ;;  %vm749_vm6 = vweird.f32 %v4552_v32 }
 0x6b9   :  { %v754_v12 = vmul.f32 %v3446_v62, %v753_v11  ;;  %vm4598_vm9 = vmor %vm748_vm7, %vm749_vm6 }
 0x6ba   :  { %v744_v40 = vmul.f32 %v4552_v32, %v743_v16 }
 0x6bb   :  { %1385 = vperm.xlu2 %3336, %v1307_v1   ;;  %v755_v26 = vmul.f32 0.5, %v754_v12  ;;  %v4562_v1 = vadd.f32 1e-05, %v715_v45 }
 0x6bc   :  { %1375 = vperm.xlu1 %3335, %v1305_v34   ;;  %v745_v11 = vmul.f32 0.5, %v744_v40 }
 0x6bd   :  { %v756_v51 = vsub.f32 1.5, %v755_v26  ;;  %vm738_vm13 = vweird.f32 %v4562_v1 }
 0x6be   :  { %v746_v40 = vsub.f32 1.5, %v745_v11 }
 0x6de   :  { %v1219_v52 = vpop.xlane.xlu0 %1218 }
 0x6df   :  { %v1223_v22 = vmul.f32 %v1219_v52, %v4256_v41  ;;  %v757_v52 = vmul.f32 %v3446_v62, %v756_v51  ;;  %v4574_v51 = vpop.f32.mrf.mxu0 }
 0x6e1   :  { %v1227_v24 = vadd.f32 1e-05, %v1223_v22 }
 0x6e3   :  { %3449 = vrsqrt.f32 %v1227_v24  ;;  %vm1264_vm3 = vweird.f32 %v1227_v24 }
 0x6e6   :  { %v1216_v44 = vpop.xlane.xlu2 %1215 }
 0x6e7   :  { %v1222_v55 = vmul.f32 %v1216_v44, %v4256_v41 }
 0x6e9   :  { %v3450_v34 = vpop.eup %3449  ;;  %v1226_v0 = vadd.f32 1e-05, %v1222_v55  ;;  %v747_v55 = vmul.f32 %v4552_v32, %v746_v40  ;;  %v4602_v40 = vpop.f32.mrf.mxu2 }
 0x6ea   :  { %v1259_v30 = vmul.f32 %v3450_v34, %v1227_v24  ;;  %vm1265_vm1 = vweird.f32 %v3450_v34 }
 0x6eb   :  { %3451 = vrsqrt.f32 %v1226_v0  ;;  %vm1266_vm5 = vmor %vm1264_vm3, %vm1265_vm1  ;;  %vm1254_vm10 = vweird.f32 %v1226_v0 }
 0x6ec   :  { %3453 = vrsqrt.f32 %v4562_v1  ;;  %v1260_v57 = vmul.f32 %v3450_v34, %v1259_v30 }
 0x6ee   :  { %v1261_v22 = vmul.f32 0.5, %v1260_v57  ;;  %v1210_v12 = vpop.xlane.xlu0 %1209  ;;  %v704_v42 = vpop.xlane.xlu2 %703 }
 0x6ef   :  { %v1220_v45 = vmul.f32 %v1210_v12, %v4256_v41  ;;  %v714_v44 = vmul.f32 %v704_v42, %v4256_v41  ;;  %v761_v42 = vsel %vm4570_vm2, %v3446_v62, %v757_v52 }
 0x6f0   :  { %v1262_v16 = vsub.f32 1.5, %v1261_v22 }
 0x6f1   :  { %v3452_v26 = vpop.eup %3451  ;;  %v4576_v30 = vadd.f32 1e-05, %v1220_v45  ;;  %v4578_v57 = vadd.f32 1e-05, %v714_v44  ;;  %v765_v45 = vmul.f32 %v761_v42, %v4353_v33 }
 0x6f2   :  { %v4580_v39 = vpop.eup %3453  ;;  %v1263_v47 = vmul.f32 %v3450_v34, %v1262_v16  ;;  %v1249_v22 = vmul.f32 %v3452_v26, %v1226_v0  ;;  %vm1255_vm8 = vweird.f32 %v3452_v26 }
 0x6f3   :  { %3455 = vrsqrt.f32 %v4576_v30  ;;  %v733_v11 = vmul.f32 %v4580_v39, %v4562_v1  ;;  %vm1256_vm11 = vmor %vm1254_vm10, %vm1255_vm8  ;;  %vm739_vm12 = vweird.f32 %v4580_v39  ;;  %vm1234_vm2 = vweird.f32 %v4576_v30 }
 0x6f4   :  { %v1267_v12 = vsel %vm1266_vm5, %v3450_v34, %v1263_v47  ;;  %v1250_v14 = vmul.f32 %v3452_v26, %v1249_v22  ;;  %3457 = vrsqrt.f32 %v4578_v57  ;;  %vm4637_vm1 = vmor %vm738_vm13, %vm739_vm12  ;;  %vm728_vm5 = vweird.f32 %v4578_v57 }
 0x6f5   :  { %v1271_v44 = vmul.f32 %v1267_v12, %v4299_v21  ;;  %v734_v33 = vmul.f32 %v4580_v39, %v733_v11  ;;  %v751_v12 = vsel %vm4598_vm9, %v4552_v32, %v747_v55 }
 0x6f6   :  { %v1251_v62 = vmul.f32 0.5, %v1250_v14  ;;  %v1213_v24 = vpop.xlane.xlu1 %1212  ;;  %v4608_v22 = vpop.permute.xlu2 %1315 }
 0x6f7   :  { %v1221_v52 = vmul.f32 %v1213_v24, %v4256_v41  ;;  %v1275_v34 = vsel %vm409_vm4, %v765_v45, %v1271_v44  ;;  %v4615_v45 = vpop.f32.mrf.mxu0  ;;  %v764_v24 = vmul.f32 %v751_v12, %v4361_v31  ;;  %v4653_v1 = vadd.f32 %v4488_v50, %v4608_v22 }
 0x6f8   :  { %v1252_v16 = vsub.f32 1.5, %v1251_v62  ;;  %1448 = vmatpush.msra.mxu1 %v1275_v34  ;;  %v735_v34 = vmul.f32 0.5, %v734_v33 }
 0x6f9   :  { %v4595_v47 = vpop.eup %3455  ;;  %v1225_v14 = vadd.f32 1e-05, %v1221_v52 }
 0x6fa   :  { %v4604_v42 = vpop.eup %3457  ;;  %v1253_v41 = vmul.f32 %v3452_v26, %v1252_v16  ;;  %v1229_v61 = vmul.f32 %v4595_v47, %v4576_v30  ;;  %v736_v38 = vsub.f32 1.5, %v735_v34  ;;  %vm1235_vm14 = vweird.f32 %v4595_v47 }
 0x6fb   :  { %v723_v11 = vmul.f32 %v4604_v42, %v4578_v57  ;;  %3459 = vrsqrt.f32 %v1225_v14  ;;  %vm729_vm15 = vweird.f32 %v4604_v42  ;;  %vm4642_vm3 = vmor %vm1234_vm2, %vm1235_vm14  ;;  %vm1244_vm8 = vweird.f32 %v1225_v14 }
 0x6fc   :  { %v1230_v44 = vmul.f32 %v4595_v47, %v1229_v61  ;;  %v1257_v62 = vsel %vm1256_vm11, %v3452_v26, %v1253_v41  ;;  %v4624_v26 = vpop.f32.mrf.mxu2  ;;  %v737_v33 = vmul.f32 %v4580_v39, %v736_v38  ;;  %vm4647_vm7 = vmor %vm728_vm5, %vm729_vm15 }
 0x6fd   :  { %v724_v0 = vmul.f32 %v4604_v42, %v723_v11  ;;  %v1270_v52 = vmul.f32 %v1257_v62, %v4268_v54 }
 0x6fe   :  { %v1231_v16 = vmul.f32 0.5, %v1230_v44  ;;  %v4626_v41 = vpop.permute.xlu2 %1325  ;;  %v741_v30 = vsel %vm4637_vm1, %v4580_v39, %v737_v33 }
 0x6ff   :  { %v725_v21 = vmul.f32 0.5, %v724_v0  ;;  %v1274_v32 = vsel %vm409_vm4, %v764_v24, %v1270_v52  ;;  %v4629_v31 = vpop.f32.mrf.mxu0  ;;  %v4657_v0 = vadd.f32 %v4496_v46, %v4608_v22 }
 0x700   :  { %1449 = vmatpush.msra.mxu1 %v1274_v32  ;;  %v1232_v6 = vsub.f32 1.5, %v1231_v16 }
 0x701   :  { %v3460_v55 = vpop.eup %3459  ;;  %v4622_v2 = vpop.permute.xlu0 %1320  ;;  %v726_v61 = vsub.f32 1.5, %v725_v21 }
 0x702   :  { %v1239_v36 = vmul.f32 %v3460_v55, %v1225_v14  ;;  %v1233_v12 = vmul.f32 %v4595_v47, %v1232_v6  ;;  %vm1245_vm6 = vweird.f32 %v3460_v55  ;;  %v4672_v46 = vadd.f32 %v4507_v5, %v4622_v2 }
 0x703   :  { %v727_v11 = vmul.f32 %v4604_v42, %v726_v61  ;;  %vm1246_vm9 = vmor %vm1244_vm8, %vm1245_vm6  ;;  %v4676_v39 = vadd.f32 %v4509_v7, %v4622_v2  ;;  %v1683_v61 = vmul.f32 %v4653_v1, %v4653_v1  ;;  %v1874_v7 = vmul.f32 %v4657_v0, %v4657_v0 }
 0x704   :  { %v1240_v54 = vmul.f32 %v3460_v55, %v1239_v36  ;;  %v1237_v52 = vsel %vm4642_vm3, %v4595_v47, %v1233_v12  ;;  %v4678_v14 = vpop.f32.mrf.mxu2  ;;  %v763_v47 = vmul.f32 %v741_v30, %v4341_v13  ;;  %v1684_v33 = vmul.f32 %v4672_v46, %v4672_v46 }
 0x705   :  { %v731_v57 = vsel %vm4647_vm7, %v4604_v42, %v727_v11  ;;  %v1268_v5 = vmul.f32 %v1237_v52, %v4284_v10  ;;  %v4708_v10 = vadd.f32 %v4522_v59, %v4626_v41  ;;  %v1699_v59 = vsel %vm409_vm4, %v1683_v61, 0.0 }
 0x706   :  { %v1241_v44 = vmul.f32 0.5, %v1240_v54  ;;  %v4680_v16 = vpop.permute.xlu2 %1340  ;;  %v762_v32 = vmul.f32 %v731_v57, %v4445_v53  ;;  %v1890_v11 = vsel %vm409_vm4, %v1874_v7, 0.0 }
 0x707   :  { %v4692_v54 = vpop.f32.mrf.mxu0 }
 0x708   :  { %v1242_v38 = vsub.f32 1.5, %v1241_v44 }
 0x709   :  { %v4668_v50 = vpop.permute.xlu0 %1335 }
 0x70a   :  { %v1243_v24 = vmul.f32 %v3460_v55, %v1242_v38  ;;  %v1876_v38 = vmul.f32 %v4708_v10, %v4708_v10  ;;  %v4734_v52 = vadd.f32 %v4534_v19, %v4668_v50 }
 0x70c   :  { %v1247_v34 = vsel %vm1246_vm9, %v3460_v55, %v1243_v24  ;;  %v1701_v24 = vsel %vm409_vm4, %v1684_v33, 0.0  ;;  %v1894_v7 = vsel %vm409_vm4, %v1876_v38, 0.0  ;;  %v4762_v33 = vpop.f32.mrf.mxu2 }
 0x70d   :  { %v1269_v21 = vmul.f32 %v1247_v34, %v4296_v20  ;;  %v4704_v20 = vadd.f32 %v4520_v37, %v4626_v41  ;;  %v1272_v37 = vsel %vm409_vm4, %v762_v32, %v1268_v5  ;;  %v4738_v34 = vadd.f32 %v4536_v60, %v4668_v50 }
 0x70e   :  { %v4682_v42 = vpop.permute.xlu1 %1310  ;;  %v4756_v60 = vadd.f32 %v4539_v58, %v4680_v16 }
 0x70f   :  { %v4696_v55 = vadd.f32 %v4475_v56, %v4682_v42  ;;  %v4700_v13 = vadd.f32 %v4477_v4, %v4682_v42  ;;  %v1273_v53 = vsel %vm409_vm4, %v763_v47, %v1269_v21  ;;  %v1875_v56 = vmul.f32 %v4676_v39, %v4676_v39 }
 0x710   :  { %1450 = vmatpush.msra.mxu1 %v1273_v53  ;;  %v1685_v36 = vmul.f32 %v4704_v20, %v4704_v20  ;;  %v4760_v53 = vadd.f32 %v4541_v18, %v4680_v16 }
 0x711   :  { %v1682_v4 = vmul.f32 %v4696_v55, %v4696_v55  ;;  %v1873_v12 = vmul.f32 %v4700_v13, %v4700_v13  ;;  %v1892_v57 = vsel %vm409_vm4, %v1875_v56, 0.0  ;;  %v4740_v32 = vpop.permute.xlu0 %1350  ;;  %v1878_v56 = vmul.f32 %v4738_v34, %v4738_v34 }
 0x712   :  { %1451 = vmatpush.msra.mxu1 %v1272_v37  ;;  %5910 = vst [vmem:[#allocation10_spill] sm:$0xff] %v4740_v32  ;;  %v1703_v19 = vsel %vm409_vm4, %v1685_v36, 0.0 }
 0x713   :  { %v1698_v44 = vsel %vm409_vm4, %v1682_v4, 0.0  ;;  %v1889_v62 = vsel %vm409_vm4, %v1873_v12, 0.0  ;;  %3171 = vmatmul.msk.f32.vlgmr.msra.gmra.mxu1 %vm142_vm0, %v4261_v3  ;;  %v4770_v4 = vpop.f32.mrf.mxu0 }
 0x714   :  { %v1700_v6 = vadd.f32 %v1699_v59, %v1698_v44  ;;  %v1891_v30 = vadd.f32 %v1890_v11, %v1889_v62  ;;  %v1688_v44 = vmul.f32 %v4756_v60, %v4756_v60  ;;  %v1879_v62 = vmul.f32 %v4760_v53, %v4760_v53 }
 0x716   :  { %v1702_v47 = vadd.f32 %v1701_v24, %v1700_v6  ;;  %v1893_v21 = vadd.f32 %v1892_v57, %v1891_v30  ;;  %v4742_v5 = vpop.permute.xlu1 %1330  ;;  %v1898_v30 = vsel %vm409_vm4, %v1878_v56, 0.0  ;;  %v4788_v24 = vadd.f32 %v4557_v17, %v4740_v32 }
 0x717   :  { %v4746_v3 = vadd.f32 %v4530_v35, %v4742_v5  ;;  %v4750_v61 = vadd.f32 %v4532_v15, %v4742_v5  ;;  %v4764_v35 = vpop.permute.xlu2 %1355  ;;  %v1687_v15 = vmul.f32 %v4734_v52, %v4734_v52  ;;  %v4792_v57 = vadd.f32 %v4559_v28, %v4740_v32 }
 0x718   :  { %5911 = vst [vmem:[#allocation11_spill] sm:$0xff] %v4764_v35  ;;  %v1704_v18 = vadd.f32 %v1703_v19, %v1702_v47  ;;  %v1895_v37 = vadd.f32 %v1894_v7, %v1893_v21  ;;  %v1900_v17 = vsel %vm409_vm4, %v1879_v62, 0.0  ;;  %v4808_v28 = vadd.f32 %v4566_v49, %v4764_v35  ;;  %v1676_v49 = vpop.f32.mrf.mxu2 }
 0x719   :  { %v1686_v58 = vmul.f32 %v4746_v3, %v4746_v3  ;;  %v1877_v12 = vmul.f32 %v4750_v61, %v4750_v61  ;;  %v1707_v6 = vsel %vm409_vm4, %v1687_v15, 0.0  ;;  %v1709_v15 = vsel %vm409_vm4, %v1688_v44, 0.0 }
 0x71a   :  { %v4812_v56 = vadd.f32 %v4574_v51, %v4764_v35 }
 0x71b   :  { %v1705_v59 = vsel %vm409_vm4, %v1686_v58, 0.0  ;;  %v1896_v11 = vsel %vm409_vm4, %v1877_v12, 0.0  ;;  %3172 = vmatmul.msk.f32.gmra.mxu1 %vm142_vm0, %v4280_v9  ;;  %v4814_v58 = vpop.permute.xlu0 %1365 }
 0x71c   :  { %v1706_v36 = vadd.f32 %v1705_v59, %v1704_v18  ;;  %v1897_v38 = vadd.f32 %v1896_v11, %v1895_v37  ;;  %5912 = vst [vmem:[#allocation12_spill] sm:$0xff] %v4814_v58  ;;  %v1867_v11 = vpop.f32.mrf.mxu0 }
 0x71e   :  { %v1708_v47 = vadd.f32 %v1707_v6, %v1706_v36  ;;  %v1899_v21 = vadd.f32 %v1898_v30, %v1897_v38  ;;  %v4794_v19 = vpop.permute.xlu1 %1345  ;;  %v1691_v36 = vmul.f32 %v4808_v28, %v4808_v28  ;;  %v1882_v38 = vmul.f32 %v4812_v56, %v4812_v56 }
 0x71f   :  { %v4798_v7 = vadd.f32 %v4546_v48, %v4794_v19  ;;  %v4802_v9 = vadd.f32 %v4549_v63, %v4794_v19  ;;  %v1690_v48 = vmul.f32 %v4788_v24, %v4788_v24  ;;  %v1881_v63 = vmul.f32 %v4792_v57, %v4792_v57  ;;  %v4824_v37 = vpop.permute.xlu2 %1370 }
 0x720   :  { %5913 = vst [vmem:[#allocation13_spill] sm:$0xff] %v4824_v37  ;;  %v1710_v59 = vadd.f32 %v1709_v15, %v1708_v47  ;;  %v1901_v51 = vadd.f32 %v1900_v17, %v1899_v21  ;;  %v4838_v21 = vadd.f32 %v4624_v26, %v4814_v58  ;;  %v4842_v15 = vadd.f32 %v4629_v31, %v4814_v58 }
 0x721   :  { %v1689_v12 = vmul.f32 %v4798_v7, %v4798_v7  ;;  %v1880_v18 = vmul.f32 %v4802_v9, %v4802_v9  ;;  %v1713_v35 = vsel %vm409_vm4, %v1690_v48, 0.0  ;;  %v1904_v47 = vsel %vm409_vm4, %v1881_v63, 0.0 }
 0x722   :  { %v1715_v48 = vsel %vm409_vm4, %v1691_v36, 0.0  ;;  %v1906_v26 = vsel %vm409_vm4, %v1882_v38, 0.0  ;;  %v4858_v31 = vadd.f32 %v4678_v14, %v4824_v37  ;;  %v1884_v63 = vmul.f32 %v4842_v15, %v4842_v15 }
 0x723   :  { %v1711_v44 = vsel %vm409_vm4, %v1689_v12, 0.0  ;;  %v1902_v62 = vsel %vm409_vm4, %v1880_v18, 0.0  ;;  %3173 = vmatmul.msk.f32.gmra.mxu1 %vm142_vm0, %v4310_v8 }
 0x724   :  { %v1712_v6 = vadd.f32 %v1711_v44, %v1710_v59  ;;  %v1903_v30 = vadd.f32 %v1902_v62, %v1901_v51  ;;  %v4872_v44 = vpop.permute.xlu0 %1380  ;;  %v1694_v38 = vmul.f32 %v4858_v31, %v4858_v31 }
 0x725   :  { %5915 = vst [vmem:[#allocation15_spill] sm:$0xff] %v4872_v44 }
 0x726   :  { %v1714_v17 = vadd.f32 %v1713_v35, %v1712_v6  ;;  %v1905_v12 = vadd.f32 %v1904_v47, %v1903_v30  ;;  %v4844_v18 = vpop.permute.xlu1 %1360  ;;  %v4862_v35 = vadd.f32 %v4692_v54, %v4824_v37  ;;  %v1679_v30 = vpop.f32.mrf.mxu2 }
 0x727   :  { %5914 = vst [vmem:[#allocation14_spill] sm:$0xff] %v4844_v18  ;;  %v4848_v59 = vadd.f32 %v4602_v40, %v4844_v18  ;;  %v4852_v8 = vadd.f32 %v4615_v45, %v4844_v18  ;;  %v1693_v40 = vmul.f32 %v4838_v21, %v4838_v21  ;;  %v4880_v47 = vpop.permute.xlu2 %1385 }
 0x728   :  { %v1716_v14 = vadd.f32 %v1715_v48, %v1714_v17  ;;  %v1907_v62 = vadd.f32 %v1906_v26, %v1905_v12  ;;  %v1885_v6 = vmul.f32 %v4862_v35, %v4862_v35  ;;  %5916 = vst [vmem:[#allocation16_spill] sm:$0xff] %v4880_v47  ;;  %v1910_v12 = vsel %vm409_vm4, %v1884_v63, 0.0  ;;  %v1870_v48 = vpop.f32.mrf.mxu0 }
 0x729   :  { %v1692_v45 = vmul.f32 %v4848_v59, %v4848_v59  ;;  %v1883_v51 = vmul.f32 %v4852_v8, %v4852_v8  ;;  %v1719_v17 = vsel %vm409_vm4, %v1693_v40, 0.0  ;;  %v4887_v26 = vadd.f32 %v1676_v49, %v4872_v44 }
 0x72a   :  { %v1680_v40 = vadd.f32 %v1679_v30, %v4880_v47  ;;  %v1721_v63 = vsel %vm409_vm4, %v1694_v38, 0.0  ;;  %v1912_v49 = vsel %vm409_vm4, %v1885_v6, 0.0 }
 0x72b   :  { %v1717_v36 = vsel %vm409_vm4, %v1692_v45, 0.0  ;;  %v1908_v54 = vsel %vm409_vm4, %v1883_v51, 0.0  ;;  %3174 = vmatmul.msk.f32.gmra.mxu1 %vm142_vm0, %v4319_v23  ;;  %v4890_v45 = vadd.f32 %v1867_v11, %v4872_v44  ;;  %v4904_v11 = vadd.f32 %v1870_v48, %v4880_v47 }
 0x72c   :  { %v1718_v37 = vadd.f32 %v1717_v36, %v1716_v14  ;;  %v1909_v58 = vadd.f32 %v1908_v54, %v1907_v62  ;;  %v1697_v6 = vmul.f32 %v1680_v40, %v1680_v40 }
 0x72e   :  { %v1720_v51 = vadd.f32 %v1719_v17, %v1718_v37  ;;  %v1911_v18 = vadd.f32 %v1910_v12, %v1909_v58  ;;  %v4892_v32 = vpop.permute.xlu1 %1375  ;;  %v1696_v58 = vmul.f32 %v4887_v26, %v4887_v26  ;;  %v1887_v37 = vmul.f32 %v4890_v45, %v4890_v45 }
 0x72f   :  { %v1674_v14 = vadd.f32 %v4762_v33, %v4892_v32  ;;  %v4898_v23 = vadd.f32 %v4770_v4, %v4892_v32  ;;  %v1888_v12 = vmul.f32 %v4904_v11, %v4904_v11 }
 0x730   :  { %v1913_v62 = vadd.f32 %v1912_v49, %v1911_v18  ;;  %v1722_v36 = vadd.f32 %v1721_v63, %v1720_v51  ;;  %v1916_v48 = vsel %vm409_vm4, %v1887_v37, 0.0  ;;  %v1725_v47 = vsel %vm409_vm4, %v1696_v58, 0.0 }
 0x731   :  { %v1695_v33 = vmul.f32 %v1674_v14, %v1674_v14  ;;  %v1886_v4 = vmul.f32 %v4898_v23, %v4898_v23  ;;  %v1727_v51 = vsel %vm409_vm4, %v1697_v6, 0.0  ;;  %v1918_v49 = vsel %vm409_vm4, %v1888_v12, 0.0 }
 0x733   :  { %v1723_v54 = vsel %vm409_vm4, %v1695_v33, 0.0  ;;  %v1914_v38 = vsel %vm409_vm4, %v1886_v4, 0.0  ;;  %3175 = vmatmul.msk.f32.gmra.mxu1 %vm142_vm0, %v4328_v29 }
 0x734   :  { %v1915_v30 = vadd.f32 %v1914_v38, %v1913_v62  ;;  %v1724_v17 = vadd.f32 %v1723_v54, %v1722_v36 }
 0x736   :  { %v1917_v44 = vadd.f32 %v1916_v48, %v1915_v30  ;;  %v1726_v18 = vadd.f32 %v1725_v47, %v1724_v17 }
 0x738   :  { %v1728_v63 = vadd.f32 %v1727_v51, %v1726_v18  ;;  %v1919_v33 = vadd.f32 %v1918_v49, %v1917_v44  ;;  %v5917_v18 = vld [vmem:[#allocation2_spill] sm:$0xff] }
 0x73a   :  { %v1729_v4 = vrot.slane %v1728_v63, 4  ;;  %v1920_v62 = vrot.slane %v1919_v33, 4 }
 0x73b   :  { %3176 = vmatmul.msk.f32.gmra.mxu1 %vm142_vm0, %v4338_v27 }
 0x73c   :  { %v1730_v29 = vadd.f32 %v1729_v4, %v1728_v63  ;;  %v1921_v38 = vadd.f32 %v1920_v62, %v1919_v33 }
 0x73e   :  { %v1731_v36 = vrot.slane %v1730_v29, 2  ;;  %v1922_v58 = vrot.slane %v1921_v38, 2 }
 0x740   :  { %v1732_v54 = vadd.f32 %v1731_v36, %v1730_v29  ;;  %v1923_v30 = vadd.f32 %v1922_v58, %v1921_v38  ;;  %v5918_v29 = vld [vmem:[#allocation3_spill] sm:$0xff] }
 0x742   :  { %v1733_v37 = vrot.slane %v1732_v54, 1  ;;  %v1924_v44 = vrot.slane %v1923_v30, 1 }
 0x743   :  { %3177 = vmatmul.msk.f32.gmra.mxu1 %vm142_vm0, %v4358_v43 }
 0x744   :  { %v1734_v47 = vadd.f32 %v1733_v37, %v1732_v54  ;;  %v1925_v12 = vadd.f32 %v1924_v44, %v1923_v30  ;;  %v5920_v30 = vld [vmem:[#allocation5_spill] sm:$0xff] }
 0x746   :  { %v1735_v6 = vmax.f32 %v1734_v47, 1e-24  ;;  %v1926_v63 = vmax.f32 %v1925_v12, 1e-24  ;;  %v5919_v47 = vld [vmem:[#allocation4_spill] sm:$0xff] }
 0x748   :  { %3461 = vrsqrt.f32 %v1735_v6  ;;  %vm1742_vm11 = vweird.f32 %v1735_v6  ;;  %vm1933_vm14 = vweird.f32 %v1926_v63 }
 0x749   :  { %3463 = vrsqrt.f32 %v1926_v63 }
 0x74b   :  { %3178 = vmatmul.msk.f32.gmra.mxu1 %vm142_vm0, %v4376_v25 }
 0x74e   :  { %v3462_v17 = vpop.eup %3461 }
 0x74f   :  { %v1737_v27 = vmul.f32 %v3462_v17, %v1735_v6  ;;  %vm1743_vm10 = vweird.f32 %v3462_v17  ;;  %v3464_v36 = vpop.eup %3463 }
 0x750   :  { %vm1744_vm12 = vmor %vm1742_vm11, %vm1743_vm10  ;;  %v1928_v38 = vmul.f32 %v3464_v36, %v1926_v63  ;;  %vm1934_vm13 = vweird.f32 %v3464_v36  ;;  %v5924_v63 = vld [vmem:[#allocation9_spill] sm:$0xff] }
 0x751   :  { %v1738_v48 = vmul.f32 %v3462_v17, %v1737_v27  ;;  %v5921_v27 = vld [vmem:[#allocation6_spill] sm:$0xff]  ;;  %vm1935_vm15 = vmor %vm1933_vm14, %vm1934_vm13 }
 0x752   :  { %v1929_v58 = vmul.f32 %v3464_v36, %v1928_v38 }
 0x753   :  { %3179 = vmatmul.msk.f32.gmra.mxu1 %vm142_vm0, %v5917_v18  ;;  %v1739_v51 = vmul.f32 0.5, %v1738_v48  ;;  %v5922_v48 = vld [vmem:[#allocation7_spill] sm:$0xff] }
 0x754   :  { %v1930_v6 = vmul.f32 0.5, %v1929_v58 }
 0x755   :  { %v1740_v49 = vsub.f32 1.5, %v1739_v51  ;;  %v5923_v51 = vld [vmem:[#allocation8_spill] sm:$0xff] }
 0x756   :  { %v1931_v44 = vsub.f32 1.5, %v1930_v6 }
 0x757   :  { %v1741_v43 = vmul.f32 %v3462_v17, %v1740_v49 }
 0x759   :  { %v1745_v33 = vsel %vm1744_vm12, %v3462_v17, %v1741_v43  ;;  %v1932_v17 = vmul.f32 %v3464_v36, %v1931_v44 }
 0x75a   :  { %v1761_v4 = vmul.f32 %v1745_v33, %v1680_v40  ;;  %v1760_v25 = vmul.f32 %v1745_v33, %v4887_v26  ;;  %v1759_v62 = vmul.f32 %v1745_v33, %v1674_v14  ;;  %v1758_v54 = vmul.f32 %v1745_v33, %v4858_v31 }
 0x75b   :  { %3180 = vmatmul.msk.f32.gmra.mxu1 %vm142_vm0, %v5918_v29  ;;  %v1757_v37 = vmul.f32 %v1745_v33, %v4838_v21  ;;  %v1756_v40 = vmul.f32 %v1745_v33, %v4848_v59  ;;  %v1755_v26 = vmul.f32 %v1745_v33, %v4808_v28  ;;  %v1754_v14 = vmul.f32 %v1745_v33, %v4788_v24 }
 0x75c   :  { %1762 = vmatpush.msrb.mxu3 %v1761_v4  ;;  %v1753_v31 = vmul.f32 %v1745_v33, %v4798_v7  ;;  %v1752_v21 = vmul.f32 %v1745_v33, %v4756_v60  ;;  %v1751_v59 = vmul.f32 %v1745_v33, %v4734_v52  ;;  %v1750_v28 = vmul.f32 %v1745_v33, %v4746_v3 }
 0x75d   :  { %v1749_v24 = vmul.f32 %v1745_v33, %v4704_v20  ;;  %v1748_v7 = vmul.f32 %v1745_v33, %v4672_v46  ;;  %v1936_v60 = vsel %vm1935_vm15, %v3464_v36, %v1932_v17  ;;  %v1747_v52 = vmul.f32 %v1745_v33, %v4653_v1 }
 0x75e   :  { %1763 = vmatpush.msrb.mxu3 %v1760_v25  ;;  %v1746_v3 = vmul.f32 %v1745_v33, %v4696_v55  ;;  %v1952_v12 = vmul.f32 %v1936_v60, %v4904_v11  ;;  %v1951_v20 = vmul.f32 %v1936_v60, %v4890_v45  ;;  %v1950_v46 = vmul.f32 %v1936_v60, %v4898_v23 }
 0x75f   :  { %v1949_v18 = vmul.f32 %v1936_v60, %v4862_v35  ;;  %v1948_v1 = vmul.f32 %v1936_v60, %v4842_v15  ;;  %v1947_v55 = vmul.f32 %v1936_v60, %v4852_v8  ;;  %v1946_v11 = vmul.f32 %v1936_v60, %v4812_v56 }
 0x760   :  { %1764 = vmatpush.msrb.mxu3 %v1759_v62  ;;  %v1945_v45 = vmul.f32 %v1936_v60, %v4792_v57  ;;  %v1944_v23 = vmul.f32 %v1936_v60, %v4802_v9  ;;  %v1943_v15 = vmul.f32 %v1936_v60, %v4760_v53  ;;  %v1942_v35 = vmul.f32 %v1936_v60, %v4738_v34 }
 0x761   :  { %v1941_v8 = vmul.f32 %v1936_v60, %v4750_v61  ;;  %v1940_v56 = vmul.f32 %v1936_v60, %v4708_v10  ;;  %v1939_v57 = vmul.f32 %v1936_v60, %v4676_v39  ;;  %v1938_v9 = vmul.f32 %v1936_v60, %v4657_v0 }
 0x762   :  { %1765 = vmatpush.msrb.mxu3 %v1758_v54  ;;  %v1937_v43 = vmul.f32 %v1936_v60, %v4700_v13 }
 0x763   :  { %3181 = vmatmul.msk.f32.gmra.mxu1 %vm142_vm0, %v5919_v47 }
 0x764   :  { %1766 = vmatpush.msrb.mxu3 %v1757_v37 }
 0x766   :  { %1767 = vmatpush.msrb.mxu3 %v1756_v40 }
 0x768   :  { %1768 = vmatpush.msrb.mxu3 %v1755_v26 }
 0x76a   :  { %1769 = vmatpush.msrb.mxu3 %v1754_v14 }
 0x76b   :  { %3182 = vmatmul.msk.f32.gmra.mxu1 %vm142_vm0, %v5920_v30 }
 0x76c   :  { %1770 = vmatpush.msrb.mxu3 %v1753_v31 }
 0x76e   :  { %1771 = vmatpush.msrb.mxu3 %v1752_v21 }
 0x770   :  { %1772 = vmatpush.msrb.mxu3 %v1751_v59 }
 0x772   :  { %1773 = vmatpush.msrb.mxu3 %v1750_v28 }
 0x773   :  { %3183 = vmatmul.msk.f32.gmra.mxu1 %vm142_vm0, %v5921_v27 }
 0x774   :  { %1774 = vmatpush.msrb.mxu3 %v1749_v24 }
 0x776   :  { %1775 = vmatpush.msrb.mxu3 %v1748_v7  ;;  %v5925_v7 = vld [vmem:[#allocation10_spill] sm:$0xff] }
 0x778   :  { %1776 = vmatpush.msrb.mxu3 %v1747_v52 }
 0x77a   :  { %1777 = vmatpush.msrb.mxu3 %v1746_v3 }
 0x77b   :  { %3184 = vmatmul.msk.f32.gmra.mxu1 %vm142_vm0, %v5922_v48  ;;  %v5926_v48 = vld [vmem:[#allocation11_spill] sm:$0xff] }
 0x77c   :  { %1953 = vmatpush.msra.mxu3 %v1952_v12 }
 0x77e   :  { %1954 = vmatpush.msra.mxu3 %v1951_v20 }
 0x780   :  { %1955 = vmatpush.msra.mxu3 %v1950_v46 }
 0x782   :  { %1956 = vmatpush.msra.mxu3 %v1949_v18 }
 0x783   :  { %3185 = vmatmul.msk.f32.gmra.mxu1 %vm142_vm0, %v5923_v51 }
 0x784   :  { %1957 = vmatpush.msra.mxu3 %v1948_v1  ;;  %v5927_v1 = vld [vmem:[#allocation14_spill] sm:$0xff] }
 0x786   :  { %1958 = vmatpush.msra.mxu3 %v1947_v55 }
 0x788   :  { %1959 = vmatpush.msra.mxu3 %v1946_v11 }
 0x78a   :  { %1960 = vmatpush.msra.mxu3 %v1945_v45  ;;  %v5928_v45 = vld [vmem:[#allocation12_spill] sm:$0xff] }
 0x78b   :  { %3186 = vmatmul.msk.f32.gmra.mxu1 %vm142_vm0, %v5924_v63 }
 0x78c   :  { %1961 = vmatpush.msra.mxu3 %v1944_v23 }
 0x78e   :  { %1962 = vmatpush.msra.mxu3 %v1943_v15 }
 0x790   :  { %1963 = vmatpush.msra.mxu3 %v1942_v35  ;;  %v1453_v49 = vpop.f32.mrf.mxu1  ;;  %v5929_v35 = vld [vmem:[#allocation13_spill] sm:$0xff] }
 0x791   :  { %v4978_v0 = vadd.f32 %v1453_v49, %v4682_v42 }
 0x792   :  { %1964 = vmatpush.msra.mxu3 %v1941_v8 }
 0x793   :  { %v1501_v47 = vmul.f32 %v4978_v0, %v4978_v0 }
 0x794   :  { %1965 = vmatpush.msra.mxu3 %v1940_v56 }
 0x796   :  { %1966 = vmatpush.msra.mxu3 %v1939_v57 }
 0x798   :  { %1967 = vmatpush.msra.mxu3 %v1938_v9  ;;  %v1456_v53 = vpop.f32.mrf.mxu1 }
 0x799   :  { %v4975_v39 = vadd.f32 %v1456_v53, %v4608_v22 }
 0x79a   :  { %1968 = vmatpush.msra.mxu3 %v1937_v43 }
 0x79b   :  { %v1502_v38 = vmul.f32 %v4975_v39, %v4975_v39 }
 0x79d   :  { %v1517_v14 = vadd.f32 %v1502_v38, %v1501_v47 }
 0x7a0   :  { %v1459_v33 = vpop.f32.mrf.mxu1 }
 0x7a1   :  { %v4981_v13 = vadd.f32 %v1459_v33, %v4622_v2  ;;  %v5930_v33 = vld [vmem:[#allocation15_spill] sm:$0xff] }
 0x7a3   :  { %v1503_v40 = vmul.f32 %v4981_v13, %v4981_v13 }
 0x7a5   :  { %v1518_v30 = vadd.f32 %v1517_v14, %v1503_v40 }
 0x7a8   :  { %v1462_v34 = vpop.f32.mrf.mxu1 }
 0x7a9   :  { %v4986_v37 = vadd.f32 %v1462_v34, %v4626_v41 }
 0x7ab   :  { %v1504_v6 = vmul.f32 %v4986_v37, %v4986_v37 }
 0x7ad   :  { %v1519_v59 = vadd.f32 %v1518_v30, %v1504_v6 }
 0x7b0   :  { %v1465_v4 = vpop.f32.mrf.mxu1 }
 0x7b1   :  { %v4993_v58 = vadd.f32 %v1465_v4, %v4742_v5 }
 0x7b3   :  { %v1505_v21 = vmul.f32 %v4993_v58, %v4993_v58 }
 0x7b5   :  { %v1520_v24 = vadd.f32 %v1519_v59, %v1505_v21 }
 0x7b8   :  { %v1468_v29 = vpop.f32.mrf.mxu1 }
 0x7b9   :  { %v4998_v31 = vadd.f32 %v1468_v29, %v4668_v50 }
 0x7bb   :  { %v1506_v28 = vmul.f32 %v4998_v31, %v4998_v31 }
 0x7bd   :  { %v1521_v3 = vadd.f32 %v1520_v24, %v1506_v28 }
 0x7c0   :  { %v1471_v61 = vpop.f32.mrf.mxu1 }
 0x7c1   :  { %v5003_v44 = vadd.f32 %v1471_v61, %v4680_v16 }
 0x7c3   :  { %v1507_v27 = vmul.f32 %v5003_v44, %v5003_v44 }
 0x7c5   :  { %v1522_v46 = vadd.f32 %v1521_v3, %v1507_v27 }
 0x7c8   :  { %v1474_v25 = vpop.f32.mrf.mxu1 }
 0x7c9   :  { %v5008_v17 = vadd.f32 %v1474_v25, %v4794_v19 }
 0x7cb   :  { %v1508_v12 = vmul.f32 %v5008_v17, %v5008_v17 }
 0x7cd   :  { %v1523_v55 = vadd.f32 %v1522_v46, %v1508_v12 }
 0x7d0   :  { %v1477_v62 = vpop.f32.mrf.mxu1 }
 0x7d1   :  { %v5013_v60 = vadd.f32 %v1477_v62, %v5925_v7 }
 0x7d3   :  { %v1509_v18 = vmul.f32 %v5013_v60, %v5013_v60 }
 0x7d5   :  { %v1524_v63 = vadd.f32 %v1523_v55, %v1509_v18 }
 0x7d8   :  { %v1480_v36 = vpop.f32.mrf.mxu1 }
 0x7d9   :  { %v5018_v20 = vadd.f32 %v1480_v36, %v5926_v48 }
 0x7db   :  { %v1510_v11 = vmul.f32 %v5018_v20, %v5018_v20 }
 0x7dd   :  { %v1525_v56 = vadd.f32 %v1524_v63, %v1510_v11 }
 0x7e0   :  { %v1483_v10 = vpop.f32.mrf.mxu1 }
 0x7e1   :  { %v5023_v51 = vadd.f32 %v1483_v10, %v5927_v1  ;;  %v5931_v10 = vld [vmem:[#allocation16_spill] sm:$0xff] }
 0x7e3   :  { %v1511_v15 = vmul.f32 %v5023_v51, %v5023_v51 }
 0x7e5   :  { %v1526_v43 = vadd.f32 %v1525_v56, %v1511_v15 }
 0x7e8   :  { %v1486_v54 = vpop.f32.mrf.mxu1 }
 0x7e9   :  { %v5028_v23 = vadd.f32 %v1486_v54, %v5928_v45 }
 0x7eb   :  { %v1512_v57 = vmul.f32 %v5028_v23, %v5028_v23 }
 0x7ed   :  { %v1527_v4 = vadd.f32 %v1526_v43, %v1512_v57 }
 0x7f0   :  { %v1489_v26 = vpop.f32.mrf.mxu1 }
 0x7f1   :  { %v1490_v8 = vadd.f32 %v1489_v26, %v5929_v35 }
 0x7f3   :  { %v1513_v53 = vmul.f32 %v1490_v8, %v1490_v8 }
 0x7f5   :  { %v1528_v61 = vadd.f32 %v1527_v4, %v1513_v53 }
 0x7f8   :  { %v1492_v52 = vpop.f32.mrf.mxu1 }
 0x7f9   :  { %v1493_v9 = vadd.f32 %v1492_v52, %v4892_v32 }
 0x7fb   :  { %v1514_v29 = vmul.f32 %v1493_v9, %v1493_v9 }
 0x7fd   :  { %v1529_v36 = vadd.f32 %v1528_v61, %v1514_v29 }
 0x800   :  { %v1495_v49 = vpop.f32.mrf.mxu1 }
 0x801   :  { %v1496_v34 = vadd.f32 %v1495_v49, %v5930_v33 }
 0x803   :  { %v1515_v25 = vmul.f32 %v1496_v34, %v1496_v34 }
 0x805   :  { %v1530_v38 = vadd.f32 %v1529_v36, %v1515_v25 }
 0x808   :  { %v1498_v62 = vpop.f32.mrf.mxu1 }
 0x809   :  { %v1499_v54 = vadd.f32 %v1498_v62, %v5931_v10 }
 0x80b   :  { %v1516_v47 = vmul.f32 %v1499_v54, %v1499_v54 }
 0x80d   :  { %v1531_v40 = vadd.f32 %v1530_v38, %v1516_v47  ;;  %v3254_v47 = vld [vmem:[%s5846_s1 + $0x38] sm:$0xff] }
 0x80f   :  { %v1532_v26 = vrot.slane %v1531_v40, 4 }
 0x811   :  { %v1533_v14 = vadd.f32 %v1532_v26, %v1531_v40  ;;  %v3253_v40 = vld [vmem:[%s5846_s1 + $0x30] sm:$0xff]  ;;  %v3252_v26 = vld [vmem:[%s5846_s1 + $0x28] sm:$0xff] }
 0x813   :  { %v1534_v6 = vrot.slane %v1533_v14, 2 }
 0x815   :  { %v1535_v30 = vadd.f32 %v1534_v6, %v1533_v14  ;;  %v3251_v14 = vld [vmem:[%s5846_s1 + $0x20] sm:$0xff] }
 0x816   :  { %v5065_v6 = vld [vmem:[%s5847_s5] sm:$0xff] }
 0x817   :  { %v1536_v21 = vrot.slane %v1535_v30, 1 }
 0x819   :  { %v1537_v59 = vadd.f32 %v1536_v21, %v1535_v30  ;;  %v5074_v21 = vld [vmem:[%s5847_s5 + $0x8] sm:$0xff] }
 0x81b   :  { %v1538_v28 = vmax.f32 %v1537_v59, 1e-24 }
 0x81d   :  { %3465 = vrsqrt.f32 %v1538_v28  ;;  %vm1545_vm2 = vweird.f32 %v1538_v28 }
 0x823   :  { %v3466_v24 = vpop.eup %3465 }
 0x824   :  { %v1540_v27 = vmul.f32 %v3466_v24, %v1538_v28  ;;  %vm1546_vm1 = vweird.f32 %v3466_v24  ;;  %v5083_v28 = vld [vmem:[%s5847_s5 + $0x10] sm:$0xff] }
 0x825   :  { %vm1547_vm3 = vmor %vm1545_vm2, %vm1546_vm1 }
 0x826   :  { %v1541_v52 = vmul.f32 %v3466_v24, %v1540_v27  ;;  %v5090_v27 = vld [vmem:[%s5847_s5 + $0x18] sm:$0xff] }
 0x828   :  { %v1542_v3 = vmul.f32 0.5, %v1541_v52 }
 0x82a   :  { %v1543_v12 = vsub.f32 1.5, %v1542_v3  ;;  %v5099_v3 = vld [vmem:[%s5847_s5 + $0x20] sm:$0xff] }
 0x82c   :  { %v1544_v46 = vmul.f32 %v3466_v24, %v1543_v12 }
 0x82e   :  { %v1548_v18 = vsel %vm1547_vm3, %v3466_v24, %v1544_v46  ;;  %v5106_v46 = vld [vmem:[%s5847_s5 + $0x28] sm:$0xff] }
 0x82f   :  { %v1564_v55 = vmul.f32 %v1548_v18, %v1499_v54  ;;  %v1549_v11 = vmul.f32 %v1548_v18, %v4978_v0  ;;  %v1561_v63 = vmul.f32 %v1548_v18, %v1490_v8  ;;  %v1562_v15 = vmul.f32 %v1548_v18, %v1493_v9 }
 0x830   :  { %v1563_v49 = vmul.f32 %v1548_v18, %v1496_v34  ;;  %v1550_v56 = vmul.f32 %v1548_v18, %v4975_v39  ;;  %v1551_v57 = vmul.f32 %v1548_v18, %v4981_v13  ;;  %v1552_v43 = vmul.f32 %v1548_v18, %v4986_v37 }
 0x831   :  { %1565 = vxpose.xlu1.b32.start [1/16] %v1549_v11, 128  ;;  %v1553_v53 = vmul.f32 %v1548_v18, %v4993_v58  ;;  %v1554_v4 = vmul.f32 %v1548_v18, %v4998_v31  ;;  %v1555_v0 = vmul.f32 %v1548_v18, %v5003_v44  ;;  %v1556_v8 = vmul.f32 %v1548_v18, %v5008_v17 }
 0x832   :  { %v1557_v39 = vmul.f32 %v1548_v18, %v5013_v60  ;;  %v1558_v13 = vmul.f32 %v1548_v18, %v5018_v20  ;;  %v1559_v37 = vmul.f32 %v1548_v18, %v5023_v51  ;;  %v1560_v58 = vmul.f32 %v1548_v18, %v5028_v23 }
 0x839   :  { %1566 = vxpose.xlu1.b32.cont [2/16] %v1550_v56, 128 }
 0x841   :  { %1567 = vxpose.xlu1.b32.cont [3/16] %v1551_v57, 128  ;;  %v5134_v57 = vld [vmem:[%s5847_s5 + $0x48] sm:$0xff] }
 0x842   :  { %5934 = vst [vmem:[#allocation4_spill] sm:$0xff] %v5134_v57 }
 0x849   :  { %1568 = vxpose.xlu1.b32.cont [4/16] %v1552_v43, 128 }
 0x851   :  { %1569 = vxpose.xlu1.b32.cont [5/16] %v1553_v53, 128  ;;  %v5141_v53 = vld [vmem:[%s5847_s5 + $0x50] sm:$0xff] }
 0x852   :  { %5935 = vst [vmem:[#allocation5_spill] sm:$0xff] %v5141_v53 }
 0x859   :  { %1570 = vxpose.xlu1.b32.cont [6/16] %v1554_v4, 128 }
 0x861   :  { %1571 = vxpose.xlu1.b32.cont [7/16] %v1555_v0, 128  ;;  %v5148_v0 = vld [vmem:[%s5847_s5 + $0x58] sm:$0xff] }
 0x862   :  { %5936 = vst [vmem:[#allocation6_spill] sm:$0xff] %v5148_v0 }
 0x869   :  { %1572 = vxpose.xlu1.b32.cont [8/16] %v1556_v8, 128 }
 0x871   :  { %1573 = vxpose.xlu1.b32.cont [9/16] %v1557_v39, 128  ;;  %v5155_v39 = vld [vmem:[%s5847_s5 + $0x60] sm:$0xff] }
 0x872   :  { %5937 = vst [vmem:[#allocation7_spill] sm:$0xff] %v5155_v39 }
 0x879   :  { %1574 = vxpose.xlu1.b32.cont [10/16] %v1558_v13, 128 }
 0x881   :  { %1575 = vxpose.xlu1.b32.cont [11/16] %v1559_v37, 128  ;;  %v5162_v37 = vld [vmem:[%s5847_s5 + $0x68] sm:$0xff] }
 0x882   :  { %5938 = vst [vmem:[#allocation8_spill] sm:$0xff] %v5162_v37 }
 0x889   :  { %1576 = vxpose.xlu1.b32.cont [12/16] %v1560_v58, 128 }
 0x891   :  { %1577 = vxpose.xlu1.b32.cont [13/16] %v1561_v63, 128  ;;  %v5120_v63 = vld [vmem:[%s5847_s5 + $0x38] sm:$0xff] }
 0x892   :  { %5932 = vst [vmem:[#allocation2_spill] sm:$0xff] %v5120_v63 }
 0x899   :  { %1578 = vxpose.xlu1.b32.cont [14/16] %v1562_v15, 128 }
 0x8a1   :  { %1579 = vxpose.xlu1.b32.cont [15/16] %v1563_v49, 128  ;;  %v5127_v49 = vld [vmem:[%s5847_s5 + $0x40] sm:$0xff] }
 0x8a2   :  { %5933 = vst [vmem:[#allocation3_spill] sm:$0xff] %v5127_v49 }
 0x8a9   :  { %1580 = vxpose.xlu1.b32.end [16/16] %v1564_v55, 128  ;;  %v5113_v55 = vld [vmem:[%s5847_s5 + $0x30] sm:$0xff] }
 0x8d5   :  { %v1581_v31 = vpop.trf.xlu1 }
 0x8d6   :  { %v1597_v44 = vmul.f32 30.0, %v1581_v31  ;;  %v5169_v31 = vld [vmem:[%s5847_s5 + $0x70] sm:$0xff] }
 0x8d7   :  { %5939 = vst [vmem:[#allocation9_spill] sm:$0xff] %v5169_v31 }
 0x8d8   :  { %1778 = vmatmul.f32.vlgmr.msrb.gmra.mxu3 %v1597_v44 }
 0x8d9   :  { %2374 = vmatpush.msrb.mxu3 %v3254_v47 }
 0x8db   :  { %2375 = vmatpush.msrb.mxu3 %v3253_v40 }
 0x8dd   :  { %v1582_v17 = vpop.trf.xlu1  ;;  %2376 = vmatpush.msrb.mxu3 %v3252_v26 }
 0x8de   :  { %v1598_v9 = vmul.f32 30.0, %v1582_v17  ;;  %v5177_v17 = vld [vmem:[%s5847_s5 + $0x78] sm:$0xff] }
 0x8df   :  { %2377 = vmatpush.msrb.mxu3 %v3251_v14  ;;  %5940 = vst [vmem:[#allocation10_spill] sm:$0xff] %v5177_v17 }
 0x8e0   :  { %1781 = vmatmul.f32.gmra.mxu3 %v1598_v9 }
 0x8e5   :  { %v1583_v60 = vpop.trf.xlu1 }
 0x8e6   :  { %v1599_v34 = vmul.f32 30.0, %v1583_v60 }
 0x8e8   :  { %1784 = vmatmul.f32.gmra.mxu3 %v1599_v34 }
 0x8ed   :  { %v1584_v20 = vpop.trf.xlu1 }
 0x8ee   :  { %v1600_v29 = vmul.f32 30.0, %v1584_v20 }
 0x8f0   :  { %1787 = vmatmul.f32.gmra.mxu3 %v1600_v29 }
 0x8f5   :  { %v1585_v51 = vpop.trf.xlu1 }
 0x8f6   :  { %v1601_v61 = vmul.f32 30.0, %v1585_v51 }
 0x8f8   :  { %1790 = vmatmul.f32.gmra.mxu3 %v1601_v61 }
 0x8fd   :  { %v1586_v23 = vpop.trf.xlu1 }
 0x8fe   :  { %v1602_v25 = vmul.f32 30.0, %v1586_v23 }
 0x900   :  { %1793 = vmatmul.f32.gmra.mxu3 %v1602_v25 }
 0x905   :  { %v1587_v62 = vpop.trf.xlu1 }
 0x906   :  { %v1603_v36 = vmul.f32 30.0, %v1587_v62 }
 0x908   :  { %1796 = vmatmul.f32.gmra.mxu3 %v1603_v36 }
 0x90d   :  { %v1588_v54 = vpop.trf.xlu1 }
 0x90e   :  { %v1604_v38 = vmul.f32 30.0, %v1588_v54 }
 0x910   :  { %1799 = vmatmul.f32.gmra.mxu3 %v1604_v38 }
 0x918   :  { %1969 = vmatmul.f32.vlgmr.msra.gmra.mxu3 %v1597_v44 }
 0x920   :  { %1972 = vmatmul.f32.gmra.mxu3 %v1598_v9 }
 0x928   :  { %1975 = vmatmul.f32.gmra.mxu3 %v1599_v34 }
 0x930   :  { %1978 = vmatmul.f32.gmra.mxu3 %v1600_v29 }
 0x938   :  { %1981 = vmatmul.f32.gmra.mxu3 %v1601_v61 }
 0x940   :  { %1984 = vmatmul.f32.gmra.mxu3 %v1602_v25 }
 0x948   :  { %1987 = vmatmul.f32.gmra.mxu3 %v1603_v36 }
 0x950   :  { %1990 = vmatmul.f32.gmra.mxu3 %v1604_v38 }
 0x958   :  { %3255 = vmatmul.msk.f32.vlgmr.msrb.gmra.mxu3 %vm142_vm0, %v5065_v6 }
 0x95b   :  { %v5069_v30 = vpop.f32.mrf.mxu3 }
 0x960   :  { %3256 = vmatmul.msk.f32.gmra.mxu3 %vm142_vm0, %v5074_v21 }
 0x963   :  { %v5078_v59 = vpop.f32.mrf.mxu3 }
 0x968   :  { %3257 = vmatmul.msk.f32.gmra.mxu3 %vm142_vm0, %v5083_v28 }
 0x96b   :  { %v1785_v24 = vpop.f32.mrf.mxu3 }
 0x970   :  { %3258 = vmatmul.msk.f32.gmra.mxu3 %vm142_vm0, %v5090_v27 }
 0x973   :  { %v5094_v52 = vpop.f32.mrf.mxu3 }
 0x978   :  { %3259 = vmatmul.msk.f32.gmra.mxu3 %vm142_vm0, %v5099_v3 }
 0x97b   :  { %v1791_v12 = vpop.f32.mrf.mxu3 }
 0x980   :  { %3260 = vmatmul.msk.f32.gmra.mxu3 %vm142_vm0, %v5106_v46 }
 0x983   :  { %v1794_v18 = vpop.f32.mrf.mxu3 }
 0x988   :  { %3261 = vmatmul.msk.f32.gmra.mxu3 %vm142_vm0, %v5113_v55 }
 0x98b   :  { %v1797_v11 = vpop.f32.mrf.mxu3 }
 0x990   :  { %3262 = vmatmul.msk.f32.gmra.mxu3 %vm142_vm0, %v5120_v63 }
 0x993   :  { %v1800_v15 = vpop.f32.mrf.mxu3 }
 0x998   :  { %3263 = vmatmul.msk.f32.gmra.mxu3 %vm142_vm0, %v5127_v49 }
 0x99b   :  { %v1970_v56 = vpop.f32.mrf.mxu3 }
 0x9a0   :  { %3264 = vmatmul.msk.f32.gmra.mxu3 %vm142_vm0, %v5134_v57 }
 0x9a3   :  { %v1973_v43 = vpop.f32.mrf.mxu3 }
 0x9a8   :  { %3265 = vmatmul.msk.f32.gmra.mxu3 %vm142_vm0, %v5141_v53 }
 0x9ab   :  { %v1976_v4 = vpop.f32.mrf.mxu3 }
 0x9b0   :  { %3266 = vmatmul.msk.f32.gmra.mxu3 %vm142_vm0, %v5148_v0 }
 0x9b3   :  { %v1979_v8 = vpop.f32.mrf.mxu3 }
 0x9b8   :  { %3267 = vmatmul.msk.f32.gmra.mxu3 %vm142_vm0, %v5155_v39 }
 0x9bb   :  { %v1982_v13 = vpop.f32.mrf.mxu3 }
 0x9c0   :  { %3268 = vmatmul.msk.f32.gmra.mxu3 %vm142_vm0, %v5162_v37 }
 0x9c3   :  { %v1985_v58 = vpop.f32.mrf.mxu3 }
 0x9c8   :  { %3269 = vmatmul.msk.f32.gmra.mxu3 %vm142_vm0, %v5169_v31 }
 0x9cb   :  { %v1988_v44 = vpop.f32.mrf.mxu3 }
 0x9cc   :  { %2014 = vrot.lane.b32.xlu2 %v1988_v44, %s3556_s3 }
 0x9d0   :  { %3270 = vmatmul.msk.f32.gmra.mxu3 %vm142_vm0, %v5177_v17 }
 0x9d3   :  { %v1991_v9 = vpop.f32.mrf.mxu3 }
 0x9d4   :  { %2010 = vrot.lane.b32.xlu2 %v1982_v13, %s3556_s3  ;;  %2016 = vrot.lane.b32.xlu0 %v1991_v9, %s3556_s3 }
 0x9dc   :  { %2006 = vrot.lane.b32.xlu2 %v1976_v4, %s3556_s3  ;;  %2012 = vrot.lane.b32.xlu0 %v1985_v58, %s3556_s3 }
 0x9e4   :  { %2002 = vrot.lane.b32.xlu2 %v1970_v56, %s3556_s3  ;;  %2008 = vrot.lane.b32.xlu0 %v1979_v8, %s3556_s3 }
 0x9ec   :  { %2004 = vrot.lane.b32.xlu0 %v1973_v43, %s3556_s3 }
 0xa26   :  { %v2015_v60 = vpop.permute.xlu2 %2014 }
 0xa27   :  { %v2032_v34 = vsel %vm409_vm4, %v1797_v11, %v2015_v60 }
 0xa28   :  { %2046 = vmax.xlane.f32.xlu2 %v2032_v34 }
 0xa2e   :  { %v2011_v20 = vpop.permute.xlu2 %2010 }
 0xa2f   :  { %v2030_v29 = vsel %vm409_vm4, %v1791_v12, %v2011_v20 }
 0xa30   :  { %2042 = vmax.xlane.f32.xlu2 %v2030_v29 }
 0xa36   :  { %v2007_v51 = vpop.permute.xlu2 %2006 }
 0xa37   :  { %v2028_v61 = vsel %vm409_vm4, %v1785_v24, %v2007_v51 }
 0xa38   :  { %2038 = vmax.xlane.f32.xlu2 %v2028_v61 }
 0xa3e   :  { %v2003_v23 = vpop.permute.xlu2 %2002 }
 0xa3f   :  { %v2026_v25 = vsel %vm409_vm4, %v5069_v30, %v2003_v23 }
 0xa40   :  { %2034 = vmax.xlane.f32.xlu2 %v2026_v25 }
 0xa46   :  { %v2017_v62 = vpop.permute.xlu0 %2016 }
 0xa47   :  { %v2033_v36 = vsel %vm409_vm4, %v1800_v15, %v2017_v62 }
 0xa48   :  { %2048 = vmax.xlane.f32.xlu0 %v2033_v36 }
 0xa4e   :  { %v2013_v54 = vpop.permute.xlu0 %2012 }
 0xa4f   :  { %v2031_v38 = vsel %vm409_vm4, %v1794_v18, %v2013_v54 }
 0xa50   :  { %2044 = vmax.xlane.f32.xlu0 %v2031_v38 }
 0xa56   :  { %v2009_v47 = vpop.permute.xlu0 %2008 }
 0xa57   :  { %v2029_v40 = vsel %vm409_vm4, %v5094_v52, %v2009_v47 }
 0xa58   :  { %2040 = vmax.xlane.f32.xlu0 %v2029_v40 }
 0xa5e   :  { %v2005_v26 = vpop.permute.xlu0 %2004 }
 0xa5f   :  { %v2027_v14 = vsel %vm409_vm4, %v5078_v59, %v2005_v26 }
 0xa60   :  { %2036 = vmax.xlane.f32.xlu0 %v2027_v14 }
 0xa9b   :  { %v2047_v30 = vpop.xlane.xlu2 %2046 }
 0xa9c   :  { %v2056_v24 = vsub.f32 %v2032_v34, %v2047_v30 }
 0xa9e   :  { %v2070_v12 = vmul.f32 1.442695, %v2056_v24 }
 0xaa0   :  { %3467 = vpow2.f32 %v2070_v12  ;;  %v5223_v12 = vpop.f32.mrf.mxu3 }
 0xaa3   :  { %v2043_v11 = vpop.xlane.xlu2 %2042 }
 0xaa4   :  { %v2054_v15 = vsub.f32 %v2030_v29, %v2043_v11 }
 0xaa6   :  { %v5199_v56 = vpop.eup %3467  ;;  %v2066_v18 = vmul.f32 1.442695, %v2054_v15 }
 0xaa7   :  { %2086 = vadd.xlane.f32.xlu2 %v5199_v56 }
 0xaa8   :  { %3469 = vpow2.f32 %v2066_v18 }
 0xaab   :  { %v2039_v43 = vpop.xlane.xlu2 %2038 }
 0xaac   :  { %v2052_v52 = vsub.f32 %v2028_v61, %v2039_v43 }
 0xaae   :  { %v5202_v4 = vpop.eup %3469  ;;  %v2062_v8 = vmul.f32 1.442695, %v2052_v52 }
 0xaaf   :  { %2082 = vadd.xlane.f32.xlu2 %v5202_v4 }
 0xab0   :  { %3471 = vpow2.f32 %v2062_v8 }
 0xab3   :  { %v2035_v59 = vpop.xlane.xlu2 %2034 }
 0xab4   :  { %v2050_v13 = vsub.f32 %v2026_v25, %v2035_v59 }
 0xab6   :  { %v5205_v58 = vpop.eup %3471  ;;  %v2058_v44 = vmul.f32 1.442695, %v2050_v13 }
 0xab7   :  { %2078 = vadd.xlane.f32.xlu2 %v5205_v58 }
 0xab8   :  { %3473 = vpow2.f32 %v2058_v44 }
 0xabb   :  { %v2049_v9 = vpop.xlane.xlu0 %2048 }
 0xabc   :  { %v2057_v60 = vsub.f32 %v2033_v36, %v2049_v9 }
 0xabe   :  { %v5208_v34 = vpop.eup %3473  ;;  %v2072_v20 = vmul.f32 1.442695, %v2057_v60 }
 0xabf   :  { %2074 = vadd.xlane.f32.xlu2 %v5208_v34 }
 0xac0   :  { %3475 = vpow2.f32 %v2072_v20 }
 0xac3   :  { %v2045_v29 = vpop.xlane.xlu0 %2044 }
 0xac4   :  { %v2055_v51 = vsub.f32 %v2031_v38, %v2045_v29 }
 0xac6   :  { %v5211_v61 = vpop.eup %3475  ;;  %v2068_v23 = vmul.f32 1.442695, %v2055_v51 }
 0xac7   :  { %2088 = vadd.xlane.f32.xlu0 %v5211_v61 }
 0xac8   :  { %3477 = vpow2.f32 %v2068_v23 }
 0xacb   :  { %v2041_v25 = vpop.xlane.xlu0 %2040 }
 0xacc   :  { %v2053_v62 = vsub.f32 %v2029_v40, %v2041_v25  ;;  %v5225_v40 = vpop.f32.mrf.mxu3 }
 0xace   :  { %v5214_v54 = vpop.eup %3477  ;;  %v2064_v47 = vmul.f32 1.442695, %v2053_v62 }
 0xacf   :  { %2084 = vadd.xlane.f32.xlu0 %v5214_v54 }
 0xad0   :  { %3479 = vpow2.f32 %v2064_v47 }
 0xad3   :  { %v2037_v36 = vpop.xlane.xlu0 %2036 }
 0xad4   :  { %v2051_v26 = vsub.f32 %v2027_v14, %v2037_v36  ;;  %v5227_v11 = vpop.f32.mrf.mxu3 }
 0xad6   :  { %v5217_v30 = vpop.eup %3479  ;;  %v2060_v24 = vmul.f32 1.442695, %v2051_v26 }
 0xad7   :  { %2080 = vadd.xlane.f32.xlu0 %v5217_v30 }
 0xad8   :  { %3481 = vpow2.f32 %v2060_v24 }
 0xadc   :  { %v5229_v18 = vpop.f32.mrf.mxu3 }
 0xade   :  { %v5220_v38 = vpop.eup %3481 }
 0xadf   :  { %2076 = vadd.xlane.f32.xlu0 %v5220_v38 }
 0xae4   :  { %v5233_v59 = vpop.f32.mrf.mxu3 }
 0xaec   :  { %v5240_v62 = vpop.f32.mrf.mxu3 }
 0xaf4   :  { %v5244_v26 = vpop.f32.mrf.mxu3 }
 0xafc   :  { %v5250_v17 = vpop.f32.mrf.mxu3 }
 0xb04   :  { %v5264_v53 = vpop.f32.mrf.mxu3 }
 0xb1a   :  { %v2087_v15 = vpop.xlane.xlu2 %2086 }
 0xb1b   :  { %3483 = vrcp.f32 %v2087_v15  ;;  %v2191_v44 = vand.u32 2147483648, %v2087_v15  ;;  %v2189_v9 = vand.u32 2147483647, %v2087_v15  ;;  %vm2185_vm6 = vweird.f32 %v2087_v15 }
 0xb1d   :  { %v2192_v20 = vor.u32 1.1754944e-38, %v2191_v44  ;;  %vm2190_vm8 = vcmp.eq.f32.partialorder %v2189_v9, 8.507059e+37 }
 0xb21   :  { %v3484_v14 = vpop.eup %3483 }
 0xb22   :  { %v2181_v43 = vmul.f32 %v3484_v14, %v2087_v15  ;;  %v5231_v52 = vpop.xlane.xlu2 %2082  ;;  %vm2186_vm5 = vweird.f32 %v3484_v14 }
 0xb23   :  { %vm2187_vm7 = vmor %vm2185_vm6, %vm2186_vm5  ;;  %vm2155_vm6 = vweird.f32 %v5231_v52 }
 0xb24   :  { %v2182_v8 = vsub.f32 1.0, %v2181_v43 }
 0xb26   :  { %v2183_v13 = vmul.f32 %v3484_v14, %v2182_v8 }
 0xb28   :  { %v2184_v60 = vadd.f32 %v3484_v14, %v2183_v13 }
 0xb2a   :  { %v5235_v29 = vpop.xlane.xlu2 %2078  ;;  %v2188_v51 = vsel %vm2187_vm7, %v3484_v14, %v2184_v60 }
 0xb2b   :  { %v2193_v23 = vsel %vm2190_vm8, %v2192_v20, %v2188_v51 }
 0xb2c   :  { %v5238_v25 = vmul.f32 %v5199_v56, %v2193_v23 }
 0xb2e   :  { %2239 = vrot.lane.b32.xlu2 %v5238_v25, %s3556_s3 }
 0xb32   :  { %v2075_v47 = vpop.xlane.xlu2 %2074 }
 0xb33   :  { %3485 = vrcp.f32 %v2075_v47  ;;  %v2101_v56 = vand.u32 2147483648, %v2075_v47  ;;  %v2099_v8 = vand.u32 2147483647, %v2075_v47  ;;  %vm2095_vm10 = vweird.f32 %v2075_v47 }
 0xb34   :  { %3487 = vrcp.f32 %v5231_v52 }
 0xb35   :  { %v2102_v60 = vor.u32 1.1754944e-38, %v2101_v56  ;;  %vm2100_vm12 = vcmp.eq.f32.partialorder %v2099_v8, 8.507059e+37 }
 0xb39   :  { %v3486_v36 = vpop.eup %3485 }
 0xb3a   :  { %v2091_v24 = vmul.f32 %v3486_v36, %v2075_v47  ;;  %v2089_v15 = vpop.xlane.xlu0 %2088  ;;  %vm2096_vm9 = vweird.f32 %v3486_v36  ;;  %v5247_v13 = vpop.eup %3487 }
 0xb3b   :  { %3489 = vrcp.f32 %v2089_v15  ;;  %vm2097_vm11 = vmor %vm2095_vm10, %vm2096_vm9  ;;  %v2206_v37 = vand.u32 2147483648, %v2089_v15  ;;  %v2204_v56 = vand.u32 2147483647, %v2089_v15  ;;  %vm2200_vm14 = vweird.f32 %v2089_v15 }
 0xb3c   :  { %v2092_v14 = vsub.f32 1.0, %v2091_v24  ;;  %3491 = vrcp.f32 %v5235_v29  ;;  %v2151_v24 = vmul.f32 %v5247_v13, %v5231_v52  ;;  %vm2156_vm3 = vweird.f32 %v5247_v13 }
 0xb3d   :  { %v2207_v8 = vor.u32 1.1754944e-38, %v2206_v37  ;;  %vm2205_vm1 = vcmp.eq.f32.partialorder %v2204_v56, 8.507059e+37  ;;  %v2161_v56 = vand.u32 2147483648, %v5231_v52  ;;  %vm5274_vm8 = vmor %vm2155_vm6, %vm2156_vm3 }
 0xb3e   :  { %v2093_v43 = vmul.f32 %v3486_v36, %v2092_v14  ;;  %v2152_v39 = vsub.f32 1.0, %v2151_v24 }
 0xb40   :  { %v2094_v44 = vadd.f32 %v3486_v36, %v2093_v43 }
 0xb41   :  { %v3490_v9 = vpop.eup %3489 }
 0xb42   :  { %v2196_v20 = vmul.f32 %v3490_v9, %v2089_v15  ;;  %v2085_v51 = vpop.xlane.xlu0 %2084  ;;  %v2098_v23 = vsel %vm2097_vm11, %v3486_v36, %v2094_v44  ;;  %vm2201_vm13 = vweird.f32 %v3490_v9  ;;  %v5259_v36 = vpop.eup %3491 }
 0xb43   :  { %3493 = vrcp.f32 %v2085_v51  ;;  %v2103_v31 = vsel %vm2100_vm12, %v2102_v60, %v2098_v23  ;;  %vm2202_vm15 = vmor %vm2200_vm14, %vm2201_vm13  ;;  %v2176_v57 = vand.u32 2147483648, %v2085_v51  ;;  %vm2170_vm5 = vweird.f32 %v2085_v51 }
 0xb44   :  { %v2197_v14 = vsub.f32 1.0, %v2196_v20  ;;  %v5255_v43 = vmul.f32 %v5208_v34, %v2103_v31  ;;  %v2153_v31 = vmul.f32 %v5247_v13, %v2152_v39  ;;  %v2121_v34 = vmul.f32 %v5259_v36, %v5235_v29 }
 0xb45   :  { %v2174_v39 = vand.u32 2147483647, %v2085_v51  ;;  %vm2126_vm12 = vweird.f32 %v5259_v36  ;;  %vm2125_vm14 = vweird.f32 %v5235_v29 }
 0xb46   :  { %v2198_v47 = vmul.f32 %v3490_v9, %v2197_v14  ;;  %2227 = vrot.lane.b32.xlu1 %v5255_v43, %s3556_s3  ;;  %v2154_v37 = vadd.f32 %v5247_v13, %v2153_v31 }
 0xb47   :  { %vm2175_vm9 = vcmp.eq.f32.partialorder %v2174_v39, 8.507059e+37  ;;  %v5285_v39 = vpop.f32.mrf.mxu3 }
 0xb48   :  { %v2199_v44 = vadd.f32 %v3490_v9, %v2198_v47 }
 0xb49   :  { %v3494_v0 = vpop.eup %3493 }
 0xb4a   :  { %v2166_v20 = vmul.f32 %v3494_v0, %v2085_v51  ;;  %v2081_v60 = vpop.xlane.xlu0 %2080  ;;  %v2203_v23 = vsel %vm2202_vm15, %v3490_v9, %v2199_v44  ;;  %vm2171_vm2 = vweird.f32 %v3494_v0  ;;  %v2122_v9 = vsub.f32 1.0, %v2121_v34 }
 0xb4b   :  { %3495 = vrcp.f32 %v2081_v60  ;;  %v2208_v14 = vsel %vm2205_vm1, %v2207_v8, %v2203_v23  ;;  %vm2172_vm7 = vmor %vm2170_vm5, %vm2171_vm2  ;;  %v2177_v23 = vor.u32 1.1754944e-38, %v2176_v57  ;;  %v2162_v51 = vor.u32 1.1754944e-38, %v2161_v56 }
 0xb4c   :  { %v2167_v24 = vsub.f32 1.0, %v2166_v20  ;;  %v2209_v47 = vmul.f32 %v5211_v61, %v2208_v14  ;;  %v2159_v61 = vand.u32 2147483647, %v5231_v52  ;;  %v2123_v14 = vmul.f32 %v5259_v36, %v2122_v9  ;;  %vm5295_vm1 = vmor %vm2125_vm14, %vm2126_vm12 }
 0xb4d   :  { %v2158_v52 = vsel %vm5274_vm8, %v5247_v13, %v2154_v37  ;;  %v2146_v49 = vand.u32 2147483648, %v2081_v60  ;;  %v2131_v13 = vand.u32 2147483648, %v5235_v29  ;;  %vm2140_vm13 = vweird.f32 %v2081_v60 }
 0xb4e   :  { %v2168_v15 = vmul.f32 %v3494_v0, %v2167_v24  ;;  %2241 = vrot.lane.b32.xlu0 %v2209_v47, %s3556_s3  ;;  %3239 = vmatpush.xpose.msk.msrb.mxu2 %vm409_vm4, %v2209_v47  ;;  %vm2160_vm10 = vcmp.eq.f32.partialorder %v2159_v61, 8.507059e+37 }
 0xb4f   :  { %v2163_v9 = vsel %vm2160_vm10, %v2162_v51, %v2158_v52 }
 0xb50   :  { %v2169_v44 = vadd.f32 %v3494_v0, %v2168_v15  ;;  %v2164_v61 = vmul.f32 %v5202_v4, %v2163_v9 }
 0xb51   :  { %v3496_v8 = vpop.eup %3495 }
 0xb52   :  { %v2136_v31 = vmul.f32 %v3496_v8, %v2081_v60  ;;  %v2077_v34 = vpop.xlane.xlu0 %2076  ;;  %v2173_v24 = vsel %vm2172_vm7, %v3494_v0, %v2169_v44  ;;  %3240 = vmatpush.xpose.msk.msrb.mxu2 %vm409_vm4, %v5238_v25  ;;  %vm2141_vm11 = vweird.f32 %v3496_v8  ;;  %v2144_v0 = vand.u32 2147483647, %v2081_v60 }
 0xb53   :  { %3497 = vrcp.f32 %v2077_v34  ;;  %v2178_v15 = vsel %vm2175_vm9, %v2177_v23, %v2173_v24  ;;  %v2124_v25 = vadd.f32 %v5259_v36, %v2123_v14  ;;  %vm2142_vm15 = vmor %vm2140_vm13, %vm2141_vm11  ;;  %v2147_v44 = vor.u32 1.1754944e-38, %v2146_v49 }
 0xb54   :  { %v2137_v47 = vsub.f32 1.0, %v2136_v31  ;;  %v2179_v57 = vmul.f32 %v5214_v54, %v2178_v15  ;;  %v2129_v54 = vand.u32 2147483647, %v5235_v29  ;;  %vm2145_vm2 = vcmp.eq.f32.partialorder %v2144_v0, 8.507059e+37 }
 0xb55   :  { %v2128_v60 = vsel %vm5295_vm1, %v5259_v36, %v2124_v25  ;;  %v2132_v24 = vor.u32 1.1754944e-38, %v2131_v13  ;;  %v2116_v4 = vand.u32 2147483648, %v2077_v34  ;;  %v2114_v52 = vand.u32 2147483647, %v2077_v34  ;;  %v3272_v25 = vld [vmem:[%s5846_s1 + $0x68] sm:$0xff] }
 0xb56   :  { %v2138_v63 = vmul.f32 %v3496_v8, %v2137_v47  ;;  %2237 = vrot.lane.b32.xlu0 %v2179_v57, %s3556_s3  ;;  %3241 = vmatpush.xpose.msk.msrb.mxu2 %vm409_vm4, %v2179_v57  ;;  %vm2130_vm3 = vcmp.eq.f32.partialorder %v2129_v54, 8.507059e+37  ;;  %vm2110_vm6 = vweird.f32 %v2077_v34  ;;  %v5307_v47 = vpop.f32.mrf.mxu3  ;;  %v2211_v13 = vld [vmem:[%s5849_s2 + $0x8] sm:$0xff]  ;;  %v2212_v54 = vld [vmem:[%s5849_s2 + $0x10] sm:$0xff] }
 0xb57   :  { %v2133_v51 = vsel %vm2130_vm3, %v2132_v24, %v2128_v60  ;;  %v2117_v36 = vor.u32 1.1754944e-38, %v2116_v4  ;;  %vm2115_vm8 = vcmp.eq.f32.partialorder %v2114_v52, 8.507059e+37  ;;  %v2213_v24 = vld [vmem:[%s5849_s2 + $0x18] sm:$0xff]  ;;  %v5383_v4 = vadd.f32 %v5244_v26, %v4680_v16 }
 0xb58   :  { %v2139_v37 = vadd.f32 %v3496_v8, %v2138_v63  ;;  %v5398_v26 = vadd.f32 %v5264_v53, %v5925_v7  ;;  %v5412_v53 = vadd.f32 %v5307_v47, %v5927_v1 }
 0xb59   :  { %v3498_v56 = vpop.eup %3497 }
 0xb5a   :  { %v2106_v23 = vmul.f32 %v3498_v56, %v2077_v34  ;;  %v2143_v31 = vsel %vm2142_vm15, %v3496_v8, %v2139_v37  ;;  %3242 = vmatpush.xpose.msk.msrb.mxu2 %vm409_vm4, %v2164_v61  ;;  %vm2111_vm5 = vweird.f32 %v3498_v56  ;;  %v3274_v34 = vld [vmem:[%s5846_s1 + $0x78] sm:$0xff] }
 0xb5b   :  { %v2148_v63 = vsel %vm2145_vm2, %v2147_v44, %v2143_v31  ;;  %vm2112_vm7 = vmor %vm2110_vm6, %vm2111_vm5  ;;  %v5346_v44 = vadd.f32 %v5223_v12, %v4682_v42 }
 0xb5c   :  { %v2107_v29 = vsub.f32 1.0, %v2106_v23  ;;  %v2149_v49 = vmul.f32 %v5217_v30, %v2148_v63  ;;  %v2134_v30 = vmul.f32 %v5205_v58, %v2133_v51  ;;  %v2210_v58 = vld [vmem:[%s5849_s2] sm:$0xff]  ;;  %v5356_v23 = vadd.f32 %v5229_v18, %v4626_v41 }
 0xb5d   :  { %v2427_v31 = vmul.f32 %v5346_v44, %v5346_v44  ;;  %v5372_v18 = vadd.f32 %v5240_v62, %v4668_v50  ;;  %v5390_v51 = vadd.f32 %v5250_v17, %v4794_v19 }
 0xb5e   :  { %v2108_v14 = vmul.f32 %v3498_v56, %v2107_v29  ;;  %2233 = vrot.lane.b32.xlu2 %v2149_v49, %s3556_s3  ;;  %2235 = vrot.lane.b32.xlu0 %v2164_v61, %s3556_s3  ;;  %v2412_v9 = vpop.f32.mrf.mxu3  ;;  %v5350_v61 = vadd.f32 %v5227_v11, %v4622_v2  ;;  %v5365_v11 = vadd.f32 %v5233_v59, %v4742_v5 }
 0xb5f   :  { %3243 = vmatpush.xpose.msk.msrb.mxu2 %vm409_vm4, %v2149_v49  ;;  %v2430_v60 = vmul.f32 %v5356_v23, %v5356_v23  ;;  %v2443_v29 = vsel %vm409_vm4, %v2427_v31, 0.0  ;;  %v2432_v62 = vmul.f32 %v5372_v18, %v5372_v18  ;;  %v2434_v17 = vmul.f32 %v5390_v51, %v5390_v51 }
 0xb60   :  { %v2109_v8 = vadd.f32 %v3498_v56, %v2108_v14  ;;  %v2429_v12 = vmul.f32 %v5350_v61, %v5350_v61  ;;  %v2431_v59 = vmul.f32 %v5365_v11, %v5365_v11 }
 0xb61   :  { %v2448_v52 = vsel %vm409_vm4, %v2430_v60, 0.0  ;;  %v5428_v60 = vpop.trf.xlu1 }
 0xb62   :  { %v2113_v15 = vsel %vm2112_vm7, %v3498_v56, %v2109_v8  ;;  %v5339_v56 = vadd.f32 %v5225_v40, %v4608_v22  ;;  %v2446_v49 = vsel %vm409_vm4, %v2429_v12, 0.0  ;;  %v2437_v12 = vmul.f32 %v5412_v53, %v5412_v53 }
 0xb63   :  { %3244 = vmatpush.xpose.msk.msrb.mxu2 %vm409_vm4, %v2134_v30  ;;  %v2118_v57 = vsel %vm2115_vm8, %v2117_v36, %v2113_v15  ;;  %v2450_v36 = vsel %vm409_vm4, %v2431_v59, 0.0 }
 0xb64   :  { %v2119_v0 = vmul.f32 %v5220_v38, %v2118_v57  ;;  %v3273_v38 = vld [vmem:[%s5846_s1 + $0x70] sm:$0xff]  ;;  %v2428_v20 = vmul.f32 %v5339_v56, %v5339_v56  ;;  %v2462_v59 = vsel %vm409_vm4, %v2437_v12, 0.0 }
 0xb66   :  { %2229 = vrot.lane.b32.xlu2 %v2119_v0, %s3556_s3  ;;  %2231 = vrot.lane.b32.xlu0 %v2134_v30, %s3556_s3  ;;  %v2415_v37 = vpop.f32.mrf.mxu3  ;;  %v2444_v63 = vsel %vm409_vm4, %v2428_v20, 0.0  ;;  %v2433_v30 = vmul.f32 %v5383_v4, %v5383_v4  ;;  %v5418_v20 = vadd.f32 %v2412_v9, %v5928_v45 }
 0xb67   :  { %3245 = vmatpush.xpose.msk.msrb.mxu2 %vm409_vm4, %v2119_v0  ;;  %v2445_v14 = vadd.f32 %v2444_v63, %v2443_v29  ;;  %v2452_v0 = vsel %vm409_vm4, %v2432_v62, 0.0  ;;  %v5426_v47 = vadd.f32 %v2415_v37, %v5929_v35 }
 0xb68   :  { %v2438_v9 = vmul.f32 %v5418_v20, %v5418_v20 }
 0xb69   :  { %v2447_v8 = vadd.f32 %v2446_v49, %v2445_v14  ;;  %v2439_v14 = vmul.f32 %v5426_v47, %v5426_v47 }
 0xb6a   :  { %v2464_v62 = vsel %vm409_vm4, %v2438_v9, 0.0 }
 0xb6b   :  { %3246 = vmatpush.xpose.msk.msrb.mxu2 %vm409_vm4, %v5255_v43  ;;  %v3271_v43 = vld [vmem:[%s5846_s1 + $0x60] sm:$0xff]  ;;  %v2449_v15 = vadd.f32 %v2448_v52, %v2447_v8 }
 0xb6e   :  { %3247 = vmatmul.msk.f32.vlgmr.msrb.gmra.mxu2 %vm409_vm4, %v2210_v58  ;;  %v2418_v40 = vpop.f32.mrf.mxu3  ;;  %v2451_v58 = vadd.f32 %v2450_v36, %v2449_v15 }
 0xb6f   :  { %2565 = vmatpush.msra.mxu2 %v3274_v34  ;;  %v5405_v34 = vadd.f32 %v5285_v39, %v5926_v48  ;;  %v5434_v29 = vadd.f32 %v2418_v40, %v4892_v32 }
 0xb71   :  { %2566 = vmatpush.msra.mxu2 %v3273_v38  ;;  %v2454_v38 = vsel %vm409_vm4, %v2433_v30, 0.0  ;;  %v2440_v8 = vmul.f32 %v5434_v29, %v5434_v29  ;;  %v2466_v30 = vsel %vm409_vm4, %v2439_v14, 0.0 }
 0xb73   :  { %2567 = vmatpush.msra.mxu2 %v3272_v25  ;;  %v2435_v25 = vmul.f32 %v5398_v26, %v5398_v26 }
 0xb75   :  { %2568 = vmatpush.msra.mxu2 %v3271_v43  ;;  %v2453_v43 = vadd.f32 %v2452_v0, %v2451_v58  ;;  %v2458_v31 = vsel %vm409_vm4, %v2435_v25, 0.0 }
 0xb76   :  { %3248 = vmatmul.msk.f32.gmra.mxu2 %vm409_vm4, %v2211_v13  ;;  %v2421_v57 = vpop.f32.mrf.mxu3  ;;  %v2456_v13 = vsel %vm409_vm4, %v2434_v17, 0.0 }
 0xb77   :  { %v2455_v39 = vadd.f32 %v2454_v38, %v2453_v43  ;;  %v5440_v37 = vadd.f32 %v2421_v57, %v5930_v33  ;;  %v2468_v57 = vsel %vm409_vm4, %v2440_v8, 0.0  ;;  %v5452_v38 = vpop.trf.xlu1 }
 0xb79   :  { %v2457_v63 = vadd.f32 %v2456_v13, %v2455_v39  ;;  %v2441_v15 = vmul.f32 %v5440_v37, %v5440_v37 }
 0xb7b   :  { %v2470_v25 = vsel %vm409_vm4, %v2441_v15, 0.0 }
 0xb7e   :  { %3249 = vmatmul.msk.f32.gmra.mxu2 %vm409_vm4, %v2212_v54  ;;  %v2436_v54 = vmul.f32 %v5405_v34, %v5405_v34  ;;  %v2424_v49 = vpop.f32.mrf.mxu3 }
 0xb7f   :  { %v2425_v36 = vadd.f32 %v2424_v49, %v5931_v10 }
 0xb81   :  { %v2442_v17 = vmul.f32 %v2425_v36, %v2425_v36 }
 0xb83   :  { %v2472_v13 = vsel %vm409_vm4, %v2442_v17, 0.0 }
 0xb86   :  { %3250 = vmatmul.msk.f32.gmra.mxu2 %vm409_vm4, %v2213_v24  ;;  %v2460_v24 = vsel %vm409_vm4, %v2436_v54, 0.0 }
 0xb8e   :  { %3275 = vmatmul.msk.f32.vlgmr.msra.gmra.mxu2 %vm142_vm0, %v5065_v6  ;;  %v2459_v6 = vadd.f32 %v2458_v31, %v2457_v63  ;;  %v5458_v31 = vpop.trf.xlu1 }
 0xb90   :  { %v2461_v52 = vadd.f32 %v2460_v24, %v2459_v6 }
 0xb92   :  { %v2463_v40 = vadd.f32 %v2462_v59, %v2461_v52  ;;  %v5945_v52 = vld [vmem:[#allocation2_spill] sm:$0xff] }
 0xb94   :  { %v2465_v0 = vadd.f32 %v2464_v62, %v2463_v40 }
 0xb96   :  { %3276 = vmatmul.msk.f32.gmra.mxu2 %vm142_vm0, %v5074_v21  ;;  %v2467_v58 = vadd.f32 %v2466_v30, %v2465_v0  ;;  %v5464_v24 = vpop.trf.xlu1  ;;  %v5946_v30 = vld [vmem:[#allocation3_spill] sm:$0xff] }
 0xb98   :  { %v2469_v43 = vadd.f32 %v2468_v57, %v2467_v58  ;;  %v5947_v58 = vld [vmem:[#allocation4_spill] sm:$0xff] }
 0xb9a   :  { %v2471_v21 = vadd.f32 %v2470_v25, %v2469_v43 }
 0xb9c   :  { %v2473_v54 = vadd.f32 %v2472_v13, %v2471_v21 }
 0xb9e   :  { %3277 = vmatmul.msk.f32.gmra.mxu2 %vm142_vm0, %v5083_v28  ;;  %v2474_v39 = vrot.slane %v2473_v54, 4  ;;  %v5468_v49 = vpop.trf.xlu1 }
 0xba0   :  { %v2475_v12 = vadd.f32 %v2474_v39, %v2473_v54  ;;  %v5948_v39 = vld [vmem:[#allocation5_spill] sm:$0xff] }
 0xba2   :  { %v2476_v63 = vrot.slane %v2475_v12, 2 }
 0xba4   :  { %v2477_v9 = vadd.f32 %v2476_v63, %v2475_v12 }
 0xba6   :  { %3278 = vmatmul.msk.f32.gmra.mxu2 %vm142_vm0, %v5090_v27  ;;  %v2478_v6 = vrot.slane %v2477_v9, 1  ;;  %v5473_v14 = vpop.trf.xlu1 }
 0xba8   :  { %v2479_v28 = vadd.f32 %v2478_v6, %v2477_v9  ;;  %v3223_v9 = vld [vmem:[%s5849_s2 + $0x40] sm:$0xff] }
 0xbaa   :  { %v2480_v59 = vmax.f32 %v2479_v28, 1e-24  ;;  %v5949_v28 = vld [vmem:[#allocation6_spill] sm:$0xff] }
 0xbac   :  { %3499 = vrsqrt.f32 %v2480_v59  ;;  %vm2487_vm10 = vweird.f32 %v2480_v59 }
 0xbae   :  { %3279 = vmatmul.msk.f32.gmra.mxu2 %vm142_vm0, %v5099_v3  ;;  %v2240_v3 = vpop.permute.xlu2 %2239  ;;  %v5479_v40 = vpop.trf.xlu1 }
 0xbb6   :  { %3280 = vmatmul.msk.f32.gmra.mxu2 %vm142_vm0, %v5106_v46  ;;  %v3500_v46 = vpop.eup %3499  ;;  %v5487_v25 = vpop.trf.xlu1 }
 0xbb7   :  { %v2482_v8 = vmul.f32 %v3500_v46, %v2480_v59  ;;  %vm2488_vm9 = vweird.f32 %v3500_v46 }
 0xbb8   :  { %v2234_v57 = vpop.permute.xlu2 %2233  ;;  %vm2489_vm11 = vmor %vm2487_vm10, %vm2488_vm9 }
 0xbbe   :  { %3281 = vmatmul.msk.f32.gmra.mxu2 %vm142_vm0, %v5113_v55  ;;  %v2483_v55 = vmul.f32 %v3500_v46, %v2482_v8  ;;  %v2228_v63 = vpop.permute.xlu1 %2227  ;;  %v5951_v8 = vld [vmem:[#allocation8_spill] sm:$0xff] }
 0xbc0   :  { %v2242_v27 = vpop.permute.xlu0 %2241  ;;  %v2484_v0 = vmul.f32 0.5, %v2483_v55  ;;  %v2230_v21 = vpop.permute.xlu2 %2229 }
 0xbc1   :  { %3227 = vmatpush.xpose.msk.msrb.mxu1 %vm409_vm4, %v2242_v27 }
 0xbc2   :  { %v2485_v17 = vsub.f32 1.5, %v2484_v0 }
 0xbc4   :  { %v2486_v13 = vmul.f32 %v3500_v46, %v2485_v17 }
 0xbc5   :  { %3228 = vmatpush.xpose.msk.msrb.mxu1 %vm409_vm4, %v2240_v3  ;;  %v3224_v3 = vld [vmem:[%s5849_s2 + $0x48] sm:$0xff] }
 0xbc6   :  { %3282 = vmatmul.msk.f32.gmra.mxu2 %vm142_vm0, %v5945_v52  ;;  %v2490_v54 = vsel %vm2489_vm11, %v3500_v46, %v2486_v13  ;;  %v5950_v52 = vld [vmem:[#allocation7_spill] sm:$0xff]  ;;  %v5564_v13 = vmul.f32 30.0, %v5473_v14 }
 0xbc7   :  { %v2506_v12 = vmul.f32 %v2490_v54, %v2425_v36  ;;  %v2505_v6 = vmul.f32 %v2490_v54, %v5440_v37  ;;  %v2504_v59 = vmul.f32 %v2490_v54, %v5434_v29  ;;  %v2503_v36 = vmul.f32 %v2490_v54, %v5426_v47 }
 0xbc8   :  { %v2238_v62 = vpop.permute.xlu0 %2237  ;;  %v2502_v27 = vmul.f32 %v2490_v54, %v5418_v20  ;;  %v2501_v37 = vmul.f32 %v2490_v54, %v5412_v53  ;;  %v2500_v29 = vmul.f32 %v2490_v54, %v5405_v34  ;;  %v2499_v47 = vmul.f32 %v2490_v54, %v5398_v26  ;;  %v3225_v53 = vld [vmem:[%s5849_s2 + $0x50] sm:$0xff] }
 0xbc9   :  { %3229 = vmatpush.xpose.msk.msrb.mxu1 %vm409_vm4, %v2238_v62  ;;  %v2498_v20 = vmul.f32 %v2490_v54, %v5390_v51  ;;  %v2497_v62 = vmul.f32 %v2490_v54, %v5383_v4  ;;  %v2496_v26 = vmul.f32 %v2490_v54, %v5372_v18  ;;  %v2495_v34 = vmul.f32 %v2490_v54, %v5365_v11  ;;  %v3226_v4 = vld [vmem:[%s5849_s2 + $0x58] sm:$0xff] }
 0xbca   :  { %v2494_v51 = vmul.f32 %v2490_v54, %v5356_v23  ;;  %v2492_v11 = vmul.f32 %v2490_v54, %v5339_v56  ;;  %v2491_v18 = vmul.f32 %v2490_v54, %v5346_v44  ;;  %v5538_v23 = vmul.f32 30.0, %v5428_v60 }
 0xbcb   :  { %v5552_v56 = vmul.f32 30.0, %v5458_v31  ;;  %v5556_v60 = vmul.f32 30.0, %v5464_v24 }
 0xbce   :  { %3283 = vmatmul.msk.f32.gmra.mxu2 %vm142_vm0, %v5946_v30  ;;  %v2493_v30 = vmul.f32 %v2490_v54, %v5350_v61  ;;  %v5953_v61 = vld [vmem:[#allocation10_spill] sm:$0xff]  ;;  %v5572_v54 = vmul.f32 30.0, %v5487_v25 }
 0xbd0   :  { %v2236_v15 = vpop.permute.xlu0 %2235 }
 0xbd1   :  { %3230 = vmatpush.xpose.msk.msrb.mxu1 %vm409_vm4, %v2236_v15  ;;  %v5952_v15 = vld [vmem:[#allocation9_spill] sm:$0xff] }
 0xbd5   :  { %3231 = vmatpush.xpose.msk.msrb.mxu1 %vm409_vm4, %v2234_v57  ;;  %v5546_v57 = vmul.f32 30.0, %v5452_v38 }
 0xbd6   :  { %3284 = vmatmul.msk.f32.gmra.mxu2 %vm142_vm0, %v5947_v58 }
 0xbd8   :  { %v2232_v43 = vpop.permute.xlu0 %2231 }
 0xbd9   :  { %3232 = vmatpush.xpose.msk.msrb.mxu1 %vm409_vm4, %v2232_v43  ;;  %v5560_v43 = vmul.f32 30.0, %v5468_v49 }
 0xbdd   :  { %3233 = vmatpush.xpose.msk.msrb.mxu1 %vm409_vm4, %v2230_v21  ;;  %v5568_v21 = vmul.f32 30.0, %v5479_v40 }
 0xbde   :  { %3285 = vmatmul.msk.f32.gmra.mxu2 %vm142_vm0, %v5948_v39 }
 0xbe1   :  { %3234 = vmatpush.xpose.msk.msrb.mxu1 %vm409_vm4, %v2228_v63 }
 0xbe4   :  { %3235 = vmatmul.msk.f32.vlgmr.msrb.gmra.mxu1 %vm409_vm4, %v3223_v9 }
 0xbe5   :  { %2507 = vmatpush.msra.mxu1 %v2506_v12 }
 0xbe6   :  { %3286 = vmatmul.msk.f32.gmra.mxu2 %vm142_vm0, %v5949_v28 }
 0xbe7   :  { %2508 = vmatpush.msra.mxu1 %v2505_v6 }
 0xbe9   :  { %2509 = vmatpush.msra.mxu1 %v2504_v59 }
 0xbeb   :  { %2510 = vmatpush.msra.mxu1 %v2503_v36 }
 0xbec   :  { %3236 = vmatmul.msk.f32.gmra.mxu1 %vm409_vm4, %v3224_v3 }
 0xbed   :  { %2511 = vmatpush.msra.mxu1 %v2502_v27 }
 0xbee   :  { %3287 = vmatmul.msk.f32.gmra.mxu2 %vm142_vm0, %v5950_v52 }
 0xbef   :  { %2512 = vmatpush.msra.mxu1 %v2501_v37 }
 0xbf1   :  { %2513 = vmatpush.msra.mxu1 %v2500_v29  ;;  %v5513_v46 = vpop.f32.mrf.mxu2 }
 0xbf3   :  { %2514 = vmatpush.msra.mxu1 %v2499_v47 }
 0xbf4   :  { %3237 = vmatmul.msk.f32.gmra.mxu1 %vm409_vm4, %v3225_v53 }
 0xbf5   :  { %2515 = vmatpush.msra.mxu1 %v2498_v20 }
 0xbf6   :  { %3288 = vmatmul.msk.f32.gmra.mxu2 %vm142_vm0, %v5951_v8 }
 0xbf7   :  { %2516 = vmatpush.msra.mxu1 %v2497_v62 }
 0xbf9   :  { %2517 = vmatpush.msra.mxu1 %v2496_v26  ;;  %v5525_v55 = vpop.f32.mrf.mxu2 }
 0xbfb   :  { %2518 = vmatpush.msra.mxu1 %v2495_v34 }
 0xbfc   :  { %3238 = vmatmul.msk.f32.gmra.mxu1 %vm409_vm4, %v3226_v4 }
 0xbfd   :  { %2519 = vmatpush.msra.mxu1 %v2494_v51 }
 0xbfe   :  { %3289 = vmatmul.msk.f32.gmra.mxu2 %vm142_vm0, %v5952_v15 }
 0xbff   :  { %2520 = vmatpush.msra.mxu1 %v2493_v30 }
 0xc01   :  { %2521 = vmatpush.msra.mxu1 %v2492_v11  ;;  %v5540_v0 = vpop.f32.mrf.mxu2 }
 0xc03   :  { %2522 = vmatpush.msra.mxu1 %v2491_v18 }
 0xc04   :  { %2523 = vmatmul.f32.vlgmr.msra.gmra.mxu1 %v5538_v23 }
 0xc06   :  { %3290 = vmatmul.msk.f32.gmra.mxu2 %vm142_vm0, %v5953_v61 }
 0xc09   :  { %v5548_v17 = vpop.f32.mrf.mxu2 }
 0xc0c   :  { %2526 = vmatmul.f32.gmra.mxu1 %v5546_v57 }
 0xc11   :  { %v2570_v44 = vpop.f32.mrf.mxu2 }
 0xc12   :  { %v5579_v40 = vadd.f32 %v2570_v44, %v4682_v42 }
 0xc14   :  { %2529 = vmatmul.f32.gmra.mxu1 %v5552_v56  ;;  %v2618_v27 = vmul.f32 %v5579_v40, %v5579_v40 }
 0xc19   :  { %v2573_v58 = vpop.f32.mrf.mxu2 }
 0xc1a   :  { %v5576_v6 = vadd.f32 %v2573_v58, %v4608_v22 }
 0xc1c   :  { %2532 = vmatmul.f32.gmra.mxu1 %v5556_v60  ;;  %v2619_v25 = vmul.f32 %v5576_v6, %v5576_v6 }
 0xc1e   :  { %v2635_v42 = vsel %vm409_vm4, %v2619_v25, 0.0 }
 0xc21   :  { %v2576_v38 = vpop.f32.mrf.mxu2 }
 0xc22   :  { %v5582_v59 = vadd.f32 %v2576_v38, %v4622_v2 }
 0xc24   :  { %2535 = vmatmul.f32.gmra.mxu1 %v5560_v43  ;;  %v2620_v22 = vmul.f32 %v5582_v59, %v5582_v59 }
 0xc26   :  { %v2637_v29 = vsel %vm409_vm4, %v2620_v22, 0.0 }
 0xc29   :  { %v2579_v31 = vpop.f32.mrf.mxu2 }
 0xc2a   :  { %v5587_v36 = vadd.f32 %v2579_v31, %v4626_v41  ;;  %v2634_v41 = vsel %vm409_vm4, %v2618_v27, 0.0 }
 0xc2c   :  { %2538 = vmatmul.f32.gmra.mxu1 %v5564_v13  ;;  %v2621_v2 = vmul.f32 %v5587_v36, %v5587_v36 }
 0xc2e   :  { %v2639_v53 = vsel %vm409_vm4, %v2621_v2, 0.0 }
 0xc31   :  { %v2582_v24 = vpop.f32.mrf.mxu2 }
 0xc32   :  { %v5594_v3 = vadd.f32 %v2582_v24, %v4742_v5  ;;  %v2636_v5 = vadd.f32 %v2635_v42, %v2634_v41 }
 0xc34   :  { %2541 = vmatmul.f32.gmra.mxu1 %v5568_v21  ;;  %v2622_v47 = vmul.f32 %v5594_v3, %v5594_v3  ;;  %v2638_v8 = vadd.f32 %v2637_v29, %v2636_v5 }
 0xc36   :  { %v2641_v26 = vsel %vm409_vm4, %v2622_v47, 0.0 }
 0xc39   :  { %v2585_v49 = vpop.f32.mrf.mxu2 }
 0xc3a   :  { %v5600_v37 = vadd.f32 %v2585_v49, %v4668_v50 }
 0xc3c   :  { %2544 = vmatmul.f32.gmra.mxu1 %v5572_v54  ;;  %v2623_v62 = vmul.f32 %v5600_v37, %v5600_v37 }
 0xc3e   :  { %v2643_v4 = vsel %vm409_vm4, %v2623_v62, 0.0 }
 0xc41   :  { %v2588_v39 = vpop.f32.mrf.mxu2 }
 0xc42   :  { %v5607_v20 = vadd.f32 %v2588_v39, %v4680_v16  ;;  %v2640_v16 = vadd.f32 %v2639_v53, %v2638_v8 }
 0xc44   :  { %v2624_v34 = vmul.f32 %v5607_v20, %v5607_v20 }
 0xc46   :  { %v2645_v18 = vsel %vm409_vm4, %v2624_v34, 0.0 }
 0xc49   :  { %v2591_v12 = vpop.f32.mrf.mxu2 }
 0xc4a   :  { %v5613_v50 = vadd.f32 %v2591_v12, %v4794_v19  ;;  %v2642_v19 = vadd.f32 %v2641_v26, %v2640_v16 }
 0xc4c   :  { %v2625_v30 = vmul.f32 %v5613_v50, %v5613_v50 }
 0xc4e   :  { %v2647_v58 = vsel %vm409_vm4, %v2625_v30, 0.0 }
 0xc51   :  { %v2594_v63 = vpop.f32.mrf.mxu2 }
 0xc52   :  { %v5619_v51 = vadd.f32 %v2594_v63, %v5925_v7  ;;  %v2644_v7 = vadd.f32 %v2643_v4, %v2642_v19 }
 0xc54   :  { %v2626_v61 = vmul.f32 %v5619_v51, %v5619_v51 }
 0xc56   :  { %v2649_v24 = vsel %vm409_vm4, %v2626_v61, 0.0 }
 0xc59   :  { %v2597_v14 = vpop.f32.mrf.mxu2 }
 0xc5a   :  { %v5625_v15 = vadd.f32 %v2597_v14, %v5926_v48  ;;  %v2646_v48 = vadd.f32 %v2645_v18, %v2644_v7 }
 0xc5c   :  { %v2627_v38 = vmul.f32 %v5625_v15, %v5625_v15  ;;  %v2648_v12 = vadd.f32 %v2647_v58, %v2646_v48 }
 0xc61   :  { %v2600_v9 = vpop.f32.mrf.mxu2 }
 0xc62   :  { %v5631_v44 = vadd.f32 %v2600_v9, %v5927_v1  ;;  %v2651_v1 = vsel %vm409_vm4, %v2627_v38, 0.0  ;;  %v2650_v9 = vadd.f32 %v2649_v24, %v2648_v12 }
 0xc64   :  { %v2628_v49 = vmul.f32 %v5631_v44, %v5631_v44 }
 0xc66   :  { %v2653_v27 = vsel %vm409_vm4, %v2628_v49, 0.0 }
 0xc69   :  { %v2603_v28 = vpop.f32.mrf.mxu2 }
 0xc6a   :  { %v2604_v31 = vadd.f32 %v2603_v28, %v5928_v45  ;;  %v2652_v28 = vadd.f32 %v2651_v1, %v2650_v9 }
 0xc6c   :  { %v2629_v63 = vmul.f32 %v2604_v31, %v2604_v31  ;;  %v2654_v41 = vadd.f32 %v2653_v27, %v2652_v28 }
 0xc6e   :  { %v2655_v42 = vsel %vm409_vm4, %v2629_v63, 0.0 }
 0xc6f   :  { %v2656_v29 = vadd.f32 %v2655_v42, %v2654_v41 }
 0xc71   :  { %v2606_v52 = vpop.f32.mrf.mxu2 }
 0xc72   :  { %v2607_v39 = vadd.f32 %v2606_v52, %v5929_v35 }
 0xc74   :  { %v2630_v22 = vmul.f32 %v2607_v39, %v2607_v39 }
 0xc76   :  { %v2657_v35 = vsel %vm409_vm4, %v2630_v22, 0.0 }
 0xc77   :  { %v2658_v5 = vadd.f32 %v2657_v35, %v2656_v29 }
 0xc79   :  { %v2609_v11 = vpop.f32.mrf.mxu2 }
 0xc7a   :  { %v2610_v14 = vadd.f32 %v2609_v11, %v4892_v32 }
 0xc7c   :  { %v2631_v2 = vmul.f32 %v2610_v14, %v2610_v14 }
 0xc7e   :  { %v2659_v47 = vsel %vm409_vm4, %v2631_v2, 0.0 }
 0xc7f   :  { %v2660_v8 = vadd.f32 %v2659_v47, %v2658_v5 }
 0xc81   :  { %v2612_v25 = vpop.f32.mrf.mxu2 }
 0xc82   :  { %v2613_v45 = vadd.f32 %v2612_v25, %v5930_v33 }
 0xc84   :  { %v2632_v52 = vmul.f32 %v2613_v45, %v2613_v45 }
 0xc86   :  { %v2661_v53 = vsel %vm409_vm4, %v2632_v52, 0.0 }
 0xc87   :  { %v2662_v33 = vadd.f32 %v2661_v53, %v2660_v8 }
 0xc89   :  { %v2615_v32 = vpop.f32.mrf.mxu2 }
 0xc8a   :  { %v2616_v62 = vadd.f32 %v2615_v32, %v5931_v10 }
 0xc8c   :  { %v2633_v26 = vmul.f32 %v2616_v62, %v2616_v62 }
 0xc8e   :  { %v2663_v34 = vsel %vm409_vm4, %v2633_v26, 0.0 }
 0xc8f   :  { %v2664_v16 = vadd.f32 %v2663_v34, %v2662_v33 }
 0xc91   :  { %v2665_v4 = vrot.slane %v2664_v16, 4 }
 0xc93   :  { %v2666_v30 = vadd.f32 %v2665_v4, %v2664_v16 }
 0xc95   :  { %v2667_v19 = vrot.slane %v2666_v30, 2 }
 0xc97   :  { %v2668_v11 = vadd.f32 %v2667_v19, %v2666_v30 }
 0xc99   :  { %v2669_v18 = vrot.slane %v2668_v11, 1 }
 0xc9b   :  { %v2670_v61 = vadd.f32 %v2669_v18, %v2668_v11 }
 0xc9d   :  { %v2671_v7 = vmax.f32 %v2670_v61, 1e-24 }
 0xc9f   :  { %3501 = vrsqrt.f32 %v2671_v7  ;;  %vm2678_vm12 = vweird.f32 %v2671_v7 }
 0xca5   :  { %v3502_v58 = vpop.eup %3501 }
 0xca6   :  { %v2673_v38 = vmul.f32 %v3502_v58, %v2671_v7  ;;  %vm2679_vm0 = vweird.f32 %v3502_v58 }
 0xca7   :  { %vm2680_vm13 = vmor %vm2678_vm12, %vm2679_vm0 }
 0xca8   :  { %v2674_v48 = vmul.f32 %v3502_v58, %v2673_v38 }
 0xcaa   :  { %v2675_v24 = vmul.f32 0.5, %v2674_v48 }
 0xcac   :  { %v2676_v49 = vsub.f32 1.5, %v2675_v24 }
 0xcae   :  { %v2677_v10 = vmul.f32 %v3502_v58, %v2676_v49 }
 0xcb0   :  { %v2681_v12 = vsel %vm2680_vm13, %v3502_v58, %v2677_v10 }
 0xcb1   :  { %v2697_v1 = vmul.f32 %v2681_v12, %v2616_v62  ;;  %v2696_v63 = vmul.f32 %v2681_v12, %v2613_v45  ;;  %v2695_v9 = vmul.f32 %v2681_v12, %v2610_v14  ;;  %v2694_v25 = vmul.f32 %v2681_v12, %v2607_v39 }
 0xcb2   :  { %v2693_v27 = vmul.f32 %v2681_v12, %v2604_v31  ;;  %v2692_v22 = vmul.f32 %v2681_v12, %v5631_v44  ;;  %v2691_v28 = vmul.f32 %v2681_v12, %v5625_v15  ;;  %v2690_v42 = vmul.f32 %v2681_v12, %v5619_v51 }
 0xcb3   :  { %2698 = vmatpush.msra.mxu0 %v2697_v1  ;;  %v2689_v2 = vmul.f32 %v2681_v12, %v5613_v50  ;;  %v2688_v45 = vmul.f32 %v2681_v12, %v5607_v20  ;;  %v2687_v39 = vmul.f32 %v2681_v12, %v5600_v37  ;;  %v2686_v31 = vmul.f32 %v2681_v12, %v5594_v3  ;;  %v5670_v37 = vpop.f32.mrf.mxu1 }
 0xcb4   :  { %v2685_v44 = vmul.f32 %v2681_v12, %v5587_v36  ;;  %v2684_v15 = vmul.f32 %v2681_v12, %v5582_v59  ;;  %v2683_v51 = vmul.f32 %v2681_v12, %v5576_v6  ;;  %v2682_v50 = vmul.f32 %v2681_v12, %v5579_v40 }
 0xcb5   :  { %2699 = vmatpush.msra.mxu0 %v2696_v63 }
 0xcb7   :  { %2700 = vmatpush.msra.mxu0 %v2695_v9 }
 0xcb9   :  { %2701 = vmatpush.msra.mxu0 %v2694_v25 }
 0xcbb   :  { %2702 = vmatpush.msra.mxu0 %v2693_v27 }
 0xcbd   :  { %2703 = vmatpush.msra.mxu0 %v2692_v22 }
 0xcbf   :  { %2704 = vmatpush.msra.mxu0 %v2691_v28 }
 0xcc1   :  { %2705 = vmatpush.msra.mxu0 %v2690_v42 }
 0xcc3   :  { %2706 = vmatpush.msra.mxu0 %v2689_v2 }
 0xcc5   :  { %2707 = vmatpush.msra.mxu0 %v2688_v45 }
 0xcc7   :  { %2708 = vmatpush.msra.mxu0 %v2687_v39 }
 0xcc9   :  { %2709 = vmatpush.msra.mxu0 %v2686_v31 }
 0xccb   :  { %2710 = vmatpush.msra.mxu0 %v2685_v44 }
 0xccd   :  { %2711 = vmatpush.msra.mxu0 %v2684_v15 }
 0xccf   :  { %2712 = vmatpush.msra.mxu0 %v2683_v51 }
 0xcd1   :  { %2713 = vmatpush.msra.mxu0 %v2682_v50 }
 0xcd2   :  { %2714 = vmatmul.f32.vlgmr.msra.gmra.mxu0 %v5538_v23 }
 0xcda   :  { %2717 = vmatmul.f32.gmra.mxu0 %v5546_v57 }
 0xce2   :  { %2720 = vmatmul.f32.gmra.mxu0 %v5552_v56  ;;  %v5673_v56 = vpop.f32.mrf.mxu1 }
 0xcea   :  { %2723 = vmatmul.f32.gmra.mxu0 %v5556_v60 }
 0xcf2   :  { %2726 = vmatmul.f32.gmra.mxu0 %v5560_v43  ;;  %v5677_v43 = vpop.f32.mrf.mxu1 }
 0xcfa   :  { %2729 = vmatmul.f32.gmra.mxu0 %v5564_v13  ;;  %v5681_v13 = vpop.f32.mrf.mxu1 }
 0xd02   :  { %2732 = vmatmul.f32.gmra.mxu0 %v5568_v21  ;;  %v2524_v21 = vpop.f32.mrf.mxu1 }
 0xd0a   :  { %2735 = vmatmul.f32.gmra.mxu0 %v5572_v54  ;;  %v2527_v54 = vpop.f32.mrf.mxu1 }
 0xd12   :  { %v2530_v20 = vpop.f32.mrf.mxu1 }
 0xd1a   :  { %v2533_v14 = vpop.f32.mrf.mxu1 }
 0xd22   :  { %v2536_v41 = vpop.f32.mrf.mxu1 }
 0xd2a   :  { %v2539_v35 = vpop.f32.mrf.mxu1 }
 0xd32   :  { %v2542_v52 = vpop.f32.mrf.mxu1 }
 0xd3a   :  { %v2545_v8 = vpop.f32.mrf.mxu1 }
 0xd4f   :  { %v2715_v6 = vpop.f32.mrf.mxu0 }
 0xd57   :  { %v2718_v59 = vpop.f32.mrf.mxu0 }
 0xd5f   :  { %v2721_v40 = vpop.f32.mrf.mxu0 }
 0xd67   :  { %v2724_v36 = vpop.f32.mrf.mxu0 }
 0xd6f   :  { %v2727_v3 = vpop.f32.mrf.mxu0 }
 0xd77   :  { %v2730_v23 = vpop.f32.mrf.mxu0 }
 0xd7f   :  { %v2733_v57 = vpop.f32.mrf.mxu0 }
 0xd80   :  { %2759 = vrot.lane.b32.xlu2 %v2733_v57, %s3556_s3 }
 0xd87   :  { %v2736_v60 = vpop.f32.mrf.mxu0 }
 0xd88   :  { %2755 = vrot.lane.b32.xlu2 %v2727_v3, %s3556_s3  ;;  %2761 = vrot.lane.b32.xlu0 %v2736_v60, %s3556_s3 }
 0xd90   :  { %2751 = vrot.lane.b32.xlu2 %v2721_v40, %s3556_s3  ;;  %2757 = vrot.lane.b32.xlu0 %v2730_v23, %s3556_s3 }
 0xd98   :  { %2747 = vrot.lane.b32.xlu2 %v2715_v6, %s3556_s3  ;;  %2753 = vrot.lane.b32.xlu0 %v2724_v36, %s3556_s3 }
 0xda0   :  { %2749 = vrot.lane.b32.xlu0 %v2718_v59, %s3556_s3 }
 0xdda   :  { %v2760_v29 = vpop.permute.xlu2 %2759 }
 0xddb   :  { %v2777_v47 = vsel %vm409_vm4, %v2542_v52, %v2760_v29 }
 0xddc   :  { %2791 = vmax.xlane.f32.xlu2 %v2777_v47 }
 0xde2   :  { %v2756_v5 = vpop.permute.xlu2 %2755 }
 0xde3   :  { %v2775_v32 = vsel %vm409_vm4, %v2536_v41, %v2756_v5 }
 0xde4   :  { %2787 = vmax.xlane.f32.xlu2 %v2775_v32 }
 0xdea   :  { %v2752_v53 = vpop.permute.xlu2 %2751 }
 0xdeb   :  { %v2773_v62 = vsel %vm409_vm4, %v2530_v20, %v2752_v53 }
 0xdec   :  { %2783 = vmax.xlane.f32.xlu2 %v2773_v62 }
 0xdf2   :  { %v2748_v19 = vpop.permute.xlu2 %2747 }
 0xdf3   :  { %v2771_v61 = vsel %vm409_vm4, %v2524_v21, %v2748_v19 }
 0xdfa   :  { %v2762_v26 = vpop.permute.xlu0 %2761 }
 0xdfb   :  { %v2778_v33 = vsel %vm409_vm4, %v2545_v8, %v2762_v26 }
 0xdfc   :  { %2793 = vmax.xlane.f32.xlu0 %v2778_v33 }
 0xe02   :  { %v2758_v34 = vpop.permute.xlu0 %2757 }
 0xe03   :  { %v2776_v16 = vsel %vm409_vm4, %v2539_v35, %v2758_v34 }
 0xe04   :  { %2789 = vmax.xlane.f32.xlu0 %v2776_v16 }
 0xe0a   :  { %v2754_v4 = vpop.permute.xlu0 %2753 }
 0xe0b   :  { %v2774_v30 = vsel %vm409_vm4, %v2533_v14, %v2754_v4 }
 0xe0c   :  { %2785 = vmax.xlane.f32.xlu0 %v2774_v30 }
 0xe12   :  { %v2750_v11 = vpop.permute.xlu0 %2749 }
 0xe13   :  { %v2772_v18 = vsel %vm409_vm4, %v2527_v54, %v2750_v11 }
 0xe14   :  { %2781 = vmax.xlane.f32.xlu1 %v2772_v18  ;;  %2779 = vmax.xlane.f32.xlu0 %v2771_v61 }
 0xe4f   :  { %v2792_v7 = vpop.xlane.xlu2 %2791 }
 0xe50   :  { %v2801_v58 = vsub.f32 %v2777_v47, %v2792_v7 }
 0xe52   :  { %v2815_v38 = vmul.f32 1.442695, %v2801_v58 }
 0xe54   :  { %3503 = vpow2.f32 %v2815_v38 }
 0xe57   :  { %v2788_v48 = vpop.xlane.xlu2 %2787 }
 0xe58   :  { %v2799_v24 = vsub.f32 %v2775_v32, %v2788_v48 }
 0xe5a   :  { %v3504_v49 = vpop.eup %3503  ;;  %v2811_v10 = vmul.f32 1.442695, %v2799_v24 }
 0xe5b   :  { %2831 = vadd.xlane.f32.xlu0 %v3504_v49 }
 0xe5c   :  { %3505 = vpow2.f32 %v2811_v10 }
 0xe5f   :  { %v2784_v12 = vpop.xlane.xlu2 %2783 }
 0xe60   :  { %v2797_v1 = vsub.f32 %v2773_v62, %v2784_v12 }
 0xe62   :  { %v5694_v63 = vpop.eup %3505  ;;  %v2807_v9 = vmul.f32 1.442695, %v2797_v1 }
 0xe63   :  { %2827 = vadd.xlane.f32.xlu0 %v5694_v63 }
 0xe64   :  { %3507 = vpow2.f32 %v2807_v9 }
 0xe6a   :  { %v5697_v25 = vpop.eup %3507 }
 0xe6b   :  { %2823 = vadd.xlane.f32.xlu0 %v5697_v25 }
 0xe6f   :  { %v2794_v27 = vpop.xlane.xlu0 %2793 }
 0xe70   :  { %v2802_v22 = vsub.f32 %v2778_v33, %v2794_v27 }
 0xe72   :  { %v2817_v28 = vmul.f32 1.442695, %v2802_v22 }
 0xe74   :  { %3509 = vpow2.f32 %v2817_v28 }
 0xe77   :  { %v2790_v42 = vpop.xlane.xlu0 %2789 }
 0xe78   :  { %v2800_v2 = vsub.f32 %v2776_v16, %v2790_v42 }
 0xe7a   :  { %v5700_v45 = vpop.eup %3509  ;;  %v2813_v39 = vmul.f32 1.442695, %v2800_v2 }
 0xe7b   :  { %2833 = vadd.xlane.f32.xlu2 %v5700_v45 }
 0xe7c   :  { %3511 = vpow2.f32 %v2813_v39 }
 0xe7f   :  { %v2786_v31 = vpop.xlane.xlu0 %2785 }
 0xe80   :  { %v2798_v44 = vsub.f32 %v2774_v30, %v2786_v31 }
 0xe82   :  { %v5703_v15 = vpop.eup %3511  ;;  %v2809_v51 = vmul.f32 1.442695, %v2798_v44 }
 0xe83   :  { %2829 = vadd.xlane.f32.xlu2 %v5703_v15 }
 0xe84   :  { %3513 = vpow2.f32 %v2809_v51 }
 0xe87   :  { %v2782_v50 = vpop.xlane.xlu1 %2781  ;;  %v2780_v6 = vpop.xlane.xlu0 %2779 }
 0xe88   :  { %v2796_v59 = vsub.f32 %v2772_v18, %v2782_v50  ;;  %v2795_v40 = vsub.f32 %v2771_v61, %v2780_v6 }
 0xe8a   :  { %v5706_v36 = vpop.eup %3513  ;;  %v2805_v3 = vmul.f32 1.442695, %v2796_v59  ;;  %v2803_v23 = vmul.f32 1.442695, %v2795_v40 }
 0xe8b   :  { %2825 = vadd.xlane.f32.xlu2 %v5706_v36 }
 0xe8c   :  { %3515 = vpow2.f32 %v2805_v3 }
 0xe8d   :  { %3517 = vpow2.f32 %v2803_v23 }
 0xe92   :  { %v5709_v57 = vpop.eup %3515 }
 0xe93   :  { %v5711_v60 = vpop.eup %3517  ;;  %2821 = vadd.xlane.f32.xlu2 %v5709_v57 }
 0xe94   :  { %2819 = vadd.xlane.f32.xlu0 %v5711_v60 }
 0xece   :  { %v2832_v21 = vpop.xlane.xlu0 %2831 }
 0xecf   :  { %3519 = vrcp.f32 %v2832_v21  ;;  %v2936_v35 = vand.u32 2147483648, %v2832_v21  ;;  %v2934_v52 = vand.u32 2147483647, %v2832_v21  ;;  %vm2930_vm15 = vweird.f32 %v2832_v21 }
 0xed1   :  { %v2937_v47 = vor.u32 1.1754944e-38, %v2936_v35  ;;  %vm2935_vm2 = vcmp.eq.f32.partialorder %v2934_v52, 8.507059e+37 }
 0xed5   :  { %v3520_v54 = vpop.eup %3519 }
 0xed6   :  { %v2926_v20 = vmul.f32 %v3520_v54, %v2832_v21  ;;  %vm2931_vm14 = vweird.f32 %v3520_v54  ;;  %v2828_v62 = vpop.xlane.xlu0 %2827 }
 0xed7   :  { %vm2932_vm1 = vmor %vm2930_vm15, %vm2931_vm14  ;;  %3521 = vrcp.f32 %v2828_v62  ;;  %v2906_v28 = vand.u32 2147483648, %v2828_v62  ;;  %vm2900_vm9 = vweird.f32 %v2828_v62  ;;  %v2904_v2 = vand.u32 2147483647, %v2828_v62 }
 0xed8   :  { %v2927_v14 = vsub.f32 1.0, %v2926_v20 }
 0xed9   :  { %v2907_v59 = vor.u32 1.1754944e-38, %v2906_v28  ;;  %vm2905_vm0 = vcmp.eq.f32.partialorder %v2904_v2, 8.507059e+37 }
 0xeda   :  { %v2928_v41 = vmul.f32 %v3520_v54, %v2927_v14 }
 0xedc   :  { %v2929_v29 = vadd.f32 %v3520_v54, %v2928_v41 }
 0xedd   :  { %v3522_v33 = vpop.eup %3521 }
 0xede   :  { %v2933_v5 = vsel %vm2932_vm1, %v3520_v54, %v2929_v29  ;;  %v5719_v8 = vpop.xlane.xlu0 %2823  ;;  %v2896_v34 = vmul.f32 %v3522_v33, %v2828_v62  ;;  %vm2901_vm6 = vweird.f32 %v3522_v33 }
 0xedf   :  { %v2938_v32 = vsel %vm2935_vm2, %v2937_v47, %v2933_v5  ;;  %vm5728_vm10 = vmor %vm2900_vm9, %vm2901_vm6  ;;  %vm2870_vm15 = vweird.f32 %v5719_v8  ;;  %v2874_v52 = vand.u32 2147483647, %v5719_v8  ;;  %v2876_v29 = vand.u32 2147483648, %v5719_v8 }
 0xee0   :  { %v5715_v53 = vmul.f32 %v3504_v49, %v2938_v32  ;;  %v2897_v30 = vsub.f32 1.0, %v2896_v34 }
 0xee2   :  { %2985 = vrot.lane.b32.xlu0 %v5715_v53, %s3556_s3  ;;  %v2898_v58 = vmul.f32 %v3522_v33, %v2897_v30 }
 0xee4   :  { %v2899_v1 = vadd.f32 %v3522_v33, %v2898_v58 }
 0xee6   :  { %v2903_v6 = vsel %vm5728_vm10, %v3522_v33, %v2899_v1 }
 0xee7   :  { %v2908_v20 = vsel %vm2905_vm0, %v2907_v59, %v2903_v6 }
 0xeee   :  { %v2834_v26 = vpop.xlane.xlu2 %2833 }
 0xeef   :  { %3523 = vrcp.f32 %v2834_v26  ;;  %v2951_v7 = vand.u32 2147483648, %v2834_v26  ;;  %v2949_v48 = vand.u32 2147483647, %v2834_v26  ;;  %vm2945_vm5 = vweird.f32 %v2834_v26 }
 0xef0   :  { %3525 = vrcp.f32 %v5719_v8 }
 0xef1   :  { %v2952_v12 = vor.u32 1.1754944e-38, %v2951_v7  ;;  %vm2950_vm8 = vcmp.eq.f32.partialorder %v2949_v48, 8.507059e+37 }
 0xef5   :  { %v3524_v16 = vpop.eup %3523 }
 0xef6   :  { %v5722_v4 = vpop.eup %3525  ;;  %v2941_v19 = vmul.f32 %v3524_v16, %v2834_v26  ;;  %v2830_v11 = vpop.xlane.xlu2 %2829  ;;  %vm2946_vm3 = vweird.f32 %v3524_v16  ;;  %v2909_v26 = vmul.f32 %v5694_v63, %v2908_v20 }
 0xef7   :  { %3527 = vrcp.f32 %v2830_v11  ;;  %v2866_v61 = vmul.f32 %v5722_v4, %v5719_v8  ;;  %vm2947_vm7 = vmor %vm2945_vm5, %vm2946_vm3  ;;  %v2921_v40 = vand.u32 2147483648, %v2830_v11  ;;  %vm2915_vm12 = vweird.f32 %v2830_v11 }
 0xef8   :  { %v2942_v18 = vsub.f32 1.0, %v2941_v19  ;;  %v2919_v3 = vand.u32 2147483647, %v2830_v11  ;;  %vm2871_vm13 = vweird.f32 %v5722_v4  ;;  %v2877_v19 = vor.u32 1.1754944e-38, %v2876_v29  ;;  %v3297_v29 = vld [vmem:[%s5849_s2 + $0x70] sm:$0xff] }
 0xef9   :  { %v2867_v10 = vsub.f32 1.0, %v2866_v61  ;;  %v2922_v47 = vor.u32 1.1754944e-38, %v2921_v40  ;;  %vm5750_vm1 = vmor %vm2870_vm15, %vm2871_vm13  ;;  %vm2875_vm5 = vcmp.eq.f32.partialorder %v2874_v52, 8.507059e+37  ;;  %v3296_v52 = vld [vmem:[%s5849_s2 + $0x68] sm:$0xff] }
 0xefa   :  { %v2943_v38 = vmul.f32 %v3524_v16, %v2942_v18  ;;  %vm2920_vm2 = vcmp.eq.f32.partialorder %v2919_v3, 8.507059e+37 }
 0xefb   :  { %v2868_v51 = vmul.f32 %v5722_v4, %v2867_v10 }
 0xefc   :  { %v2944_v24 = vadd.f32 %v3524_v16, %v2943_v38 }
 0xefd   :  { %v3528_v49 = vpop.eup %3527  ;;  %v2869_v21 = vadd.f32 %v5722_v4, %v2868_v51 }
 0xefe   :  { %v2948_v9 = vsel %vm2947_vm7, %v3524_v16, %v2944_v24  ;;  %v2911_v27 = vmul.f32 %v3528_v49, %v2830_v11  ;;  %v2826_v22 = vpop.xlane.xlu2 %2825  ;;  %vm2916_vm11 = vweird.f32 %v3528_v49 }
 0xeff   :  { %v2953_v42 = vsel %vm2950_vm8, %v2952_v12, %v2948_v9  ;;  %3529 = vrcp.f32 %v2826_v22  ;;  %vm5739_vm14 = vmor %vm2915_vm12, %vm2916_vm11  ;;  %v2873_v34 = vsel %vm5750_vm1, %v5722_v4, %v2869_v21  ;;  %v2889_v8 = vand.u32 2147483647, %v2826_v22  ;;  %v3293_v21 = vld [vmem:[%s5849_s2 + $0x30] sm:$0xff] }
 0xf00   :  { %v2912_v39 = vsub.f32 1.0, %v2911_v27  ;;  %v2954_v31 = vmul.f32 %v5700_v45, %v2953_v42  ;;  %vm2885_vm6 = vweird.f32 %v2826_v22  ;;  %v2878_v61 = vsel %vm2875_vm5, %v2877_v19, %v2873_v34 }
 0xf01   :  { %vm2890_vm8 = vcmp.eq.f32.partialorder %v2889_v8, 8.507059e+37 }
 0xf02   :  { %v2913_v50 = vmul.f32 %v3528_v49, %v2912_v39  ;;  %3311 = vmatpush.xpose.msk.msrb.mxu0 %vm409_vm4, %v2954_v31  ;;  %2987 = vrot.lane.b32.xlu2 %v2954_v31, %s3556_s3 }
 0xf04   :  { %v2914_v45 = vadd.f32 %v3528_v49, %v2913_v50 }
 0xf05   :  { %v3530_v23 = vpop.eup %3529 }
 0xf06   :  { %v2881_v14 = vmul.f32 %v3530_v23, %v2826_v22  ;;  %v2822_v41 = vpop.xlane.xlu2 %2821  ;;  %3312 = vmatpush.xpose.msk.msrb.mxu0 %vm409_vm4, %v5715_v53  ;;  %v2918_v35 = vsel %vm5739_vm14, %v3528_v49, %v2914_v45  ;;  %v2891_v53 = vand.u32 2147483648, %v2826_v22  ;;  %vm2886_vm3 = vweird.f32 %v3530_v23  ;;  %v3292_v45 = vld [vmem:[%s5849_s2 + $0x28] sm:$0xff] }
 0xf07   :  { %3531 = vrcp.f32 %v2822_v41  ;;  %v2820_v5 = vpop.xlane.xlu0 %2819  ;;  %v2923_v33 = vsel %vm2920_vm2, %v2922_v47, %v2918_v35  ;;  %vm2887_vm7 = vmor %vm2885_vm6, %vm2886_vm3  ;;  %v2879_v49 = vmul.f32 %v5697_v25, %v2878_v61  ;;  %v2861_v10 = vand.u32 2147483648, %v2822_v41  ;;  %v3295_v35 = vld [vmem:[%s5849_s2 + $0x60] sm:$0xff]  ;;  %v3298_v47 = vld [vmem:[%s5849_s2 + $0x78] sm:$0xff] }
 0xf08   :  { %v2882_v62 = vsub.f32 1.0, %v2881_v14  ;;  %3533 = vrcp.f32 %v2820_v5  ;;  %v2924_v30 = vmul.f32 %v5703_v15, %v2923_v33  ;;  %v2892_v18 = vor.u32 1.1754944e-38, %v2891_v53  ;;  %v3294_v14 = vld [vmem:[%s5849_s2 + $0x38] sm:$0xff] }
 0xf09   :  { %v2859_v9 = vand.u32 2147483647, %v2822_v41  ;;  %v2846_v27 = vand.u32 2147483648, %v2820_v5  ;;  %v2844_v28 = vand.u32 2147483647, %v2820_v5  ;;  %vm2855_vm11 = vweird.f32 %v2822_v41 }
 0xf0a   :  { %v2883_v16 = vmul.f32 %v3530_v23, %v2882_v62  ;;  %2981 = vrot.lane.b32.xlu2 %v2909_v26, %s3556_s3  ;;  %2983 = vrot.lane.b32.xlu1 %v2924_v30, %s3556_s3  ;;  %vm2840_vm12 = vweird.f32 %v2820_v5 }
 0xf0b   :  { %3313 = vmatpush.xpose.msk.msrb.mxu0 %vm409_vm4, %v2924_v30  ;;  %vm2860_vm13 = vcmp.eq.f32.partialorder %v2859_v9, 8.507059e+37  ;;  %v2847_v2 = vor.u32 1.1754944e-38, %v2846_v27  ;;  %vm2845_vm15 = vcmp.eq.f32.partialorder %v2844_v28, 8.507059e+37 }
 0xf0c   :  { %v2884_v11 = vadd.f32 %v3530_v23, %v2883_v16 }
 0xf0d   :  { %v3532_v63 = vpop.eup %3531 }
 0xf0e   :  { %v3534_v4 = vpop.eup %3533  ;;  %v2851_v7 = vmul.f32 %v3532_v63, %v2822_v41  ;;  %v2888_v58 = vsel %vm2887_vm7, %v3530_v23, %v2884_v11  ;;  %vm2856_vm9 = vweird.f32 %v3532_v63 }
 0xf0f   :  { %v2836_v38 = vmul.f32 %v3534_v4, %v2820_v5  ;;  %v2893_v15 = vsel %vm2890_vm8, %v2892_v18, %v2888_v58  ;;  %3314 = vmatpush.xpose.msk.msrb.mxu0 %vm409_vm4, %v2909_v26  ;;  %vm2841_vm10 = vweird.f32 %v3534_v4  ;;  %vm2857_vm0 = vmor %vm2855_vm11, %vm2856_vm9 }
 0xf10   :  { %v2852_v48 = vsub.f32 1.0, %v2851_v7  ;;  %v2894_v24 = vmul.f32 %v5706_v36, %v2893_v15  ;;  %v2862_v36 = vor.u32 1.1754944e-38, %v2861_v10  ;;  %vm2842_vm14 = vmor %vm2840_vm12, %vm2841_vm10 }
 0xf11   :  { %v2837_v12 = vsub.f32 1.0, %v2836_v38 }
 0xf12   :  { %v2853_v1 = vmul.f32 %v3532_v63, %v2852_v48  ;;  %2979 = vrot.lane.b32.xlu0 %v2894_v24, %s3556_s3  ;;  %2977 = vrot.lane.b32.xlu2 %v2879_v49, %s3556_s3 }
 0xf13   :  { %v2838_v22 = vmul.f32 %v3534_v4, %v2837_v12  ;;  %3315 = vmatpush.xpose.msk.msrb.mxu0 %vm409_vm4, %v2894_v24 }
 0xf14   :  { %v2854_v42 = vadd.f32 %v3532_v63, %v2853_v1 }
 0xf15   :  { %v2839_v25 = vadd.f32 %v3534_v4, %v2838_v22 }
 0xf16   :  { %v2858_v39 = vsel %vm2857_vm0, %v3532_v63, %v2854_v42  ;;  %v2346_v63 = vadd.f32 %v5513_v46, %v5670_v37  ;;  %v2349_v46 = vadd.f32 %v5525_v55, %v5673_v56 }
 0xf17   :  { %v2863_v31 = vsel %vm2860_vm13, %v2862_v36, %v2858_v39  ;;  %v2843_v44 = vsel %vm2842_vm14, %v3534_v4, %v2839_v25  ;;  %3316 = vmatpush.xpose.msk.msrb.mxu0 %vm409_vm4, %v2879_v49  ;;  %v2355_v4 = vadd.f32 %v5548_v17, %v5681_v13  ;;  %v2352_v17 = vadd.f32 %v5540_v0, %v5677_v43 }
 0xf18   :  { %v2864_v51 = vmul.f32 %v5709_v57, %v2863_v31  ;;  %v2848_v50 = vsel %vm2845_vm15, %v2847_v2, %v2843_v44  ;;  %v3291_v57 = vld [vmem:[%s5849_s2 + $0x20] sm:$0xff] }
 0xf19   :  { %v2849_v6 = vmul.f32 %v5711_v60, %v2848_v50 }
 0xf1a   :  { %2975 = vrot.lane.b32.xlu1 %v2864_v51, %s3556_s3 }
 0xf1b   :  { %2973 = vrot.lane.b32.xlu0 %v2849_v6, %s3556_s3  ;;  %3317 = vmatpush.xpose.msk.msrb.mxu0 %vm409_vm4, %v2864_v51 }
 0xf1f   :  { %3318 = vmatpush.xpose.msk.msrb.mxu0 %vm409_vm4, %v2849_v6 }
 0xf22   :  { %3319 = vmatmul.msk.f32.vlgmr.msrb.gmra.mxu0 %vm409_vm4, %v3291_v57 }
 0xf2a   :  { %3320 = vmatmul.msk.f32.gmra.mxu0 %vm409_vm4, %v3292_v45 }
 0xf32   :  { %3321 = vmatmul.msk.f32.gmra.mxu0 %vm409_vm4, %v3293_v21 }
 0xf3a   :  { %3322 = vmatmul.msk.f32.gmra.mxu0 %vm409_vm4, %v3294_v14 }
 0xf54   :  { %v2986_v40 = vpop.permute.xlu0 %2985 }
 0xf5c   :  { %v2988_v59 = vpop.permute.xlu2 %2987 }
 0xf5d   :  { %3299 = vmatpush.xpose.msk.msrb.mxu1 %vm409_vm4, %v2988_v59 }
 0xf61   :  { %3300 = vmatpush.xpose.msk.msrb.mxu1 %vm409_vm4, %v2986_v40 }
 0xf64   :  { %v2982_v3 = vpop.permute.xlu2 %2981 }
 0xf6c   :  { %v2978_v54 = vpop.permute.xlu2 %2977 }
 0xf7c   :  { %v2984_v60 = vpop.permute.xlu1 %2983 }
 0xf7d   :  { %3301 = vmatpush.xpose.msk.msrb.mxu1 %vm409_vm4, %v2984_v60 }
 0xf81   :  { %3302 = vmatpush.xpose.msk.msrb.mxu1 %vm409_vm4, %v2982_v3 }
 0xf84   :  { %v2980_v23 = vpop.permute.xlu0 %2979 }
 0xf85   :  { %3303 = vmatpush.xpose.msk.msrb.mxu1 %vm409_vm4, %v2980_v23 }
 0xf89   :  { %3304 = vmatpush.xpose.msk.msrb.mxu1 %vm409_vm4, %v2978_v54 }
 0xf8c   :  { %v2976_v20 = vpop.permute.xlu1 %2975 }
 0xf8d   :  { %3305 = vmatpush.xpose.msk.msrb.mxu1 %vm409_vm4, %v2976_v20  ;;  %v2974_v41 = vpop.permute.xlu0 %2973 }
 0xf91   :  { %3306 = vmatpush.xpose.msk.msrb.mxu1 %vm409_vm4, %v2974_v41 }
 0xf94   :  { %3307 = vmatmul.msk.f32.vlgmr.msrb.gmra.mxu1 %vm409_vm4, %v3295_v35 }
 0xf9c   :  { %3308 = vmatmul.msk.f32.gmra.mxu1 %vm409_vm4, %v3296_v52 }
 0xf9f   :  { %v3091_v5 = vpop.f32.mrf.mxu0 }
 0xfa4   :  { %3309 = vmatmul.msk.f32.gmra.mxu1 %vm409_vm4, %v3297_v29 }
 0xfa7   :  { %v3094_v26 = vpop.f32.mrf.mxu0 }
 0xfac   :  { %3310 = vmatmul.msk.f32.gmra.mxu1 %vm409_vm4, %v3298_v47 }
 0xfaf   :  { %v3097_v34 = vpop.f32.mrf.mxu0 }
 0xfb7   :  { %v3100_v30 = vpop.f32.mrf.mxu0 }
0x1011   :  { %v3034_v32 = vpop.f32.mrf.mxu1 }
0x1012   :  { %v3092_v62 = vadd.f32 %v3091_v5, %v3034_v32 }
0x1014   :  { %3107 = vrot.lane.b32.xlu2 %v3092_v62, %s3556_s3 }
0x1019   :  { %v3037_v53 = vpop.f32.mrf.mxu1 }
0x101a   :  { %v3095_v33 = vadd.f32 %v3094_v26, %v3037_v53 }
0x101c   :  { %3109 = vrot.lane.b32.xlu1 %v3095_v33, %s3556_s3 }
0x1021   :  { %v3040_v16 = vpop.f32.mrf.mxu1 }
0x1022   :  { %v3098_v8 = vadd.f32 %v3097_v34, %v3040_v16 }
0x1024   :  { %3111 = vrot.lane.b32.xlu0 %v3098_v8, %s3556_s3 }
0x1029   :  { %v3043_v19 = vpop.f32.mrf.mxu1 }
0x102a   :  { %v3101_v11 = vadd.f32 %v3100_v30, %v3043_v19 }
0x102c   :  { %3113 = vrot.lane.b32.xlu2 %v3101_v11, %s3556_s3 }
0x106e   :  { %v3108_v18 = vpop.permute.xlu2 %3107 }
0x106f   :  { %v3119_v61 = vsel %vm409_vm4, %v2346_v63, %v3108_v18 }
0x1070   :  { %3123 = vst [vmem:[%s5850_s7] sm:$0xff] %v3119_v61 }
0x1086   :  { %v3114_v7 = vpop.permute.xlu2 %3113 }
0x1087   :  { %v3122_v58 = vsel %vm409_vm4, %v2355_v4, %v3114_v7 }
0x1088   :  { %3126 = vst [vmem:[%s5850_s7 + $0x18] sm:$0xff] %v3122_v58 }
0x108e   :  { %v3110_v37 = vpop.permute.xlu1 %3109 }
0x108f   :  { %v3120_v38 = vsel %vm409_vm4, %v2349_v46, %v3110_v37 }
0x1090   :  { %3124 = vst [vmem:[%s5850_s7 + $0x8] sm:$0xff] %v3120_v38 }
0x1096   :  { %v3112_v13 = vpop.permute.xlu0 %3111 }
0x1097   :  { %v3121_v15 = vsel %vm409_vm4, %v2352_v17, %v3112_v13 }
0x1098   :  { %3125 = vst [vmem:[%s5850_s7 + $0x10] sm:$0xff] %v3121_v15 }

</bundles_post_ra>
